<compile_context>
chip_gen: v7x
topology: tpu7x:2x2x1
jax: 0.10.0
libtpu: 0.0.40
codegen_flags: <defaults>
</compile_context>

<pallas_src>
import functools
import math

import jax
import jax.numpy as jnp
import numpy as np
from jax.experimental import pallas as pl
from jax.experimental.pallas import tpu as pltpu


# ---------------- fused kernel ----------------

def _fused_mha_kernel(q_ref, k_ref, v_ref, wq_ref, wk_ref, wv_ref,
                      wfold_ref, g_ref, b_ref, o_ref, *, n_head, d_k, d_v, eps):
    bb, T, D = q_ref.shape                      # batches in this block, len_q, d_attr
    T_k = k_ref.shape[1]                        # len_k (== len_v)
    H = n_head
    C = H * d_v

    q_in = q_ref[...]                           # (bb, T, D) f32
    q_flat = q_in.reshape(bb * T, D)
    k_flat = k_ref[...].reshape(bb * T_k, D)
    v_flat = v_ref[...].reshape(bb * T_k, D)

    # --- all heads' Q/K/V projections as ONE matmul per input (3 MXU pushes) ---
    qh_all = jnp.dot(q_flat, wq_ref[...], preferred_element_type=jnp.float32)  # (bb*T,   H*d_k)
    kh_all = jnp.dot(k_flat, wk_ref[...], preferred_element_type=jnp.float32)  # (bb*T_k, H*d_k)
    vh_all = jnp.dot(v_flat, wv_ref[...], preferred_element_type=jnp.float32)  # (bb*T_k, H*d_v)

    # --- per-head scaled dot-product attention, batched over the bb batches ---
    head_out = []
    for h in range(H):
        qh = qh_all[:, h * d_k:(h + 1) * d_k].reshape(bb, T, d_k)
        kh = kh_all[:, h * d_k:(h + 1) * d_k].reshape(bb, T_k, d_k)
        vh = vh_all[:, h * d_v:(h + 1) * d_v].reshape(bb, T_k, d_v)

        s = jnp.einsum('bqd,bkd->bqk', qh, kh, preferred_element_type=jnp.float32)
        m = jnp.max(s, axis=-1, keepdims=True)
        p = jnp.exp(s - m)
        p = p / jnp.sum(p, axis=-1, keepdims=True)      # exact softmax (matches reference)
        head_out.append(jnp.einsum('bqk,bkd->bqd', p, vh,
                                   preferred_element_type=jnp.float32))   # (bb, T, d_v)

    # q1[b, m, h*d_v + e] == head_out[h][b, m, e]  -> flatten to (bb, T*C) (lane-dense)
    o_flat = jnp.concatenate(head_out, axis=-1).reshape(bb, T * C)

    # --- scramble (double transpose+view) + fc fused into ONE matmul with Wfold ---
    y = jnp.dot(o_flat, wfold_ref[...], preferred_element_type=jnp.float32)   # (bb, T*D)
    y = y.reshape(bb, T, D)

    # --- residual + LayerNorm(eps=1e-6) ---
    y = y + q_in
    mean = jnp.mean(y, axis=-1, keepdims=True)
    var = jnp.mean(jnp.square(y - mean), axis=-1, keepdims=True)
    y = (y - mean) * jax.lax.rsqrt(var + eps)
    y = y * g_ref[...] + b_ref[...]

    # --- single lane-dense store of the whole block ---
    o_ref[...] = y.reshape(o_ref.shape).astype(o_ref.dtype)


# ---------------- wrapper (mirrors the PyTorch forward) ----------------

def multi_head_attention(q, k, v, params, n_head, d_k, d_v, eps=1e-6):
    b_q, n_q, t_q, d_attr = q.shape
    sz_b, T = b_q * n_q, t_q
    T_k, T_v = k.shape[2], v.shape[2]
    if T_k != T_v:
        raise NotImplementedError("attention requires len_k == len_v")
    C = n_head * d_v

    q3 = q.reshape(sz_b, T, d_attr)
    k3 = k.reshape(sz_b, T_k, d_attr)
    v3 = v.reshape(sz_b, T_v, d_attr)

    # ---- trace-time weight preparation (XLA, outside the kernel) ----
    scale = 1.0 / math.sqrt(d_k)                            # d_emb == d_k in the reference
    wq_all = (params["w_qs"] * scale).astype(jnp.float32)   # (D, H*d_k)
    wk_all = params["w_ks"].astype(jnp.float32)             # (D, H*d_k)
    wv_all = params["w_vs"].astype(jnp.float32)             # (D, H*d_v)

    # Fold the double transpose+view "scramble" into the fc weight:
    #   q2[b,i,j] = q1[b, (i*C+j)%T, (i*C+j)//T]
    #   out[b,i,d] = sum_j q2[b,i,j] * w_fc[j,d] = sum_{m,c} q1[b,m,c] * Wfold[m,c,i,d]
    #   Wfold[m,c,i,d] = w_fc[c*T + m - i*C, d]  if 0 <= c*T+m-i*C < C  else 0
    m_i = np.arange(T)[:, None, None]
    c_i = np.arange(C)[None, :, None]
    i_i = np.arange(T)[None, None, :]
    jj = c_i * T + m_i - i_i * C                            # (T, C, T) static indices
    valid = jnp.asarray((jj >= 0) & (jj < C))
    jc = jnp.asarray(np.clip(jj, 0, C - 1), dtype=jnp.int32)
    wfold = jnp.where(valid[..., None], params["w_fc"][jc], 0.0)   # (T, C, T, D)
    wfold = wfold.reshape(T * C, T * d_attr).astype(jnp.float32)

    # One grid block per TensorCore: single-TC chips (v5e/v6e) -> grid=(1,);
    # dual-TC / megacore chips (v7x, v4, v5p) -> 2 "parallel" blocks.
    dev_kind = jax.devices()[0].device_kind.lower()
    multi_tc = any(s in dev_kind for s in ("v7", "v4", "v5p"))
    nb = 2 if (multi_tc and sz_b % 2 == 0) else 1
    bb = sz_b // nb

    out = pl.pallas_call(
        functools.partial(_fused_mha_kernel, n_head=n_head, d_k=d_k, d_v=d_v, eps=eps),
        out_shape=jax.ShapeDtypeStruct((nb, bb, T * d_attr), q.dtype),
        grid=(nb,),
        in_specs=[
            pl.BlockSpec((bb, T, d_attr), lambda i: (i, 0, 0)),
            pl.BlockSpec((bb, T_k, d_attr), lambda i: (i, 0, 0)),
            pl.BlockSpec((bb, T_v, d_attr), lambda i: (i, 0, 0)),
            pl.BlockSpec((d_attr, n_head * d_k), lambda i: (0, 0)),
            pl.BlockSpec((d_attr, n_head * d_k), lambda i: (0, 0)),
            pl.BlockSpec((d_attr, n_head * d_v), lambda i: (0, 0)),
            pl.BlockSpec((T * C, T * d_attr), lambda i: (0, 0)),
            pl.BlockSpec((1, d_attr), lambda i: (0, 0)),
            pl.BlockSpec((1, d_attr), lambda i: (0, 0)),
        ],
        out_specs=pl.BlockSpec((1, bb, T * d_attr), lambda i: (i, 0, 0)),
        compiler_params=pltpu.CompilerParams(
            dimension_semantics=("parallel",),
            vmem_limit_bytes=32 * 1024 * 1024),
    )(q3, k3, v3, wq_all, wk_all, wv_all, wfold,
      params["ln_gamma"], params["ln_beta"])

    return out.reshape(b_q, n_q, t_q, d_attr)


# ---------------- pure-JAX reference (mirrors the PyTorch module) ----------------

def _reference(q, k, v, params, n_head, d_k, d_v, eps=1e-6):
    b_q, n_q, t_q, d_attr = q.shape
    sz_b, T = b_q * n_q, t_q
    q3 = q.reshape(sz_b, T, d_attr)
    k3 = k.reshape(sz_b, T, d_attr)
    v3 = v.reshape(sz_b, T, d_attr)
    residual = q3
    qh = (q3 @ params["w_qs"]).reshape(sz_b, T, n_head, d_k).transpose(0, 2, 1, 3)
    kh = (k3 @ params["w_ks"]).reshape(sz_b, T, n_head, d_k).transpose(0, 2, 1, 3)
    vh = (v3 @ params["w_vs"]).reshape(sz_b, T, n_head, d_v).transpose(0, 2, 1, 3)
    attn = jnp.einsum('bhqd,bhkd->bhqk', qh / math.sqrt(d_k), kh)
    attn = jax.nn.softmax(attn, axis=-1)
    o = jnp.einsum('bhqk,bhkd->bhqd', attn, vh)
    o = o.transpose(0, 2, 1, 3).reshape(sz_b, T, n_head * d_v)   # transpose(1,2)+view
    o = o.transpose(0, 2, 1).reshape(sz_b, T, -1)                # transpose(1,2)+view (scramble)
    y = o @ params["w_fc"] + residual
    mean = y.mean(-1, keepdims=True)
    var = jnp.square(y - mean).mean(-1, keepdims=True)
    y = (y - mean) / jnp.sqrt(var + eps)
    y = y * params["ln_gamma"] + params["ln_beta"]
    return y.reshape(b_q, n_q, t_q, d_attr)


# ---------------- main ----------------

if __name__ == "__main__":
    jax.config.update("jax_default_matmul_precision", "highest")

    B, N, T, D = 2, 3, 8, 16          # (batch, nodes, seq, d_attribute)
    n_head, d_k, d_v = 2, 8, 8

    key = jax.random.PRNGKey(0)
    keys = jax.random.split(key, 7)
    q = jax.random.normal(keys[0], (B, N, T, D), jnp.float32)
    k = jax.random.normal(keys[1], (B, N, T, D), jnp.float32)
    v = jax.random.normal(keys[2], (B, N, T, D), jnp.float32)

    # Weights stored as (in, out) = transposed nn.Linear.weight; LayerNorm at
    # PyTorch defaults (gamma=1, beta=0).
    params = {
        "w_qs": 0.1 * jax.random.normal(keys[3], (D, n_head * d_k), jnp.float32),
        "w_ks": 0.1 * jax.random.normal(keys[4], (D, n_head * d_k), jnp.float32),
        "w_vs": 0.1 * jax.random.normal(keys[5], (D, n_head * d_v), jnp.float32),
        "w_fc": 0.1 * jax.random.normal(keys[6], (n_head * d_v, D), jnp.float32),
        "ln_gamma": jnp.ones((1, D), jnp.float32),
        "ln_beta": jnp.zeros((1, D), jnp.float32),
    }

    mha = jax.jit(functools.partial(multi_head_attention,
                                    n_head=n_head, d_k=d_k, d_v=d_v))
    out = jax.block_until_ready(mha(q, k, v, params))
    assert out.shape == (B, N, T, D) and out.dtype == jnp.float32

    ref = jax.block_until_ready(_reference(q, k, v, params, n_head, d_k, d_v))
    assert jnp.allclose(out, ref, rtol=2e-3, atol=2e-3), (
        float(jnp.max(jnp.abs(out - ref))))

    print("KERNEL_OK")
</pallas_src>

<mosaic_0001>
module attributes {stable_mosaic.version = 11 : i64} {
  func.func @_fused_mha_kernel(%arg0: i32, %arg1: memref<6x8x16xf32, #tpu.memory_space<vmem>>, %arg2: memref<6x8x16xf32, #tpu.memory_space<vmem>>, %arg3: memref<6x8x16xf32, #tpu.memory_space<vmem>>, %arg4: memref<16x16xf32, #tpu.memory_space<vmem>>, %arg5: memref<16x16xf32, #tpu.memory_space<vmem>>, %arg6: memref<16x16xf32, #tpu.memory_space<vmem>>, %arg7: memref<128x128xf32, #tpu.memory_space<vmem>>, %arg8: memref<1x16xf32, #tpu.memory_space<vmem>>, %arg9: memref<1x16xf32, #tpu.memory_space<vmem>>, %arg10: memref<1x6x128xf32, #tpu.memory_space<vmem>>) attributes {dimension_semantics = [#tpu.dimension_semantics<parallel>], iteration_bounds = array<i64: 1>, scalar_prefetch = 0 : i64, scratch_operands = 0 : i64, tpu.core_type = #tpu.core_type<tc>, window_params = [{transform_indices = @transform_0, window_bounds = array<i64: 6, 8, 16>}, {transform_indices = @transform_1, window_bounds = array<i64: 6, 8, 16>}, {transform_indices = @transform_2, window_bounds = array<i64: 6, 8, 16>}, {pipeline_mode = #tpu.pipeline_mode<synchronous>, transform_indices = @transform_3, window_bounds = array<i64: 16, 16>}, {pipeline_mode = #tpu.pipeline_mode<synchronous>, transform_indices = @transform_4, window_bounds = array<i64: 16, 16>}, {pipeline_mode = #tpu.pipeline_mode<synchronous>, transform_indices = @transform_5, window_bounds = array<i64: 16, 16>}, {pipeline_mode = #tpu.pipeline_mode<synchronous>, transform_indices = @transform_6, window_bounds = array<i64: 128, 128>}, {pipeline_mode = #tpu.pipeline_mode<synchronous>, transform_indices = @transform_7, window_bounds = array<i64: 1, 16>}, {pipeline_mode = #tpu.pipeline_mode<synchronous>, transform_indices = @transform_8, window_bounds = array<i64: 1, 16>}, {transform_indices = @transform_9, window_bounds = array<i64: 1, 6, 128>}]} {
    %c0 = arith.constant 0 : index
    %c0_0 = arith.constant 0 : index
    %c0_1 = arith.constant 0 : index
    %0 = vector.load %arg1[%c0, %c0_0, %c0_1] : memref<6x8x16xf32, #tpu.memory_space<vmem>>, vector<6x8x16xf32>
    %1 = vector.shape_cast %0 : vector<6x8x16xf32> to vector<48x16xf32>
    %c0_2 = arith.constant 0 : index
    %c0_3 = arith.constant 0 : index
    %c0_4 = arith.constant 0 : index
    %2 = vector.load %arg2[%c0_2, %c0_3, %c0_4] : memref<6x8x16xf32, #tpu.memory_space<vmem>>, vector<6x8x16xf32>
    %3 = vector.shape_cast %2 : vector<6x8x16xf32> to vector<48x16xf32>
    %c0_5 = arith.constant 0 : index
    %c0_6 = arith.constant 0 : index
    %c0_7 = arith.constant 0 : index
    %4 = vector.load %arg3[%c0_5, %c0_6, %c0_7] : memref<6x8x16xf32, #tpu.memory_space<vmem>>, vector<6x8x16xf32>
    %5 = vector.shape_cast %4 : vector<6x8x16xf32> to vector<48x16xf32>
    %c0_8 = arith.constant 0 : index
    %c0_9 = arith.constant 0 : index
    %6 = vector.load %arg4[%c0_8, %c0_9] : memref<16x16xf32, #tpu.memory_space<vmem>>, vector<16x16xf32>
    %cst = arith.constant dense<0.000000e+00> : vector<48x16xf32>
    %7 = tpu.matmul %1, %6, %cst {dimension_numbers = #tpu.dot_dimension_numbers<[1], [0], [0], [1], [0, 0, 1, 1], [], []>, precision = #tpu.contract_precision<fp32>} : vector<48x16xf32>, vector<16x16xf32>, vector<48x16xf32> -> vector<48x16xf32>
    %c0_10 = arith.constant 0 : index
    %c0_11 = arith.constant 0 : index
    %8 = vector.load %arg5[%c0_10, %c0_11] : memref<16x16xf32, #tpu.memory_space<vmem>>, vector<16x16xf32>
    %cst_12 = arith.constant dense<0.000000e+00> : vector<48x16xf32>
    %9 = tpu.matmul %3, %8, %cst_12 {dimension_numbers = #tpu.dot_dimension_numbers<[1], [0], [0], [1], [0, 0, 1, 1], [], []>, precision = #tpu.contract_precision<fp32>} : vector<48x16xf32>, vector<16x16xf32>, vector<48x16xf32> -> vector<48x16xf32>
    %c0_13 = arith.constant 0 : index
    %c0_14 = arith.constant 0 : index
    %10 = vector.load %arg6[%c0_13, %c0_14] : memref<16x16xf32, #tpu.memory_space<vmem>>, vector<16x16xf32>
    %cst_15 = arith.constant dense<0.000000e+00> : vector<48x16xf32>
    %11 = tpu.matmul %5, %10, %cst_15 {dimension_numbers = #tpu.dot_dimension_numbers<[1], [0], [0], [1], [0, 0, 1, 1], [], []>, precision = #tpu.contract_precision<fp32>} : vector<48x16xf32>, vector<16x16xf32>, vector<48x16xf32> -> vector<48x16xf32>
    %12 = vector.extract_strided_slice %7 {offsets = [0, 0], sizes = [48, 8], strides = [1, 1]} : vector<48x16xf32> to vector<48x8xf32>
    %13 = vector.shape_cast %12 : vector<48x8xf32> to vector<6x8x8xf32>
    %14 = vector.extract_strided_slice %9 {offsets = [0, 0], sizes = [48, 8], strides = [1, 1]} : vector<48x16xf32> to vector<48x8xf32>
    %15 = vector.shape_cast %14 : vector<48x8xf32> to vector<6x8x8xf32>
    %16 = vector.extract_strided_slice %11 {offsets = [0, 0], sizes = [48, 8], strides = [1, 1]} : vector<48x16xf32> to vector<48x8xf32>
    %17 = vector.shape_cast %16 : vector<48x8xf32> to vector<6x8x8xf32>
    "tpu.trace_start"() <{level = 10 : i32, message = "bqd,bkd->bqk"}> : () -> ()
    %cst_16 = arith.constant dense<0.000000e+00> : vector<6x8x8xf32>
    %18 = tpu.matmul %13, %15, %cst_16 {dimension_numbers = #tpu.dot_dimension_numbers<[2], [2], [1], [1], [0, 0, 0, 1, 1, 1], [0], [0]>, precision = #tpu.contract_precision<fp32>} : vector<6x8x8xf32>, vector<6x8x8xf32>, vector<6x8x8xf32> -> vector<6x8x8xf32>
    "tpu.trace_stop"() : () -> ()
    %cst_17 = arith.constant dense<0xFF800000> : vector<6x8xf32>
    %19 = vector.multi_reduction <maximumf>, %18, %cst_17 [2] : vector<6x8x8xf32> to vector<6x8xf32>
    %20 = vector.shape_cast %19 : vector<6x8xf32> to vector<6x8x1xf32>
    %21 = vector.broadcast %20 : vector<6x8x1xf32> to vector<6x8x8xf32>
    %22 = arith.subf %18, %21 : vector<6x8x8xf32>
    %23 = math.exp %22 : vector<6x8x8xf32>
    %cst_18 = arith.constant dense<0.000000e+00> : vector<6x8xf32>
    %24 = vector.multi_reduction <add>, %23, %cst_18 [2] : vector<6x8x8xf32> to vector<6x8xf32>
    %25 = vector.shape_cast %24 : vector<6x8xf32> to vector<6x8x1xf32>
    %26 = vector.broadcast %25 : vector<6x8x1xf32> to vector<6x8x8xf32>
    %27 = arith.divf %23, %26 : vector<6x8x8xf32>
    "tpu.trace_start"() <{level = 10 : i32, message = "bqk,bkd->bqd"}> : () -> ()
    %cst_19 = arith.constant dense<0.000000e+00> : vector<6x8x8xf32>
    %28 = tpu.matmul %27, %17, %cst_19 {dimension_numbers = #tpu.dot_dimension_numbers<[2], [1], [1], [2], [0, 0, 0, 1, 1, 2], [0], [0]>, precision = #tpu.contract_precision<fp32>} : vector<6x8x8xf32>, vector<6x8x8xf32>, vector<6x8x8xf32> -> vector<6x8x8xf32>
    "tpu.trace_stop"() : () -> ()
    %29 = vector.extract_strided_slice %7 {offsets = [0, 8], sizes = [48, 8], strides = [1, 1]} : vector<48x16xf32> to vector<48x8xf32>
    %30 = vector.shape_cast %29 : vector<48x8xf32> to vector<6x8x8xf32>
    %31 = vector.extract_strided_slice %9 {offsets = [0, 8], sizes = [48, 8], strides = [1, 1]} : vector<48x16xf32> to vector<48x8xf32>
    %32 = vector.shape_cast %31 : vector<48x8xf32> to vector<6x8x8xf32>
    %33 = vector.extract_strided_slice %11 {offsets = [0, 8], sizes = [48, 8], strides = [1, 1]} : vector<48x16xf32> to vector<48x8xf32>
    %34 = vector.shape_cast %33 : vector<48x8xf32> to vector<6x8x8xf32>
    "tpu.trace_start"() <{level = 10 : i32, message = "bqd,bkd->bqk"}> : () -> ()
    %cst_20 = arith.constant dense<0.000000e+00> : vector<6x8x8xf32>
    %35 = tpu.matmul %30, %32, %cst_20 {dimension_numbers = #tpu.dot_dimension_numbers<[2], [2], [1], [1], [0, 0, 0, 1, 1, 1], [0], [0]>, precision = #tpu.contract_precision<fp32>} : vector<6x8x8xf32>, vector<6x8x8xf32>, vector<6x8x8xf32> -> vector<6x8x8xf32>
    "tpu.trace_stop"() : () -> ()
    %cst_21 = arith.constant dense<0xFF800000> : vector<6x8xf32>
    %36 = vector.multi_reduction <maximumf>, %35, %cst_21 [2] : vector<6x8x8xf32> to vector<6x8xf32>
    %37 = vector.shape_cast %36 : vector<6x8xf32> to vector<6x8x1xf32>
    %38 = vector.broadcast %37 : vector<6x8x1xf32> to vector<6x8x8xf32>
    %39 = arith.subf %35, %38 : vector<6x8x8xf32>
    %40 = math.exp %39 : vector<6x8x8xf32>
    %cst_22 = arith.constant dense<0.000000e+00> : vector<6x8xf32>
    %41 = vector.multi_reduction <add>, %40, %cst_22 [2] : vector<6x8x8xf32> to vector<6x8xf32>
    %42 = vector.shape_cast %41 : vector<6x8xf32> to vector<6x8x1xf32>
    %43 = vector.broadcast %42 : vector<6x8x1xf32> to vector<6x8x8xf32>
    %44 = arith.divf %40, %43 : vector<6x8x8xf32>
    "tpu.trace_start"() <{level = 10 : i32, message = "bqk,bkd->bqd"}> : () -> ()
    %cst_23 = arith.constant dense<0.000000e+00> : vector<6x8x8xf32>
    %45 = tpu.matmul %44, %34, %cst_23 {dimension_numbers = #tpu.dot_dimension_numbers<[2], [1], [1], [2], [0, 0, 0, 1, 1, 2], [0], [0]>, precision = #tpu.contract_precision<fp32>} : vector<6x8x8xf32>, vector<6x8x8xf32>, vector<6x8x8xf32> -> vector<6x8x8xf32>
    "tpu.trace_stop"() : () -> ()
    %46 = tpu.concatenate %28, %45 in 2 : vector<6x8x8xf32>, vector<6x8x8xf32> -> vector<6x8x16xf32>
    %47 = vector.shape_cast %46 : vector<6x8x16xf32> to vector<6x128xf32>
    %c0_24 = arith.constant 0 : index
    %c0_25 = arith.constant 0 : index
    %48 = vector.load %arg7[%c0_24, %c0_25] : memref<128x128xf32, #tpu.memory_space<vmem>>, vector<128x128xf32>
    %cst_26 = arith.constant dense<0.000000e+00> : vector<6x128xf32>
    %49 = tpu.matmul %47, %48, %cst_26 {dimension_numbers = #tpu.dot_dimension_numbers<[1], [0], [0], [1], [0, 0, 1, 1], [], []>, precision = #tpu.contract_precision<fp32>} : vector<6x128xf32>, vector<128x128xf32>, vector<6x128xf32> -> vector<6x128xf32>
    %50 = vector.shape_cast %49 : vector<6x128xf32> to vector<6x8x16xf32>
    %51 = arith.addf %50, %0 : vector<6x8x16xf32>
    %cst_27 = arith.constant dense<0.000000e+00> : vector<6x8xf32>
    %52 = vector.multi_reduction <add>, %51, %cst_27 [2] : vector<6x8x16xf32> to vector<6x8xf32>
    %53 = vector.shape_cast %52 : vector<6x8xf32> to vector<6x8x1xf32>
    %cst_28 = arith.constant 1.600000e+01 : f32
    %54 = vector.broadcast %cst_28 : f32 to vector<6x8x1xf32>
    %55 = arith.divf %53, %54 : vector<6x8x1xf32>
    %56 = vector.broadcast %55 : vector<6x8x1xf32> to vector<6x8x16xf32>
    %57 = arith.subf %51, %56 : vector<6x8x16xf32>
    %58 = arith.mulf %57, %57 : vector<6x8x16xf32>
    %cst_29 = arith.constant dense<0.000000e+00> : vector<6x8xf32>
    %59 = vector.multi_reduction <add>, %58, %cst_29 [2] : vector<6x8x16xf32> to vector<6x8xf32>
    %60 = vector.shape_cast %59 : vector<6x8xf32> to vector<6x8x1xf32>
    %cst_30 = arith.constant 1.600000e+01 : f32
    %61 = vector.broadcast %cst_30 : f32 to vector<6x8x1xf32>
    %62 = arith.divf %60, %61 : vector<6x8x1xf32>
    %63 = vector.broadcast %55 : vector<6x8x1xf32> to vector<6x8x16xf32>
    %64 = arith.subf %51, %63 : vector<6x8x16xf32>
    %cst_31 = arith.constant 9.99999997E-7 : f32
    %65 = vector.broadcast %cst_31 : f32 to vector<6x8x1xf32>
    %66 = arith.addf %62, %65 : vector<6x8x1xf32>
    %67 = math.rsqrt %66 : vector<6x8x1xf32>
    %68 = vector.broadcast %67 : vector<6x8x1xf32> to vector<6x8x16xf32>
    %69 = arith.mulf %64, %68 : vector<6x8x16xf32>
    %c0_32 = arith.constant 0 : index
    %c0_33 = arith.constant 0 : index
    %70 = vector.load %arg8[%c0_32, %c0_33] : memref<1x16xf32, #tpu.memory_space<vmem>>, vector<1x16xf32>
    %71 = vector.shape_cast %70 : vector<1x16xf32> to vector<1x1x16xf32>
    %72 = vector.broadcast %71 : vector<1x1x16xf32> to vector<6x8x16xf32>
    %73 = arith.mulf %69, %72 : vector<6x8x16xf32>
    %c0_34 = arith.constant 0 : index
    %c0_35 = arith.constant 0 : index
    %74 = vector.load %arg9[%c0_34, %c0_35] : memref<1x16xf32, #tpu.memory_space<vmem>>, vector<1x16xf32>
    %75 = vector.shape_cast %74 : vector<1x16xf32> to vector<1x1x16xf32>
    %76 = vector.broadcast %75 : vector<1x1x16xf32> to vector<6x8x16xf32>
    %77 = arith.addf %73, %76 : vector<6x8x16xf32>
    %78 = vector.shape_cast %77 : vector<6x8x16xf32> to vector<1x6x128xf32>
    %c0_36 = arith.constant 0 : index
    %c0_37 = arith.constant 0 : index
    %c0_38 = arith.constant 0 : index
    %79 = vector.load %arg10[%c0_36, %c0_37, %c0_38] : memref<1x6x128xf32, #tpu.memory_space<vmem>>, vector<1x6x128xf32>
    tpu.vector_store %arg10[%c0_36, %c0_37, %c0_38], %78 {strides = array<i32>} : memref<1x6x128xf32, #tpu.memory_space<vmem>>, vector<1x6x128xf32>,
    return
  }
  func.func @transform_0(%arg0: i32) -> (i32, i32, i32) {
    %c0_i32 = arith.constant 0 : i32
    %c0_i32_0 = arith.constant 0 : i32
    %c0_i32_1 = arith.constant 0 : i32
    return %arg0, %c0_i32, %c0_i32_0 : i32, i32, i32
  }
  func.func @transform_1(%arg0: i32) -> (i32, i32, i32) {
    %c0_i32 = arith.constant 0 : i32
    %c0_i32_0 = arith.constant 0 : i32
    %c0_i32_1 = arith.constant 0 : i32
    return %arg0, %c0_i32, %c0_i32_0 : i32, i32, i32
  }
  func.func @transform_2(%arg0: i32) -> (i32, i32, i32) {
    %c0_i32 = arith.constant 0 : i32
    %c0_i32_0 = arith.constant 0 : i32
    %c0_i32_1 = arith.constant 0 : i32
    return %arg0, %c0_i32, %c0_i32_0 : i32, i32, i32
  }
  func.func @transform_3(%arg0: i32) -> (i32, i32) {
    %c0_i32 = arith.constant 0 : i32
    %c0_i32_0 = arith.constant 0 : i32
    %c0_i32_1 = arith.constant 0 : i32
    return %c0_i32, %c0_i32_0 : i32, i32
  }
  func.func @transform_4(%arg0: i32) -> (i32, i32) {
    %c0_i32 = arith.constant 0 : i32
    %c0_i32_0 = arith.constant 0 : i32
    %c0_i32_1 = arith.constant 0 : i32
    return %c0_i32, %c0_i32_0 : i32, i32
  }
  func.func @transform_5(%arg0: i32) -> (i32, i32) {
    %c0_i32 = arith.constant 0 : i32
    %c0_i32_0 = arith.constant 0 : i32
    %c0_i32_1 = arith.constant 0 : i32
    return %c0_i32, %c0_i32_0 : i32, i32
  }
  func.func @transform_6(%arg0: i32) -> (i32, i32) {
    %c0_i32 = arith.constant 0 : i32
    %c0_i32_0 = arith.constant 0 : i32
    %c0_i32_1 = arith.constant 0 : i32
    return %c0_i32, %c0_i32_0 : i32, i32
  }
  func.func @transform_7(%arg0: i32) -> (i32, i32) {
    %c0_i32 = arith.constant 0 : i32
    %c0_i32_0 = arith.constant 0 : i32
    %c0_i32_1 = arith.constant 0 : i32
    return %c0_i32, %c0_i32_0 : i32, i32
  }
  func.func @transform_8(%arg0: i32) -> (i32, i32) {
    %c0_i32 = arith.constant 0 : i32
    %c0_i32_0 = arith.constant 0 : i32
    %c0_i32_1 = arith.constant 0 : i32
    return %c0_i32, %c0_i32_0 : i32, i32
  }
  func.func @transform_9(%arg0: i32) -> (i32, i32, i32) {
    %c0_i32 = arith.constant 0 : i32
    %c0_i32_0 = arith.constant 0 : i32
    %c0_i32_1 = arith.constant 0 : i32
    return %arg0, %c0_i32, %c0_i32_0 : i32, i32, i32
  }
}

</mosaic_0001>

<bundles_post_ra>
// kernel: multi_head_attention.1
= control target key start
LH: loop header
LB: loop body
LE: loop exit
PB: predicated region body
PF: predicated region fallthrough
CT: control target
= control target key end

     0   :  { %vm52_vm0 = vcmask 130048   ;;  %vm16739_vm1 = vmmov 0   ;;  %vm2133_vm2 = vcmask 64512   ;;  %s16741_s30 = smov 8   ;;  %s16746_s16 = smov 16   ;;  %vm13307_vm3 = vcmask 261120   ;;  %s18600_s3 = inlined_call_operand.vmem [shape: f32[16,16], index: 3, kind: input, shape index: {}]   ;;  %s18601_s0 = inlined_call_operand.vmem [shape: f32[6,8,16], index: 0, kind: input, shape index: {}]   ;;  %s18602_s4 = inlined_call_operand.vmem [shape: f32[16,16], index: 4, kind: input, shape index: {}]   ;;  %s18603_s1 = inlined_call_operand.vmem [shape: f32[6,8,16], index: 1, kind: input, shape index: {}]   ;;  %s18604_s5 = inlined_call_operand.vmem [shape: f32[16,16], index: 5, kind: input, shape index: {}]   ;;  %s18605_s2 = inlined_call_operand.vmem [shape: f32[6,8,16], index: 2, kind: input, shape index: {}]   ;;  %s18606_s6 = inlined_call_operand.vmem [shape: f32[128,128], index: 6, kind: input, shape index: {}]   ;;  %s18607_s7 = inlined_call_operand.vmem [shape: f32[1,16], index: 7, kind: input, shape index: {}]   ;;  %s18608_s8 = inlined_call_operand.vmem [shape: f32[1,16], index: 8, kind: input, shape index: {}]   ;;  %s18609_s9 = inlined_call_operand.vmem [shape: f32[1,6,128], index: 9, kind: output, shape index: {}]  }
   0x1   :  { %v16805_v0 = vld [vmem:[%s18600_s3] sm:$0xff]  ;;  %v16810_v1 = vld [vmem:[%s18600_s3 + $0x8] sm:$0xff]  ;;  %v34_v13 = vld [vmem:[%s18601_s0 + $0x10] sm:$0xff]  ;;  %s16747_s17 = smov 48   ;;  %s16749_s18 = smov 80   ;;  %vm13309_vm4 = vcmask 392192  }
   0x2   :  { %v32_v2 = vld [vmem:[%s18601_s0] sm:$0xff]  ;;  %v72_v3 = vand.u32 4294901760, %v16805_v0  ;;  %v75_v4 = vand.u32 4294901760, %v16810_v1  ;;  %v33_v6 = vld [vmem:[%s18601_s0 + $0x8] sm:$0xff]  ;;  %v60_v17 = vsel %vm52_vm0, %v34_v13, 0  ;;  %v35_v19 = vld [vmem:[%s18601_s0 + $0x18] sm:$0xff] }
   0x3   :  { %v54_v5 = vsel %vm52_vm0, %v32_v2, 0  ;;  %v16824_v7 = vld [vmem:[%s18602_s4] sm:$0xff]  ;;  %v16829_v8 = vld [vmem:[%s18602_s4 + $0x8] sm:$0xff]  ;;  %v57_v10 = vsel %vm52_vm0, %v33_v6, 0  ;;  %v16871_v24 = vand.u32 4294901760, %v60_v17  ;;  %v63_v27 = vsel %vm52_vm0, %v35_v19, 0 }
   0x4   :  { %v16831_v9 = vand.u32 4294901760, %v54_v5  ;;  %v766_v11 = vand.u32 4294901760, %v16824_v7  ;;  %v769_v12 = vand.u32 4294901760, %v16829_v8  ;;  %v42_v14 = vld [vmem:[%s18603_s1 + $0x20] sm:$0xff]  ;;  %v16844_v15 = vpack.c.bf16 %v75_v4, %v72_v3  ;;  %v43_v20 = vld [vmem:[%s18603_s1 + $0x28] sm:$0xff]  ;;  %v40_v57 = vld [vmem:[%s18603_s1 + $0x10] sm:$0xff] }
   0x5   :  { %v16846_v16 = vand.u32 4294901760, %v57_v10  ;;  %v16850_v18 = vsel %vm52_vm0, %v42_v14, 0  ;;  %v16882_v28 = vsel %vm52_vm0, %v43_v20, 0  ;;  %v16889_v32 = vsub.f32 %v60_v17, %v16871_v24  ;;  %v36_v33 = vld [vmem:[%s18601_s0 + $0x20] sm:$0xff]  ;;  %v37_v47 = vld [vmem:[%s18601_s0 + $0x28] sm:$0xff]  ;;  %v41_v6 = vld [vmem:[%s18603_s1 + $0x18] sm:$0xff] }
   0x6   :  { %v16859_v21 = vsub.f32 %v54_v5, %v16831_v9  ;;  %v16864_v22 = vsub.f32 %v16824_v7, %v766_v11  ;;  %v16869_v23 = vsub.f32 %v16829_v8, %v769_v12  ;;  %16102 = vmatprep.subr.bf16.mxu0 %v16844_v15  ;;  %v16878_v26 = vand.u32 4294901760, %v16850_v18  ;;  %v38_v34 = vld [vmem:[%s18603_s1] sm:$0xff]  ;;  %v39_v56 = vld [vmem:[%s18603_s1 + $0x8] sm:$0xff]  ;;  %s16748_s1 = smov 64   ;;  %s16750_s3 = smov 96  }
   0x7   :  { %v16875_v25 = vsub.f32 %v57_v10, %v16846_v16  ;;  %16104 = vmatpush3.bf16.msra.mxu0 %v16844_v15  ;;  %v16899_v36 = vand.u32 4294901760, %v63_v27  ;;  %v16902_v37 = vand.u32 4294901760, %v16882_v28  ;;  %v160_v42 = vand.u32 4294901760, %v16889_v32  ;;  %s16751_s19 = smov 112  }
   0x8   :  { %v140_v29 = vand.u32 4294901760, %v16859_v21  ;;  %v895_v30 = vand.u32 4294901760, %v16864_v22  ;;  %v902_v31 = vand.u32 4294901760, %v16869_v23  ;;  %15038 = vmatprep.mubr.f32.mxu1 %v16878_v26  ;;  %v16133_v38 = vpack.c.bf16 %v16869_v23, %v16864_v22 }
   0x9   :  { %v150_v35 = vand.u32 4294901760, %v16875_v25  ;;  %v16920_v44 = vsub.f32 %v63_v27, %v16899_v36  ;;  %v66_v45 = vsel %vm52_vm0, %v36_v33, 0  ;;  %v748_v46 = vsel %vm52_vm0, %v38_v34, 0 }
   0xa   :  { %v141_v39 = vsub.f32 %v16859_v21, %v140_v29  ;;  %v896_v40 = vsub.f32 %v16864_v22, %v895_v30  ;;  %v903_v41 = vsub.f32 %v16869_v23, %v902_v31  ;;  %v161_v51 = vsub.f32 %v16889_v32, %v160_v42 }
   0xb   :  { %v151_v43 = vsub.f32 %v16875_v25, %v150_v35  ;;  %v170_v53 = vand.u32 4294901760, %v16920_v44  ;;  %v16931_v54 = vand.u32 4294901760, %v66_v45  ;;  %v16933_v55 = vand.u32 4294901760, %v748_v46 }
   0xc   :  { %v142_v48 = vand.u32 4294901760, %v141_v39  ;;  %v897_v49 = vand.u32 4294901760, %v896_v40  ;;  %v904_v50 = vand.u32 4294901760, %v903_v41  ;;  %v162_v59 = vand.u32 4294901760, %v161_v51 }
   0xd   :  { %v152_v52 = vand.u32 4294901760, %v151_v43  ;;  %v69_v60 = vsel %vm52_vm0, %v37_v47, 0  ;;  %v16945_v61 = vsub.f32 %v16805_v0, %v72_v3  ;;  %v171_v62 = vsub.f32 %v16920_v44, %v170_v53 }
   0xe   :  { %14941 = vmatprep.mubr.f32.mxu0 %v142_v48  ;;  %v16941_v58 = vpack.c.bf16 %v904_v50, %v897_v49  ;;  %v16951_v63 = vsub.f32 %v66_v45, %v16931_v54  ;;  %v16954_v2 = vsub.f32 %v748_v46, %v16933_v55  ;;  %v16956_v5 = vand.u32 4294901760, %v69_v60 }
   0xf   :  { %14942 = vmatmul.mubr.f32.vlgmr.msra.gmra.mrb[0].mxu0 %v152_v52  ;;  %v201_v0 = vand.u32 4294901760, %v16945_v61  ;;  %v16966_v3 = vsub.f32 %v16810_v1, %v75_v4  ;;  %v751_v10 = vsel %vm52_vm0, %v39_v56, 0  ;;  %v754_v13 = vsel %vm52_vm0, %v40_v57, 0 }
  0x10   :  { %16317 = vmatprep.subr.bf16.mxu1 %v16941_v58  ;;  %14944 = vmatprep.mubr.f32.mxu0 %v162_v59  ;;  %v172_v14 = vand.u32 4294901760, %v171_v62  ;;  %v180_v17 = vand.u32 4294901760, %v16951_v63  ;;  %v16973_v19 = vsub.f32 %v69_v60, %v16956_v5  ;;  %v16975_v20 = vand.u32 4294901760, %v751_v10 }
  0x11   :  { %16318 = vmatpush3.bf16.msra.mxu1 %v16941_v58  ;;  %v202_v1 = vsub.f32 %v16945_v61, %v201_v0  ;;  %v208_v4 = vand.u32 4294901760, %v16966_v3  ;;  %v16981_v27 = vand.u32 4294901760, %v754_v13  ;;  %v757_v33 = vsel %vm52_vm0, %v41_v6, 0 }
  0x12   :  { %16134 = vmatprep.subr.bf16.mxu1 %v16133_v38  ;;  %v181_v34 = vsub.f32 %v16951_v63, %v180_v17  ;;  %v190_v39 = vand.u32 4294901760, %v16973_v19  ;;  %v16991_v43 = vsub.f32 %v751_v10, %v16975_v20  ;;  %v16993_v45 = vand.u32 4294901760, %v757_v33 }
  0x13   :  { %14945 = vmatmul.mubr.f32.gmra.mrb[2].mxu0 %v172_v14  ;;  %v203_v40 = vand.u32 4294901760, %v202_v1  ;;  %v209_v41 = vsub.f32 %v16966_v3, %v208_v4  ;;  %v17000_v48 = vsub.f32 %v754_v13, %v16981_v27  ;;  %v17006_v50 = vpack.c.bf16 %v769_v12, %v766_v11 }
  0x14   :  { %15039 = vmatmul.mubr.f32.vlgmr.msra.gmra.mrb[0].mxu1 %v16902_v37  ;;  %v182_v46 = vand.u32 4294901760, %v181_v34  ;;  %v191_v47 = vsub.f32 %v16973_v19, %v190_v39  ;;  %v17010_v52 = vsub.f32 %v757_v33, %v16993_v45  ;;  %v16109_v56 = vpack.c.bf16 %v16966_v3, %v16945_v61  ;;  %v49_v33 = vld [vmem:[%s18605_s2 + $0x28] sm:$0xff] }
  0x15   :  { %16136 = vmatpush3.bf16.msra.mxu1 %v16133_v38  ;;  %15045 = vmatprep.mubr.f32.mxu1 %v16954_v2  ;;  %v210_v49 = vand.u32 4294901760, %v209_v41  ;;  %v17018_v7 = vsub.f32 %v16850_v18, %v16878_v26  ;;  %v16141_v8 = vpack.c.bf16 %v902_v31, %v895_v30  ;;  %v17029_v11 = vsub.f32 %v16882_v28, %v16902_v37 }
  0x16   :  { %14947 = vmatprep.mubr.f32.mxu0 %v182_v46  ;;  %v192_v51 = vand.u32 4294901760, %v191_v47  ;;  %16138 = vmatprep.subr.bf16.mxu1 %v17006_v50  ;;  %v834_v12 = vand.u32 4294901760, %v16954_v2  ;;  %v844_v18 = vand.u32 4294901760, %v16991_v43  ;;  %v854_v22 = vand.u32 4294901760, %v17000_v48 }
  0x17   :  { %v16105_v38 = vpack.c.bf16 %v210_v49, %v203_v40  ;;  %v864_v23 = vand.u32 4294901760, %v17010_v52  ;;  %v874_v28 = vand.u32 4294901760, %v17018_v7  ;;  %v884_v30 = vand.u32 4294901760, %v17029_v11 }
  0x18   :  { %15046 = vmatmul.mubr.f32.vlgmr.msra.gmra.mrb[2].mxu1 %v16991_v43  ;;  %14948 = vmatmul.mubr.f32.gmra.mrb[4].mxu0 %v192_v51  ;;  %v16117_v31 = vpack.c.bf16 %v208_v4, %v201_v0  ;;  %v48_v0 = vld [vmem:[%s18605_s2 + $0x20] sm:$0xff]  ;;  %vm13311_vm5 = vcmask 523264   ;;  %vm13313_vm6 = vcmask 654336   ;;  %vm13315_vm7 = vcmask 785408  }
  0x19   :  { %15048 = vmatprep.mubr.f32.mxu1 %v17000_v48  ;;  %16106 = vmatprep.subr.bf16.mxu0 %v16105_v38  ;;  %v875_v59 = vsub.f32 %v17018_v7, %v874_v28  ;;  %v885_v10 = vsub.f32 %v17029_v11, %v884_v30  ;;  %v1454_v4 = vsel %vm52_vm0, %v48_v0, 0  ;;  %vm13317_vm8 = vcmask 916480  }
  0x1a   :  { %14954 = vmatprep.mubr.f32.mxu0 %v16831_v9  ;;  %16108 = vmatpush3.bf16.msra.mxu0 %v16105_v38  ;;  %v17188_v47 = vand.u32 4294901760, %v1454_v4 }
  0x1b   :  { %16140 = vmatpush3.bf16.msra.mxu1 %v17006_v50  ;;  %16110 = vmatprep.subr.bf16.mxu0 %v16109_v56  ;;  %v876_v14 = vand.u32 4294901760, %v875_v59 }
  0x1c   :  { %15049 = vmatmul.mubr.f32.gmra.mrb[4].mxu1 %v17010_v52  ;;  %16142 = vmatprep.subr.bf16.mxu1 %v16141_v8 }
  0x1d   :  { %15051 = vmatprep.mubr.f32.mxu1 %v17018_v7  ;;  %14955 = vmatmul.mubr.f32.vlgmr.msra.gmra.mrb[0].mxu0 %v16846_v16 }
  0x1e   :  { %14957 = vmatprep.mubr.f32.mxu0 %v16871_v24  ;;  %16112 = vmatpush3.bf16.msra.mxu0 %v16109_v56 }
  0x1f   :  { %16114 = vmatprep.subr.bf16.mxu0 %v16844_v15 }
  0x20   :  { %15052 = vmatmul.mubr.f32.gmra.mrb[0].mxu1 %v17029_v11 }
  0x21   :  { %15058 = vmatprep.mubr.f32.mxu1 %v834_v12  ;;  %14958 = vmatmul.mubr.f32.gmra.mrb[2].mxu0 %v16899_v36 }
  0x22   :  { %14960 = vmatprep.mubr.f32.mxu0 %v16931_v54 }
  0x24   :  { %15059 = vmatmul.mubr.f32.vlgmr.msra.gmra.mrb[2].mxu1 %v844_v18 }
  0x25   :  { %15061 = vmatprep.mubr.f32.mxu1 %v854_v22  ;;  %16144 = vmatpush3.bf16.msra.mxu1 %v16141_v8  ;;  %v1567_v8 = vsub.f32 %v1454_v4, %v17188_v47 }
  0x26   :  { %14961 = vmatmul.mubr.f32.gmra.mrb[4].mxu0 %v16956_v5  ;;  %16146 = vmatprep.subr.bf16.mxu1 %v17006_v50 }
  0x27   :  { %14967 = vmatprep.mubr.f32.mxu0 %v16859_v21  ;;  %v1439_v21 = vld [vmem:[%s18604_s5] sm:$0xff] }
  0x28   :  { %15062 = vmatmul.mubr.f32.gmra.mrb[4].mxu1 %v864_v23 }
  0x29   :  { %15064 = vmatprep.mubr.f32.mxu1 %v874_v28 }
  0x2a   :  { %14968 = vmatmul.mubr.f32.vlgmr.msra.gmra.mrb[0].mxu0 %v16875_v25  ;;  %v1440_v25 = vld [vmem:[%s18604_s5 + $0x8] sm:$0xff] }
  0x2b   :  { %14970 = vmatprep.mubr.f32.mxu0 %v16889_v32  ;;  %16116 = vmatpush3.bf16.msra.mxu0 %v16844_v15  ;;  %v855_v32 = vsub.f32 %v17000_v48, %v854_v22  ;;  %v1457_v48 = vsel %vm52_vm0, %v49_v33, 0 }
  0x2c   :  { %15065 = vmatmul.mubr.f32.gmra.mrb[0].mxu1 %v884_v30  ;;  %16118 = vmatprep.subr.bf16.mxu0 %v16117_v31 }
  0x2d   :  { %15071 = vmatprep.mubr.f32.mxu1 %v16933_v55  ;;  %v856_v57 = vand.u32 4294901760, %v855_v32 }
  0x2e   :  { %14971 = vmatmul.mubr.f32.gmra.mrb[2].mxu0 %v16920_v44 }
  0x2f   :  { %14973 = vmatprep.mubr.f32.mxu0 %v16951_v63 }
  0x30   :  { %15072 = vmatmul.mubr.f32.vlgmr.msra.gmra.mrb[2].mxu1 %v16975_v20 }
  0x31   :  { %15074 = vmatprep.mubr.f32.mxu1 %v16981_v27  ;;  %16148 = vmatpush3.bf16.msra.mxu1 %v17006_v50 }
  0x32   :  { %14974 = vmatmul.mubr.f32.gmra.mrb[4].mxu0 %v16973_v19 }
  0x33   :  { %14980 = vmatprep.mubr.f32.mxu0 %v140_v29 }
  0x34   :  { %15075 = vmatmul.mubr.f32.gmra.mrb[4].mxu1 %v16993_v45 }
  0x35   :  { %15077 = vmatprep.mubr.f32.mxu1 %v16878_v26 }
  0x36   :  { %14981 = vmatmul.mubr.f32.vlgmr.msra.gmra.mrb[0].mxu0 %v150_v35 }
  0x37   :  { %14983 = vmatprep.mubr.f32.mxu0 %v160_v42  ;;  %16120 = vmatpush3.bf16.msra.mxu0 %v16117_v31 }
  0x38   :  { %15078 = vmatmul.mubr.f32.gmra.mrb[0].mxu1 %v16902_v37  ;;  %16122 = vmatprep.subr.bf16.mxu0 %v16844_v15 }
  0x39   :  { %15084 = vmatprep.mubr.f32.mxu1 %v16933_v55 }
  0x3a   :  { %14984 = vmatmul.mubr.f32.gmra.mrb[2].mxu0 %v170_v53 }
  0x3b   :  { %14986 = vmatprep.mubr.f32.mxu0 %v180_v17 }
  0x3c   :  { %15085 = vmatmul.mubr.f32.vlgmr.msra.gmra.mrb[2].mxu1 %v16975_v20 }
  0x3d   :  { %15087 = vmatprep.mubr.f32.mxu1 %v16981_v27 }
  0x3e   :  { %14987 = vmatmul.mubr.f32.gmra.mrb[4].mxu0 %v190_v39  ;;  %v886_v39 = vand.u32 4294901760, %v885_v10 }
  0x3f   :  { %14993 = vmatprep.mubr.f32.mxu0 %v16831_v9 }
  0x40   :  { %15088 = vmatmul.mubr.f32.gmra.mrb[4].mxu1 %v16993_v45 }
  0x41   :  { %15090 = vmatprep.mubr.f32.mxu1 %v16878_v26  ;;  %v1463_v26 = vand.u32 4294901760, %v1440_v25 }
  0x42   :  { %14994 = vmatmul.mubr.f32.vlgmr.msra.gmra.mrb[0].mxu0 %v16846_v16 }
  0x43   :  { %14996 = vmatprep.mubr.f32.mxu0 %v16871_v24  ;;  %16124 = vmatpush3.bf16.msra.mxu0 %v16844_v15  ;;  %v835_v15 = vsub.f32 %v16954_v2, %v834_v12  ;;  %v17132_v44 = vsub.f32 %v1440_v25, %v1463_v26  ;;  %v47_v2 = vld [vmem:[%s18605_s2 + $0x18] sm:$0xff] }
  0x44   :  { %15091 = vmatmul.mubr.f32.gmra.mrb[0].mxu1 %v16902_v37  ;;  %16126 = vmatprep.subr.bf16.mxu0 %v17006_v50  ;;  %v45_v37 = vld [vmem:[%s18605_s2 + $0x8] sm:$0xff]  ;;  %v1451_v1 = vsel %vm52_vm0, %v47_v2, 0 }
  0x45   :  { %v836_v29 = vand.u32 4294901760, %v835_v15  ;;  %v1445_v61 = vsel %vm52_vm0, %v45_v37, 0  ;;  %v1596_v6 = vand.u32 4294901760, %v17132_v44  ;;  %v17184_v41 = vand.u32 4294901760, %v1451_v1 }
  0x46   :  { %14997 = vmatmul.mubr.f32.gmra.mrb[2].mxu0 %v16899_v36  ;;  %v17161_v13 = vand.u32 4294901760, %v1445_v61 }
  0x47   :  { %14999 = vmatprep.mubr.f32.mxu0 %v16931_v54  ;;  %v1557_v38 = vsub.f32 %v1451_v1, %v17184_v41 }
  0x48   :  { %v17182_v40 = vsub.f32 %v1445_v61, %v17161_v13 }
  0x4a   :  { %15000 = vmatmul.mubr.f32.gmra.mrb[4].mxu0 %v16956_v5  ;;  %v1538_v51 = vand.u32 4294901760, %v17182_v40 }
  0x4b   :  { %15006 = vmatprep.mubr.f32.mxu0 %v16831_v9  ;;  %v44_v9 = vld [vmem:[%s18605_s2] sm:$0xff] }
  0x4c   :  { %v1442_v35 = vsel %vm52_vm0, %v44_v9, 0  ;;  %v1539_v12 = vsub.f32 %v17182_v40, %v1538_v51 }
  0x4d   :  { %v17144_v60 = vand.u32 4294901760, %v1442_v35 }
  0x4e   :  { %15007 = vmatmul.mubr.f32.vlgmr.msra.gmra.mrb[0].mxu0 %v16846_v16  ;;  %v845_v16 = vsub.f32 %v16991_v43, %v844_v18  ;;  %v1558_v18 = vand.u32 4294901760, %v1557_v38  ;;  %v1540_v30 = vand.u32 4294901760, %v1539_v12 }
  0x4f   :  { %15009 = vmatprep.mubr.f32.mxu0 %v16871_v24  ;;  %16128 = vmatpush3.bf16.msra.mxu0 %v17006_v50  ;;  %v1460_v24 = vand.u32 4294901760, %v1439_v21  ;;  %v17165_v17 = vsub.f32 %v1442_v35, %v17144_v60 }
  0x50   :  { %16130 = vmatprep.subr.bf16.mxu0 %v16941_v58  ;;  %v846_v53 = vand.u32 4294901760, %v845_v16  ;;  %v1559_v31 = vsub.f32 %v1557_v38, %v1558_v18 }
  0x51   :  { %v17130_v42 = vsub.f32 %v1439_v21, %v1460_v24  ;;  %v17147_v62 = vpack.c.bf16 %v1463_v26, %v1460_v24  ;;  %v1528_v43 = vand.u32 4294901760, %v17165_v17  ;;  %v16738_v26 = vmov 0.0  }
  0x52   :  { %15010 = vmatmul.mubr.f32.gmra.mrb[2].mxu0 %v16899_v36  ;;  %v46_v36 = vld [vmem:[%s18605_s2 + $0x10] sm:$0xff]  ;;  %v1560_v9 = vand.u32 4294901760, %v1559_v31  ;;  %15171 = vmatprep.subr.mxu1 %v16738_v26  ;;  %s16740_s2 = smov 120  }
  0x53   :  { %15012 = vmatprep.mubr.f32.mxu0 %v16931_v54  ;;  %v865_v54 = vsub.f32 %v17010_v52, %v864_v23  ;;  %v1448_v63 = vsel %vm52_vm0, %v46_v36, 0  ;;  %v17193_v52 = vand.u32 4294901760, %v1457_v48  ;;  %v1529_v56 = vsub.f32 %v17165_v17, %v1528_v43  ;;  %15173 = vmatprep.mubr.msk.f32.mxu1 %vm16739_vm1, %v16738_v26 }
  0x54   :  { %v17167_v19 = vand.u32 4294901760, %v1448_v63  ;;  %v16157_v25 = vpack.c.bf16 %v17132_v44, %v17130_v42 }
  0x55   :  { %v866_v3 = vand.u32 4294901760, %v865_v54  ;;  %v1577_v22 = vsub.f32 %v1457_v48, %v17193_v52  ;;  %v1530_v23 = vand.u32 4294901760, %v1529_v56 }
  0x56   :  { %15013 = vmatmul.mubr.f32.gmra.mrb[4].mxu0 %v16956_v5  ;;  %v1589_v5 = vand.u32 4294901760, %v17130_v42  ;;  %v1547_v46 = vsub.f32 %v1448_v63, %v17167_v19 }
  0x57   :  { %15019 = vmatprep.mubr.f32.mxu0 %v836_v29  ;;  %v1578_v15 = vand.u32 4294901760, %v1577_v22 }
  0x58   :  { %v1590_v34 = vsub.f32 %v17130_v42, %v1589_v5  ;;  %v1548_v7 = vand.u32 4294901760, %v1547_v46 }
  0x5a   :  { %15020 = vmatmul.mubr.f32.vlgmr.msra.gmra.mrb[6].mxu0 %v846_v53  ;;  %v1591_v49 = vand.u32 4294901760, %v1590_v34  ;;  %v1549_v28 = vsub.f32 %v1547_v46, %v1548_v7 }
  0x5b   :  { %15022 = vmatprep.mubr.f32.mxu0 %v856_v57  ;;  %16132 = vmatpush3.bf16.msra.mxu0 %v16941_v58  ;;  %v1597_v58 = vsub.f32 %v17132_v44, %v1596_v6 }
  0x5c   :  { %16150 = vmatprep.subr.bf16.mxu0 %v17147_v62 }
  0x5d   :  { %v1598_v50 = vand.u32 4294901760, %v1597_v58 }
  0x5e   :  { %15023 = vmatmul.mubr.f32.gmra.mrb[8].mxu0 %v866_v3 }
  0x5f   :  { %15025 = vmatprep.mubr.f32.mxu0 %v876_v14  ;;  %v16153_v11 = vpack.c.bf16 %v1598_v50, %v1591_v49 }
  0x62   :  { %15026 = vmatmul.mubr.f32.gmra.mrb[10].mxu0 %v886_v39 }
  0x63   :  { %15032 = vmatprep.mubr.f32.mxu0 %v16933_v55  ;;  %v1568_v55 = vand.u32 4294901760, %v1567_v8 }
  0x65   :  { %v1569_v21 = vsub.f32 %v1567_v8, %v1568_v55 }
  0x66   :  { %15033 = vmatmul.mubr.f32.vlgmr.msra.gmra.mrb[6].mxu0 %v16975_v20  ;;  %v1550_v20 = vand.u32 4294901760, %v1549_v28 }
  0x67   :  { %15035 = vmatprep.mubr.f32.mxu0 %v16981_v27  ;;  %16152 = vmatpush3.bf16.msra.mxu0 %v17147_v62  ;;  %v1579_v27 = vsub.f32 %v1577_v22, %v1578_v15  ;;  %v1570_v16 = vand.u32 4294901760, %v1569_v21 }
  0x68   :  { %16154 = vmatprep.subr.bf16.mxu0 %v16153_v11 }
  0x69   :  { %v1580_v24 = vand.u32 4294901760, %v1579_v27 }
  0x6a   :  { %15036 = vmatmul.mubr.f32.gmra.mrb[8].mxu0 %v16993_v45  ;;  %v16165_v45 = vpack.c.bf16 %v1596_v6, %v1589_v5 }
  0x6b   :  { %15097 = vmatprep.mubr.f32.mxu0 %v1530_v23 }
  0x6e   :  { %15098 = vmatmul.mubr.f32.vlgmr.msra.gmra.mrb[12].mxu0 %v1540_v30 }
  0x6f   :  { %15100 = vmatprep.mubr.f32.mxu0 %v1550_v20  ;;  %16156 = vmatpush3.bf16.msra.mxu0 %v16153_v11 }
  0x70   :  { %16158 = vmatprep.subr.bf16.mxu0 %v16157_v25 }
  0x72   :  { %15101 = vmatmul.mubr.f32.gmra.mrb[14].mxu0 %v1560_v9 }
  0x73   :  { %15103 = vmatprep.mubr.f32.mxu0 %v1570_v16 }
  0x76   :  { %15104 = vmatmul.mubr.f32.gmra.mrb[16].mxu0 %v1580_v24 }
  0x77   :  { %15110 = vmatprep.mubr.f32.mxu0 %v17144_v60 }
  0x7a   :  { %15111 = vmatmul.mubr.f32.vlgmr.msra.gmra.mrb[12].mxu0 %v17161_v13 }
  0x7b   :  { %15113 = vmatprep.mubr.f32.mxu0 %v17167_v19  ;;  %16160 = vmatpush3.bf16.msra.mxu0 %v16157_v25 }
  0x7c   :  { %16162 = vmatprep.subr.bf16.mxu0 %v17147_v62 }
  0x7e   :  { %15114 = vmatmul.mubr.f32.gmra.mrb[14].mxu0 %v17184_v41 }
  0x7f   :  { %15116 = vmatprep.mubr.f32.mxu0 %v17188_v47 }
  0x82   :  { %15117 = vmatmul.mubr.f32.gmra.mrb[16].mxu0 %v17193_v52 }
  0x83   :  { %15123 = vmatprep.mubr.f32.mxu0 %v17165_v17 }
  0x86   :  { %15124 = vmatmul.mubr.f32.vlgmr.msra.gmra.mrb[12].mxu0 %v17182_v40 }
  0x87   :  { %15126 = vmatprep.mubr.f32.mxu0 %v1547_v46  ;;  %16164 = vmatpush3.bf16.msra.mxu0 %v17147_v62 }
  0x88   :  { %16166 = vmatprep.subr.bf16.mxu0 %v16165_v45 }
  0x8a   :  { %15127 = vmatmul.mubr.f32.gmra.mrb[14].mxu0 %v1557_v38 }
  0x8b   :  { %15129 = vmatprep.mubr.f32.mxu0 %v1567_v8 }
  0x8e   :  { %15130 = vmatmul.mubr.f32.gmra.mrb[16].mxu0 %v1577_v22 }
  0x8f   :  { %15136 = vmatprep.mubr.f32.mxu0 %v1528_v43 }
  0x92   :  { %15137 = vmatmul.mubr.f32.vlgmr.msra.gmra.mrb[12].mxu0 %v1538_v51 }
  0x93   :  { %15139 = vmatprep.mubr.f32.mxu0 %v1548_v7  ;;  %16168 = vmatpush3.bf16.msra.mxu0 %v16165_v45 }
  0x94   :  { %16170 = vmatprep.subr.bf16.mxu0 %v17147_v62 }
  0x96   :  { %15140 = vmatmul.mubr.f32.gmra.mrb[14].mxu0 %v1558_v18 }
  0x97   :  { %15142 = vmatprep.mubr.f32.mxu0 %v1568_v55 }
  0x9a   :  { %15143 = vmatmul.mubr.f32.gmra.mrb[16].mxu0 %v1578_v15 }
  0x9b   :  { %15149 = vmatprep.mubr.f32.mxu0 %v17144_v60 }
  0x9e   :  { %15150 = vmatmul.mubr.f32.vlgmr.msra.gmra.mrb[12].mxu0 %v17161_v13 }
  0x9f   :  { %15152 = vmatprep.mubr.f32.mxu0 %v17167_v19  ;;  %16172 = vmatpush3.bf16.msra.mxu0 %v17147_v62 }
  0xa0   :  { %15261 = vmatprep.subr.mxu0 %v16738_v26 }
  0xa2   :  { %15153 = vmatmul.mubr.f32.gmra.mrb[14].mxu0 %v17184_v41 }
  0xa3   :  { %15155 = vmatprep.mubr.f32.mxu0 %v17188_v47 }
  0xa6   :  { %15156 = vmatmul.mubr.f32.gmra.mrb[16].mxu0 %v17193_v52 }
  0xa7   :  { %15162 = vmatprep.mubr.f32.mxu0 %v17144_v60 }
  0xaa   :  { %15163 = vmatmul.mubr.f32.vlgmr.msra.gmra.mrb[12].mxu0 %v17161_v13 }
  0xab   :  { %15165 = vmatprep.mubr.f32.mxu0 %v17167_v19 }
  0xae   :  { %15166 = vmatmul.mubr.f32.gmra.mrb[14].mxu0 %v17184_v41 }
  0xaf   :  { %15168 = vmatprep.mubr.f32.mxu0 %v17188_v47 }
  0xb2   :  { %15169 = vmatmul.mubr.f32.gmra.mrb[16].mxu0 %v17193_v52 }
  0xb3   :  { %15263 = vmatprep.mubr.msk.f32.mxu0 %vm16739_vm1, %v16738_v26 }
 0x10f   :  { %v15086_v29 = vpop.f32.mrb[2].mxu1 }
 0x110   :  { %v1405_v32 = vpop.f32.mrb[3].mxu1 }
 0x113   :  { %v15089_v35 = vpop.f32.mrb[4].mxu1 }
 0x114   :  { %v1417_v37 = vpop.f32.mrb[5].mxu1 }
 0x117   :  { %v15092_v42 = vpop.f32.mrb[0].mxu1 }
 0x118   :  { %v1429_v44 = vpop.f32.mrb[1].mxu1 }
 0x121   :  { %v17240_v36 = vpop.f32.mrb[0].mxu0 }
 0x122   :  { %v17242_v53 = vpop.f32.mrb[1].mxu0  ;;  %v2587_v22 = vsel %vm2133_vm2, %v17240_v36, 0 }
 0x123   :  { %v2135_v61 = vsel %vm2133_vm2, %v17242_v53, 0  ;;  %v17316_v28 = vand.u32 4294901760, %v2587_v22 }
 0x124   :  { %v17254_v62 = vand.u32 4294901760, %v2135_v61 }
 0x125   :  { %v17244_v54 = vpop.f32.mrb[2].mxu0  ;;  %v2659_v20 = vsub.f32 %v2587_v22, %v17316_v28 }
 0x126   :  { %v17246_v57 = vpop.f32.mrb[3].mxu0  ;;  %v3491_v63 = vsel %vm2133_vm2, %v17244_v54, 0  ;;  %v2207_v5 = vsub.f32 %v2135_v61, %v17254_v62 }
 0x127   :  { %v17258_v2 = vand.u32 4294901760, %v3491_v63  ;;  %v2660_v27 = vand.u32 4294901760, %v2659_v20 }
 0x128   :  { %v2208_v14 = vand.u32 4294901760, %v2207_v5 }
 0x129   :  { %v17248_v59 = vpop.f32.mrb[4].mxu0  ;;  %v17266_v13 = vsub.f32 %v3491_v63, %v17258_v2 }
 0x12a   :  { %v17250_v60 = vpop.f32.mrb[5].mxu0  ;;  %v2209_v34 = vsub.f32 %v2207_v5, %v2208_v14  ;;  %v4395_v55 = vsel %vm2133_vm2, %v17248_v59, 0 }
 0x12b   :  { %v3564_v33 = vand.u32 4294901760, %v17266_v13  ;;  %v17327_v15 = vand.u32 4294901760, %v4395_v55 }
 0x12c   :  { %v2210_v50 = vand.u32 4294901760, %v2209_v34 }
 0x12d   :  { %v3565_v47 = vsub.f32 %v17266_v13, %v3564_v33  ;;  %v4467_v9 = vsub.f32 %v4395_v55, %v17327_v15 }
 0x12f   :  { %v3566_v56 = vand.u32 4294901760, %v3565_v47  ;;  %v4468_v45 = vand.u32 4294901760, %v4467_v9 }
 0x135   :  { %v15027_v6 = vpop.f32.mrb[10].mxu0 }
 0x136   :  { %v17261_v0 = vadd.f32 %v15092_v42, %v15027_v6  ;;  %v878_v3 = vpop.f32.mrb[11].mxu0 }
 0x137   :  { %v17263_v10 = vadd.f32 %v1429_v44, %v878_v3 }
 0x138   :  { %v4398_v30 = vsel %vm2133_vm2, %v17261_v0, 0 }
 0x139   :  { %v15034_v17 = vpop.f32.mrb[6].mxu0  ;;  %v17331_v21 = vand.u32 4294901760, %v4398_v30 }
 0x13a   :  { %v17268_v19 = vadd.f32 %v15086_v29, %v15034_v17  ;;  %v969_v1 = vpop.f32.mrb[7].mxu0  ;;  %v2661_v29 = vsub.f32 %v2659_v20, %v2660_v27 }
 0x13b   :  { %v17270_v4 = vadd.f32 %v1405_v32, %v969_v1  ;;  %v4478_v16 = vsub.f32 %v4398_v30, %v17331_v21 }
 0x13c   :  { %v2590_v23 = vsel %vm2133_vm2, %v17268_v19, 0  ;;  %v2662_v42 = vand.u32 4294901760, %v2661_v29 }
 0x13d   :  { %v2138_v58 = vsel %vm2133_vm2, %v17270_v4, 0  ;;  %v15037_v39 = vpop.f32.mrb[8].mxu0  ;;  %v17323_v31 = vand.u32 4294901760, %v2590_v23  ;;  %v4479_v32 = vand.u32 4294901760, %v4478_v16 }
 0x13e   :  { %v17275_v40 = vand.u32 4294901760, %v2138_v58  ;;  %v17277_v41 = vadd.f32 %v15089_v35, %v15037_v39  ;;  %v981_v43 = vpop.f32.mrb[9].mxu0 }
 0x13f   :  { %v17279_v46 = vadd.f32 %v1417_v37, %v981_v43  ;;  %v2670_v25 = vsub.f32 %v2590_v23, %v17323_v31  ;;  %v4469_v37 = vsub.f32 %v4467_v9, %v4468_v45  ;;  %v4480_v44 = vsub.f32 %v4478_v16, %v4479_v32 }
 0x140   :  { %v2218_v48 = vsub.f32 %v2138_v58, %v17275_v40  ;;  %v3494_v49 = vsel %vm2133_vm2, %v17277_v41, 0  ;;  %15172 = vmatpush3.xpose.msra.mxu1 %v17275_v40 }
 0x141   :  { %v3497_v51 = vand.u32 4294901760, %v3494_v49  ;;  %15176 = vmatprep.subr.mxu1 %v16738_v26  ;;  %v2671_v24 = vand.u32 4294901760, %v2670_v25  ;;  %v4481_v63 = vand.u32 4294901760, %v4480_v44 }
 0x142   :  { %v2219_v38 = vand.u32 4294901760, %v2218_v48 }
 0x143   :  { %v3574_v52 = vsub.f32 %v3494_v49, %v3497_v51  ;;  %15174 = vmatmul.mubr.f32.vlgmr.msra.gmra.mrb[6].mxu1 %v2210_v50  ;;  %15262 = vmatpush3.xpose.msra.mxu0 %v3497_v51  ;;  %v2672_v35 = vsub.f32 %v2670_v25, %v2671_v24 }
 0x144   :  { %v2220_v7 = vsub.f32 %v2218_v48, %v2219_v38  ;;  %15178 = vmatprep.mubr.msk.f32.mxu1 %vm16739_vm1, %v16738_v26  ;;  %15266 = vmatprep.subr.mxu0 %v16738_v26 }
 0x145   :  { %v3575_v8 = vand.u32 4294901760, %v3574_v52  ;;  %v2673_v61 = vand.u32 4294901760, %v2672_v35 }
 0x146   :  { %15264 = vmatmul.mubr.f32.vlgmr.msra.gmra.mrb[18].mxu0 %v3566_v56  ;;  %v2221_v11 = vand.u32 4294901760, %v2220_v7 }
 0x147   :  { %v3576_v12 = vsub.f32 %v3574_v52, %v3575_v8  ;;  %15268 = vmatprep.mubr.msk.f32.mxu0 %vm16739_vm1, %v16738_v26 }
 0x148   :  { %15177 = vmatpush3.xpose.msra.mxu1 %v2221_v11 }
 0x149   :  { %15181 = vmatprep.subr.mxu1 %v16738_v26  ;;  %v3577_v18 = vand.u32 4294901760, %v3576_v12 }
 0x14b   :  { %15179 = vmatmul.mubr.f32.vlgmr.msra.gmra.mrb[6].mxu1 %v17254_v62  ;;  %15267 = vmatpush3.xpose.msra.mxu0 %v3577_v18 }
 0x14c   :  { %15182 = vmatpush3.xpose.msra.mxu1 %v2218_v48  ;;  %15271 = vmatprep.subr.mxu0 %v16738_v26 }
 0x14d   :  { %15183 = vmatprep.mubr.msk.f32.mxu1 %vm16739_vm1, %v16738_v26  ;;  %15186 = vmatprep.subr.mxu1 %v16738_v26 }
 0x14e   :  { %15269 = vmatmul.mubr.f32.vlgmr.msra.gmra.mrb[18].mxu0 %v17258_v2 }
 0x14f   :  { %15272 = vmatpush3.xpose.msra.mxu0 %v3574_v52  ;;  %15273 = vmatprep.mubr.msk.f32.mxu0 %vm16739_vm1, %v16738_v26  ;;  %v3946_v52 = vsel %vm2133_vm2, %v17263_v10, 0 }
 0x150   :  { %15276 = vmatprep.subr.mxu0 %v16738_v26  ;;  %v3949_v7 = vand.u32 4294901760, %v3946_v52 }
 0x152   :  { %v4026_v11 = vsub.f32 %v3946_v52, %v3949_v7 }
 0x153   :  { %15184 = vmatmul.mubr.f32.vlgmr.msra.gmra.mrb[6].mxu1 %v2207_v5  ;;  %v3042_v5 = vsel %vm2133_vm2, %v17279_v46, 0 }
 0x154   :  { %15187 = vmatpush3.xpose.msra.mxu1 %v17275_v40  ;;  %15188 = vmatprep.mubr.msk.f32.mxu1 %vm16739_vm1, %v16738_v26  ;;  %v3045_v3 = vand.u32 4294901760, %v3042_v5  ;;  %v4027_v18 = vand.u32 4294901760, %v4026_v11 }
 0x155   :  { %15191 = vmatprep.subr.mxu1 %v16738_v26 }
 0x156   :  { %15274 = vmatmul.mubr.f32.vlgmr.msra.gmra.mrb[18].mxu0 %v17266_v13  ;;  %v3122_v17 = vsub.f32 %v3042_v5, %v3045_v3  ;;  %v4028_v23 = vsub.f32 %v4026_v11, %v4027_v18 }
 0x157   :  { %15277 = vmatpush3.xpose.msra.mxu0 %v3497_v51  ;;  %15278 = vmatprep.mubr.msk.f32.mxu0 %vm16739_vm1, %v16738_v26 }
 0x158   :  { %15281 = vmatprep.subr.mxu0 %v16738_v26  ;;  %v3123_v58 = vand.u32 4294901760, %v3122_v17  ;;  %v4029_v55 = vand.u32 4294901760, %v4028_v23 }
 0x15a   :  { %v3124_v47 = vsub.f32 %v3122_v17, %v3123_v58 }
 0x15b   :  { %15189 = vmatmul.mubr.f32.vlgmr.msra.gmra.mrb[6].mxu1 %v2208_v14 }
 0x15c   :  { %15192 = vmatpush3.xpose.msra.mxu1 %v2219_v38  ;;  %15193 = vmatprep.mubr.msk.f32.mxu1 %vm16739_vm1, %v16738_v26  ;;  %v3943_v38 = vsel %vm2133_vm2, %v17250_v60, 0 }
 0x15d   :  { %15196 = vmatprep.subr.mxu1 %v16738_v26  ;;  %v4014_v56 = vand.u32 4294901760, %v3943_v38 }
 0x15e   :  { %15279 = vmatmul.mubr.f32.vlgmr.msra.gmra.mrb[18].mxu0 %v3564_v33 }
 0x15f   :  { %15282 = vmatpush3.xpose.msra.mxu0 %v3575_v8  ;;  %15283 = vmatprep.mubr.msk.f32.mxu0 %vm16739_vm1, %v16738_v26  ;;  %v4015_v8 = vsub.f32 %v3943_v38, %v4014_v56 }
 0x160   :  { %15286 = vmatprep.subr.mxu0 %v16738_v26 }
 0x161   :  { %v4016_v12 = vand.u32 4294901760, %v4015_v8 }
 0x163   :  { %15194 = vmatmul.mubr.f32.vlgmr.msra.gmra.mrb[6].mxu1 %v17254_v62  ;;  %v4017_v22 = vsub.f32 %v4015_v8, %v4016_v12 }
 0x164   :  { %15197 = vmatpush3.xpose.msra.mxu1 %v17275_v40  ;;  %15198 = vmatprep.mubr.msk.f32.mxu1 %vm16739_vm1, %v16738_v26 }
 0x165   :  { %15201 = vmatprep.subr.mxu1 %v16738_v26 }
 0x166   :  { %15284 = vmatmul.mubr.f32.vlgmr.msra.gmra.mrb[18].mxu0 %v17258_v2 }
 0x167   :  { %15287 = vmatpush3.xpose.msra.mxu0 %v3497_v51  ;;  %15288 = vmatprep.mubr.msk.f32.mxu0 %vm16739_vm1, %v16738_v26  ;;  %v3125_v51 = vand.u32 4294901760, %v3124_v47 }
 0x168   :  { %15321 = vmatprep.subr.mxu0 %v16738_v26 }
 0x16b   :  { %15199 = vmatmul.mubr.f32.vlgmr.msra.gmra.mrb[6].mxu1 %v17254_v62  ;;  %v4470_v62 = vand.u32 4294901760, %v4469_v37 }
 0x16c   :  { %15202 = vmatpush3.xpose.msra.mxu1 %v17323_v31  ;;  %15203 = vmatprep.mubr.msk.f32.mxu1 %vm16739_vm1, %v16738_v26 }
 0x16d   :  { %15206 = vmatprep.subr.mxu1 %v16738_v26 }
 0x16e   :  { %15289 = vmatmul.mubr.f32.vlgmr.msra.gmra.mrb[18].mxu0 %v17258_v2  ;;  %v3039_v2 = vsel %vm2133_vm2, %v17246_v57, 0 }
 0x16f   :  { %15322 = vmatpush3.xpose.msra.mxu0 %v17331_v21  ;;  %15204 = vmatmul.mubr.f32.vlgmr.msra.gmra.mrb[8].mxu1 %v2662_v42  ;;  %v17383_v6 = vand.u32 4294901760, %v3039_v2 }
 0x170   :  { %15207 = vmatpush3.xpose.msra.mxu1 %v2673_v61  ;;  %15323 = vmatprep.mubr.msk.f32.mxu0 %vm16739_vm1, %v16738_v26 }
 0x171   :  { %15326 = vmatprep.subr.mxu0 %v16738_v26  ;;  %15208 = vmatprep.mubr.msk.f32.mxu1 %vm16739_vm1, %v16738_v26  ;;  %v3111_v13 = vsub.f32 %v3039_v2, %v17383_v6 }
 0x172   :  { %15324 = vmatmul.mubr.f32.vlgmr.msra.gmra.mrb[20].mxu0 %v4470_v62  ;;  %15211 = vmatprep.subr.mxu1 %v16738_v26 }
 0x173   :  { %15327 = vmatpush3.xpose.msra.mxu0 %v4481_v63  ;;  %15328 = vmatprep.mubr.msk.f32.mxu0 %vm16739_vm1, %v16738_v26  ;;  %v3112_v33 = vand.u32 4294901760, %v3111_v13 }
 0x174   :  { %15331 = vmatprep.subr.mxu0 %v16738_v26 }
 0x175   :  { %v3113_v40 = vsub.f32 %v3111_v13, %v3112_v33 }
 0x177   :  { %15209 = vmatmul.mubr.f32.vlgmr.msra.gmra.mrb[8].mxu1 %v17316_v28  ;;  %v3114_v49 = vand.u32 4294901760, %v3113_v40 }
 0x178   :  { %15212 = vmatpush3.xpose.msra.mxu1 %v2670_v25  ;;  %15213 = vmatprep.mubr.msk.f32.mxu1 %vm16739_vm1, %v16738_v26 }
 0x179   :  { %15216 = vmatprep.subr.mxu1 %v16738_v26 }
 0x17a   :  { %15329 = vmatmul.mubr.f32.vlgmr.msra.gmra.mrb[20].mxu0 %v17327_v15 }
 0x17b   :  { %15332 = vmatpush3.xpose.msra.mxu0 %v4478_v16  ;;  %15333 = vmatprep.mubr.msk.f32.mxu0 %vm16739_vm1, %v16738_v26 }
 0x17c   :  { %15336 = vmatprep.subr.mxu0 %v16738_v26 }
 0x17d   :  { %v17390_v14 = vpop.f32.mrb[12].mxu0 }
 0x17e   :  { %v17392_v1 = vpop.f32.mrb[13].mxu0  ;;  %v17417_v50 = vand.u32 4294901760, %v17390_v14 }
 0x17f   :  { %15214 = vmatmul.mubr.f32.vlgmr.msra.gmra.mrb[8].mxu1 %v2659_v20  ;;  %v17465_v30 = vand.u32 4294901760, %v17392_v1 }
 0x180   :  { %15217 = vmatpush3.xpose.msra.mxu1 %v17323_v31  ;;  %15218 = vmatprep.mubr.msk.f32.mxu1 %vm16739_vm1, %v16738_v26 }
 0x181   :  { %15221 = vmatprep.subr.mxu1 %v16738_v26  ;;  %v17399_v34 = vpop.f32.mrb[14].mxu0 }
 0x182   :  { %15334 = vmatmul.mubr.f32.vlgmr.msra.gmra.mrb[20].mxu0 %v4467_v9  ;;  %v17402_v39 = vpop.f32.mrb[15].mxu0 }
 0x183   :  { %15337 = vmatpush3.xpose.msra.mxu0 %v17331_v21  ;;  %15338 = vmatprep.mubr.msk.f32.mxu0 %vm16739_vm1, %v16738_v26 }
 0x184   :  { %15341 = vmatprep.subr.mxu0 %v16738_v26 }
 0x185   :  { %v17408_v43 = vpop.f32.mrb[16].mxu0 }
 0x186   :  { %v17410_v48 = vpop.f32.mrb[17].mxu0 }
 0x187   :  { %15219 = vmatmul.mubr.f32.vlgmr.msra.gmra.mrb[8].mxu1 %v2660_v27 }
 0x188   :  { %15222 = vmatpush3.xpose.msra.mxu1 %v2671_v24  ;;  %15223 = vmatprep.mubr.msk.f32.mxu1 %vm16739_vm1, %v16738_v26 }
 0x189   :  { %15226 = vmatprep.subr.mxu1 %v16738_v26 }
 0x18a   :  { %15339 = vmatmul.mubr.f32.vlgmr.msra.gmra.mrb[20].mxu0 %v4468_v45 }
 0x18b   :  { %15342 = vmatpush3.xpose.msra.mxu0 %v4479_v32  ;;  %15343 = vmatprep.mubr.msk.f32.mxu0 %vm16739_vm1, %v16738_v26 }
 0x18c   :  { %15346 = vmatprep.subr.mxu0 %v16738_v26 }
 0x18f   :  { %15224 = vmatmul.mubr.f32.vlgmr.msra.gmra.mrb[8].mxu1 %v17316_v28 }
 0x190   :  { %15227 = vmatpush3.xpose.msra.mxu1 %v17323_v31  ;;  %15228 = vmatprep.mubr.msk.f32.mxu1 %vm16739_vm1, %v16738_v26 }
 0x191   :  { %15231 = vmatprep.subr.mxu1 %v16738_v26 }
 0x192   :  { %15344 = vmatmul.mubr.f32.vlgmr.msra.gmra.mrb[20].mxu0 %v17327_v15 }
 0x193   :  { %15347 = vmatpush3.xpose.msra.mxu0 %v17331_v21  ;;  %15348 = vmatprep.mubr.msk.f32.mxu0 %vm16739_vm1, %v16738_v26 }
 0x194   :  { %15381 = vmatprep.subr.mxu0 %v16738_v26 }
 0x197   :  { %15229 = vmatmul.mubr.f32.vlgmr.msra.gmra.mrb[8].mxu1 %v17316_v28  ;;  %v4018_v28 = vand.u32 4294901760, %v4017_v22 }
 0x198   :  { %15232 = vmatpush3.xpose.msra.mxu1 %v3045_v3  ;;  %15233 = vmatprep.mubr.msk.f32.mxu1 %vm16739_vm1, %v16738_v26 }
 0x199   :  { %15236 = vmatprep.subr.mxu1 %v16738_v26 }
 0x19a   :  { %15349 = vmatmul.mubr.f32.vlgmr.msra.gmra.mrb[20].mxu0 %v17327_v15 }
 0x19b   :  { %15234 = vmatmul.mubr.f32.vlgmr.msra.gmra.mrb[10].mxu1 %v3114_v49  ;;  %15382 = vmatpush3.msra.mxu0 %v17417_v50 }
 0x19c   :  { %15237 = vmatpush3.xpose.msra.mxu1 %v3125_v51  ;;  %15238 = vmatprep.mubr.msk.f32.mxu1 %vm16739_vm1, %v16738_v26 }
 0x19d   :  { %15241 = vmatprep.subr.mxu1 %v16738_v26  ;;  %15383 = vmatprep.mubr.msk.f32.mxu0 %vm16739_vm1, %v16738_v26 }
 0x19e   :  { %15386 = vmatprep.subr.mxu0 %v16738_v26 }
 0x1a3   :  { %15239 = vmatmul.mubr.f32.vlgmr.msra.gmra.mrb[10].mxu1 %v17383_v6 }
 0x1a4   :  { %15242 = vmatpush3.xpose.msra.mxu1 %v3122_v17  ;;  %15243 = vmatprep.mubr.msk.f32.mxu1 %vm16739_vm1, %v16738_v26 }
 0x1a5   :  { %15246 = vmatprep.subr.mxu1 %v16738_v26 }
 0x1ab   :  { %15244 = vmatmul.mubr.f32.vlgmr.msra.gmra.mrb[10].mxu1 %v3111_v13 }
 0x1ac   :  { %15247 = vmatpush3.xpose.msra.mxu1 %v3045_v3  ;;  %15248 = vmatprep.mubr.msk.f32.mxu1 %vm16739_vm1, %v16738_v26 }
 0x1ad   :  { %15251 = vmatprep.subr.mxu1 %v16738_v26 }
 0x1b3   :  { %15249 = vmatmul.mubr.f32.vlgmr.msra.gmra.mrb[10].mxu1 %v3112_v33 }
 0x1b4   :  { %15252 = vmatpush3.xpose.msra.mxu1 %v3123_v58  ;;  %15253 = vmatprep.mubr.msk.f32.mxu1 %vm16739_vm1, %v16738_v26 }
 0x1b5   :  { %15256 = vmatprep.subr.mxu1 %v16738_v26 }
 0x1bb   :  { %15254 = vmatmul.mubr.f32.vlgmr.msra.gmra.mrb[10].mxu1 %v17383_v6 }
 0x1bc   :  { %15257 = vmatpush3.xpose.msra.mxu1 %v3045_v3  ;;  %15258 = vmatprep.mubr.msk.f32.mxu1 %vm16739_vm1, %v16738_v26 }
 0x1bd   :  { %15291 = vmatprep.subr.mxu1 %v16738_v26 }
 0x1c3   :  { %15259 = vmatmul.mubr.f32.vlgmr.msra.gmra.mrb[10].mxu1 %v17383_v6 }
 0x1c4   :  { %15292 = vmatpush3.xpose.msra.mxu1 %v3949_v7  ;;  %15293 = vmatprep.mubr.msk.f32.mxu1 %vm16739_vm1, %v16738_v26 }
 0x1c5   :  { %15296 = vmatprep.subr.mxu1 %v16738_v26 }
 0x1c7   :  { %15294 = vmatmul.mubr.f32.vlgmr.msra.gmra.mrb[12].mxu1 %v4018_v28 }
 0x1c8   :  { %15297 = vmatpush3.xpose.msra.mxu1 %v4029_v55  ;;  %15298 = vmatprep.mubr.msk.f32.mxu1 %vm16739_vm1, %v16738_v26 }
 0x1c9   :  { %15301 = vmatprep.subr.mxu1 %v16738_v26 }
 0x1cf   :  { %15299 = vmatmul.mubr.f32.vlgmr.msra.gmra.mrb[12].mxu1 %v4014_v56 }
 0x1d0   :  { %15302 = vmatpush3.xpose.msra.mxu1 %v4026_v11  ;;  %15303 = vmatprep.mubr.msk.f32.mxu1 %vm16739_vm1, %v16738_v26 }
 0x1d1   :  { %15306 = vmatprep.subr.mxu1 %v16738_v26 }
 0x1d7   :  { %15304 = vmatmul.mubr.f32.vlgmr.msra.gmra.mrb[12].mxu1 %v4015_v8 }
 0x1d8   :  { %15307 = vmatpush3.xpose.msra.mxu1 %v3949_v7  ;;  %15308 = vmatprep.mubr.msk.f32.mxu1 %vm16739_vm1, %v16738_v26 }
 0x1d9   :  { %15311 = vmatprep.subr.mxu1 %v16738_v26 }
 0x1df   :  { %15309 = vmatmul.mubr.f32.vlgmr.msra.gmra.mrb[12].mxu1 %v4016_v12 }
 0x1e0   :  { %15312 = vmatpush3.xpose.msra.mxu1 %v4027_v18  ;;  %15313 = vmatprep.mubr.msk.f32.mxu1 %vm16739_vm1, %v16738_v26 }
 0x1e1   :  { %15316 = vmatprep.subr.mxu1 %v16738_v26 }
 0x1e7   :  { %15314 = vmatmul.mubr.f32.vlgmr.msra.gmra.mrb[12].mxu1 %v4014_v56 }
 0x1e8   :  { %15317 = vmatpush3.xpose.msra.mxu1 %v3949_v7  ;;  %15318 = vmatprep.mubr.msk.f32.mxu1 %vm16739_vm1, %v16738_v26 }
 0x1e9   :  { %15351 = vmatprep.subr.mxu1 %v16738_v26 }
 0x1ef   :  { %15319 = vmatmul.mubr.f32.vlgmr.msra.gmra.mrb[12].mxu1 %v4014_v56 }
 0x1f0   :  { %15352 = vmatpush3.msra.mxu1 %v17465_v30  ;;  %15353 = vmatprep.mubr.msk.f32.mxu1 %vm16739_vm1, %v16738_v26 }
 0x1f1   :  { %15356 = vmatprep.subr.mxu1 %v16738_v26 }
 0x23e   :  { %v2582_v31 = vpop.f32.mrb[6].mxu1 }
 0x23f   :  { %v15200_v15 = vpop.f32.mrb[7].mxu1  ;;  %v4846_v20 = vsel %vm2133_vm2, %v2582_v31, -inf }
 0x240   :  { %4847 = vmax.xlane.f32.xlu0 %v4846_v20 }
 0x241   :  { %v3938_v21 = vpop.f32.mrb[18].mxu0 }
 0x242   :  { %v15290_v25 = vpop.f32.mrb[19].mxu0  ;;  %v4855_v37 = vsel %vm2133_vm2, %v3938_v21, -inf }
 0x26a   :  { %v3034_v9 = vpop.f32.mrb[8].mxu1 }
 0x26b   :  { %v15230_v27 = vpop.f32.mrb[9].mxu1  ;;  %v4849_v16 = vsel %vm2133_vm2, %v3034_v9, -inf }
 0x26c   :  { %4850 = vmax.xlane.f32.xlu0 %v4849_v16 }
 0x26d   :  { %v4842_v24 = vpop.f32.mrb[20].mxu0 }
 0x26e   :  { %v15350_v45 = vpop.f32.mrb[21].mxu0  ;;  %v4861_v42 = vsel %vm2133_vm2, %v4842_v24, -inf }
 0x296   :  { %v3486_v29 = vpop.f32.mrb[10].mxu1 }
 0x297   :  { %v15260_v32 = vpop.f32.mrb[11].mxu1  ;;  %v4852_v35 = vsel %vm2133_vm2, %v3486_v29, -inf }
 0x298   :  { %4853 = vmax.xlane.f32.xlu1 %v4852_v35 }
 0x29c   :  { %4856 = vmax.xlane.f32.xlu1 %v4855_v37 }
 0x2a0   :  { %4862 = vmax.xlane.f32.xlu1 %v4861_v42 }
 0x2c2   :  { %v4390_v44 = vpop.f32.mrb[12].mxu1 }
 0x2c3   :  { %v15320_v61 = vpop.f32.mrb[13].mxu1  ;;  %v4858_v62 = vsel %vm2133_vm2, %v4390_v44, -inf }
 0x2c4   :  { %4859 = vmax.xlane.f32.xlu0 %v4858_v62 }
 0x2cd   :  { %v4848_v63 = vpop.xlane.xlu0 %4847 }
 0x2ce   :  { %v4864_v2 = vsub.f32 %v2582_v31, %v4848_v63 }
 0x2d0   :  { %v4870_v5 = vmul.f32 1.442695, %v4864_v2 }
 0x2d2   :  { %16672 = vpow2.f32 %v4870_v5 }
 0x2dc   :  { %v16673_v6 = vpop.eup %16672 }
 0x2dd   :  { %v4882_v3 = vsel %vm2133_vm2, %v16673_v6, 0.0 }
 0x2de   :  { %4883 = vadd.xlane.f32.xlu0 %v4882_v3  ;;  %v17567_v3 = vand.u32 4294901760, %v17399_v34 }
 0x2f9   :  { %v4851_v13 = vpop.xlane.xlu0 %4850 }
 0x2fa   :  { %v4865_v17 = vsub.f32 %v3034_v9, %v4851_v13 }
 0x2fc   :  { %v4872_v33 = vmul.f32 1.442695, %v4865_v17 }
 0x2fe   :  { %16674 = vpow2.f32 %v4872_v33 }
 0x308   :  { %v17478_v58 = vpop.eup %16674 }
 0x309   :  { %v4885_v40 = vsel %vm2133_vm2, %v17478_v58, 0.0 }
 0x30a   :  { %4886 = vadd.xlane.f32.xlu1 %v4885_v40 }
 0x325   :  { %v4854_v47 = vpop.xlane.xlu1 %4853 }
 0x326   :  { %v4866_v49 = vsub.f32 %v3486_v29, %v4854_v47  ;;  %v6340_v47 = vsub.f32 %v17399_v34, %v17567_v3 }
 0x328   :  { %v4874_v51 = vmul.f32 1.442695, %v4866_v49 }
 0x329   :  { %v4857_v38 = vpop.xlane.xlu1 %4856 }
 0x32a   :  { %16676 = vpow2.f32 %v4874_v51  ;;  %v4867_v52 = vsub.f32 %v3938_v21, %v4857_v38 }
 0x32c   :  { %v4876_v56 = vmul.f32 1.442695, %v4867_v52 }
 0x32d   :  { %v4863_v7 = vpop.xlane.xlu1 %4862 }
 0x32e   :  { %16678 = vpow2.f32 %v4876_v56  ;;  %v4869_v8 = vsub.f32 %v4842_v24, %v4863_v7  ;;  %v6341_v7 = vand.u32 4294901760, %v6340_v47 }
 0x330   :  { %v4880_v11 = vmul.f32 1.442695, %v4869_v8 }
 0x332   :  { %16680 = vpow2.f32 %v4880_v11 }
 0x334   :  { %v17482_v12 = vpop.eup %16676 }
 0x335   :  { %v4888_v18 = vsel %vm2133_vm2, %v17482_v12, 0.0 }
 0x336   :  { %4889 = vadd.xlane.f32.xlu0 %v4888_v18 }
 0x338   :  { %v17486_v22 = vpop.eup %16678 }
 0x339   :  { %v4891_v23 = vsel %vm2133_vm2, %v17486_v22, 0.0 }
 0x33a   :  { %4892 = vadd.xlane.f32.xlu1 %v4891_v23 }
 0x33c   :  { %v17490_v28 = vpop.eup %16680 }
 0x33d   :  { %v4897_v55 = vsel %vm2133_vm2, %v17490_v28, 0.0 }
 0x33e   :  { %4898 = vadd.xlane.f32.xlu1 %v4897_v55  ;;  %v6342_v55 = vsub.f32 %v6340_v47, %v6341_v7 }
 0x34f   :  { %8060 = vrot.lane.b32.xlu1 %v17240_v36, %s16740_s2 }
 0x351   :  { %v4860_v31 = vpop.xlane.xlu0 %4859 }
 0x352   :  { %v4868_v15 = vsub.f32 %v4390_v44, %v4860_v31  ;;  %v17547_v44 = vand.u32 4294901760, %v17402_v39 }
 0x353   :  { %7608 = vrot.lane.b32.xlu1 %v17270_v4, %s16740_s2 }
 0x354   :  { %v4878_v20 = vmul.f32 1.442695, %v4868_v15  ;;  %v5891_v13 = vsub.f32 %v17402_v39, %v17547_v44 }
 0x356   :  { %16682 = vpow2.f32 %v4878_v20  ;;  %v5892_v49 = vand.u32 4294901760, %v5891_v13  ;;  %v6343_v20 = vand.u32 4294901760, %v6342_v55 }
 0x357   :  { %8062 = vrot.lane.b32.xlu1 %v17268_v19, %s16740_s2 }
 0x358   :  { %v5893_v8 = vsub.f32 %v5891_v13, %v5892_v49 }
 0x35a   :  { %v5894_v23 = vand.u32 4294901760, %v5893_v8 }
 0x35b   :  { %8968 = vrot.lane.b32.xlu1 %v17244_v54, %s16740_s2  ;;  %v4993_v54 = vsub.f32 %v17392_v1, %v17465_v30 }
 0x35d   :  { %v4994_v27 = vand.u32 4294901760, %v4993_v54 }
 0x35f   :  { %8970 = vrot.lane.b32.xlu1 %v17277_v41, %s16740_s2 }
 0x360   :  { %v17504_v21 = vpop.eup %16682 }
 0x361   :  { %v4894_v36 = vsel %vm2133_vm2, %v17504_v21, 0.0 }
 0x362   :  { %4895 = vadd.xlane.f32.xlu0 %v4894_v36 }
 0x363   :  { %9876 = vrot.lane.b32.xlu1 %v17248_v59, %s16740_s2 }
 0x367   :  { %9878 = vrot.lane.b32.xlu1 %v17261_v0, %s16740_s2  ;;  %v4995_v0 = vsub.f32 %v4993_v54, %v4994_v27 }
 0x369   :  { %v4996_v29 = vand.u32 4294901760, %v4995_v0 }
 0x36b   :  { %v4884_v4 = vpop.xlane.xlu0 %4883 }
 0x36c   :  { %16684 = vrcp.f32 %v4884_v4 }
 0x376   :  { %v16685_v19 = vpop.eup %16684 }
 0x377   :  { %v4901_v25 = vmul.f32 %v16685_v19, %v16673_v6 }
 0x378   :  { %7606 = vrot.lane.b32.xlu0 %v17242_v53, %s16740_s2 }
 0x379   :  { %v4913_v41 = vsel %vm2133_vm2, %v4901_v25, 0  ;;  %v17618_v25 = vand.u32 4294901760, %v17410_v48 }
 0x37a   :  { %v4981_v9 = vand.u32 4294901760, %v4913_v41 }
 0x37c   :  { %8514 = vrot.lane.b32.xlu0 %v17246_v57, %s16740_s2  ;;  %v4982_v59 = vsub.f32 %v4913_v41, %v4981_v9 }
 0x37e   :  { %v4983_v16 = vand.u32 4294901760, %v4982_v59 }
 0x380   :  { %8516 = vrot.lane.b32.xlu0 %v17279_v46, %s16740_s2  ;;  %v4984_v24 = vsub.f32 %v4982_v59, %v4983_v16 }
 0x382   :  { %v4985_v45 = vand.u32 4294901760, %v4984_v24 }
 0x384   :  { %9422 = vrot.lane.b32.xlu0 %v17250_v60, %s16740_s2  ;;  %15354 = vmatmul.mubr.f32.vlgmr.msra.gmra.mrb[14].mxu1 %v4985_v45  ;;  %v5442_v60 = vsub.f32 %v17390_v14, %v17417_v50 }
 0x385   :  { %15357 = vmatpush3.msra.mxu1 %v4996_v29  ;;  %15358 = vmatprep.mubr.msk.f32.mxu1 %vm16739_vm1, %v16738_v26 }
 0x386   :  { %15361 = vmatprep.subr.mxu1 %v16738_v26  ;;  %v5443_v35 = vand.u32 4294901760, %v5442_v60 }
 0x388   :  { %9424 = vrot.lane.b32.xlu0 %v17263_v10, %s16740_s2  ;;  %v5444_v61 = vsub.f32 %v5442_v60, %v5443_v35 }
 0x38a   :  { %v5445_v63 = vand.u32 4294901760, %v5444_v61 }
 0x38c   :  { %15359 = vmatmul.mubr.f32.vlgmr.msra.gmra.mrb[14].mxu1 %v4981_v9 }
 0x38d   :  { %15362 = vmatpush3.msra.mxu1 %v4993_v54  ;;  %15363 = vmatprep.mubr.msk.f32.mxu1 %vm16739_vm1, %v16738_v26 }
 0x38e   :  { %15366 = vmatprep.subr.mxu1 %v16738_v26 }
 0x394   :  { %15364 = vmatmul.mubr.f32.vlgmr.msra.gmra.mrb[14].mxu1 %v4982_v59  ;;  %v17631_v59 = vsub.f32 %v17410_v48, %v17618_v25 }
 0x395   :  { %15367 = vmatpush3.msra.mxu1 %v17465_v30  ;;  %15368 = vmatprep.mubr.msk.f32.mxu1 %vm16739_vm1, %v16738_v26 }
 0x396   :  { %15371 = vmatprep.subr.mxu1 %v16738_v26 }
 0x397   :  { %v4887_v53 = vpop.xlane.xlu1 %4886 }
 0x398   :  { %16686 = vrcp.f32 %v4887_v53 }
 0x39c   :  { %15369 = vmatmul.mubr.f32.vlgmr.msra.gmra.mrb[14].mxu1 %v4983_v16 }
 0x39d   :  { %15372 = vmatpush3.msra.mxu1 %v4994_v27  ;;  %15373 = vmatprep.mubr.msk.f32.mxu1 %vm16739_vm1, %v16738_v26  ;;  %v17627_v27 = vand.u32 4294901760, %v17408_v43 }
 0x39e   :  { %15376 = vmatprep.subr.mxu1 %v16738_v26 }
 0x39f   :  { %v17647_v29 = vsub.f32 %v17408_v43, %v17627_v27 }
 0x3a2   :  { %v16687_v57 = vpop.eup %16686 }
 0x3a3   :  { %v4903_v10 = vmul.f32 %v16687_v57, %v17478_v58 }
 0x3a4   :  { %15374 = vmatmul.mubr.f32.vlgmr.msra.gmra.mrb[14].mxu1 %v4981_v9 }
 0x3a5   :  { %15377 = vmatpush3.msra.mxu1 %v17465_v30  ;;  %15378 = vmatprep.mubr.msk.f32.mxu1 %vm16739_vm1, %v16738_v26  ;;  %v5362_v46 = vsel %vm2133_vm2, %v4903_v10, 0  ;;  %v7239_v10 = vand.u32 4294901760, %v17647_v29 }
 0x3a6   :  { %15411 = vmatprep.subr.mxu1 %v16738_v26  ;;  %v5430_v32 = vand.u32 4294901760, %v5362_v46 }
 0x3a8   :  { %v5431_v37 = vsub.f32 %v5362_v46, %v5430_v32 }
 0x3aa   :  { %v5432_v42 = vand.u32 4294901760, %v5431_v37 }
 0x3ac   :  { %15379 = vmatmul.mubr.f32.vlgmr.msra.gmra.mrb[14].mxu1 %v4981_v9  ;;  %v5433_v62 = vsub.f32 %v5431_v37, %v5432_v42 }
 0x3ad   :  { %15412 = vmatpush3.msra.mxu1 %v17547_v44  ;;  %15413 = vmatprep.mubr.msk.f32.mxu1 %vm16739_vm1, %v16738_v26 }
 0x3ae   :  { %v5434_v30 = vand.u32 4294901760, %v5433_v62  ;;  %15416 = vmatprep.subr.mxu1 %v16738_v26 }
 0x3b0   :  { %15384 = vmatmul.mubr.f32.vlgmr.msra.gmra.mrb[22].mxu0 %v5434_v30 }
 0x3b1   :  { %15387 = vmatpush3.msra.mxu0 %v5445_v63  ;;  %15388 = vmatprep.mubr.msk.f32.mxu0 %vm16739_vm1, %v16738_v26 }
 0x3b2   :  { %15391 = vmatprep.subr.mxu0 %v16738_v26 }
 0x3b8   :  { %15389 = vmatmul.mubr.f32.vlgmr.msra.gmra.mrb[22].mxu0 %v5430_v32 }
 0x3b9   :  { %15392 = vmatpush3.msra.mxu0 %v5442_v60  ;;  %15393 = vmatprep.mubr.msk.f32.mxu0 %vm16739_vm1, %v16738_v26 }
 0x3ba   :  { %15396 = vmatprep.subr.mxu0 %v16738_v26 }
 0x3c0   :  { %15394 = vmatmul.mubr.f32.vlgmr.msra.gmra.mrb[22].mxu0 %v5431_v37 }
 0x3c1   :  { %15397 = vmatpush3.msra.mxu0 %v17417_v50  ;;  %15398 = vmatprep.mubr.msk.f32.mxu0 %vm16739_vm1, %v16738_v26 }
 0x3c2   :  { %15401 = vmatprep.subr.mxu0 %v16738_v26 }
 0x3c3   :  { %v4890_v2 = vpop.xlane.xlu0 %4889 }
 0x3c4   :  { %16688 = vrcp.f32 %v4890_v2 }
 0x3c7   :  { %v4893_v5 = vpop.xlane.xlu1 %4892 }
 0x3c8   :  { %16690 = vrcp.f32 %v4893_v5  ;;  %15399 = vmatmul.mubr.f32.vlgmr.msra.gmra.mrb[22].mxu0 %v5432_v42 }
 0x3c9   :  { %15402 = vmatpush3.msra.mxu0 %v5443_v35  ;;  %15403 = vmatprep.mubr.msk.f32.mxu0 %vm16739_vm1, %v16738_v26 }
 0x3ca   :  { %15406 = vmatprep.subr.mxu0 %v16738_v26 }
 0x3cb   :  { %v4899_v36 = vpop.xlane.xlu1 %4898 }
 0x3cc   :  { %16692 = vrcp.f32 %v4899_v36 }
 0x3ce   :  { %v16689_v6 = vpop.eup %16688 }
 0x3cf   :  { %v4905_v17 = vmul.f32 %v16689_v6, %v17482_v12  ;;  %v8061_v30 = vpop.permute.xlu1 %8060 }
 0x3d0   :  { %15404 = vmatmul.mubr.f32.vlgmr.msra.gmra.mrb[22].mxu0 %v5430_v32 }
 0x3d1   :  { %15407 = vmatpush3.msra.mxu0 %v17417_v50  ;;  %15408 = vmatprep.mubr.msk.f32.mxu0 %vm16739_vm1, %v16738_v26  ;;  %v5811_v33 = vsel %vm2133_vm2, %v4905_v17, 0  ;;  %v8064_v17 = vsel %vm2133_vm2, %v8061_v30, 0 }
 0x3d2   :  { %v16691_v58 = vpop.eup %16690  ;;  %15441 = vmatprep.subr.mxu0 %v16738_v26  ;;  %v17577_v40 = vand.u32 4294901760, %v5811_v33 }
 0x3d3   :  { %v4907_v51 = vmul.f32 %v16691_v58, %v17486_v22  ;;  %v7609_v63 = vpop.permute.xlu1 %7608 }
 0x3d4   :  { %v5880_v38 = vsub.f32 %v5811_v33, %v17577_v40  ;;  %v7612_v6 = vsel %vm2133_vm2, %v7609_v63, 0 }
 0x3d5   :  { %v6260_v50 = vsel %vm2133_vm2, %v4907_v51, 0  ;;  %v17704_v33 = vand.u32 4294901760, %v7612_v6 }
 0x3d6   :  { %v5881_v52 = vand.u32 4294901760, %v5880_v38  ;;  %v17584_v56 = vand.u32 4294901760, %v6260_v50  ;;  %v16693_v19 = vpop.eup %16692 }
 0x3d7   :  { %v4911_v54 = vmul.f32 %v16693_v19, %v17490_v28 }
 0x3d8   :  { %15409 = vmatmul.mubr.f32.vlgmr.msra.gmra.mrb[22].mxu0 %v5430_v32  ;;  %v5882_v11 = vsub.f32 %v5880_v38, %v5881_v52  ;;  %v6329_v12 = vsub.f32 %v6260_v50, %v17584_v56 }
 0x3d9   :  { %15442 = vmatpush3.msra.mxu0 %v17567_v3  ;;  %15443 = vmatprep.mubr.msk.f32.mxu0 %vm16739_vm1, %v16738_v26  ;;  %v7158_v41 = vsel %vm2133_vm2, %v4911_v54, 0 }
 0x3da   :  { %v5883_v18 = vand.u32 4294901760, %v5882_v11  ;;  %15446 = vmatprep.subr.mxu0 %v16738_v26  ;;  %v6330_v22 = vand.u32 4294901760, %v6329_v12  ;;  %v17624_v28 = vand.u32 4294901760, %v7158_v41 }
 0x3dc   :  { %15414 = vmatmul.mubr.f32.vlgmr.msra.gmra.mrb[16].mxu1 %v5883_v18  ;;  %v6331_v31 = vsub.f32 %v6329_v12, %v6330_v22  ;;  %v17643_v45 = vsub.f32 %v7158_v41, %v17624_v28 }
 0x3dd   :  { %15417 = vmatpush3.msra.mxu1 %v5894_v23  ;;  %15418 = vmatprep.mubr.msk.f32.mxu1 %vm16739_vm1, %v16738_v26 }
 0x3de   :  { %v6332_v15 = vand.u32 4294901760, %v6331_v31  ;;  %15421 = vmatprep.subr.mxu1 %v16738_v26  ;;  %v7228_v60 = vand.u32 4294901760, %v17643_v45 }
 0x3e0   :  { %15444 = vmatmul.mubr.f32.vlgmr.msra.gmra.mrb[24].mxu0 %v6332_v15  ;;  %v7229_v37 = vsub.f32 %v17643_v45, %v7228_v60 }
 0x3e1   :  { %15447 = vmatpush3.msra.mxu0 %v6343_v20  ;;  %15448 = vmatprep.mubr.msk.f32.mxu0 %vm16739_vm1, %v16738_v26 }
 0x3e2   :  { %15451 = vmatprep.subr.mxu0 %v16738_v26  ;;  %v7230_v61 = vand.u32 4294901760, %v7229_v37 }
 0x3e4   :  { %15419 = vmatmul.mubr.f32.vlgmr.msra.gmra.mrb[16].mxu1 %v17577_v40 }
 0x3e5   :  { %15422 = vmatpush3.msra.mxu1 %v5891_v13  ;;  %15423 = vmatprep.mubr.msk.f32.mxu1 %vm16739_vm1, %v16738_v26 }
 0x3e6   :  { %15426 = vmatprep.subr.mxu1 %v16738_v26 }
 0x3e8   :  { %15449 = vmatmul.mubr.f32.vlgmr.msra.gmra.mrb[24].mxu0 %v17584_v56 }
 0x3e9   :  { %15452 = vmatpush3.msra.mxu0 %v6340_v47  ;;  %15453 = vmatprep.mubr.msk.f32.mxu0 %vm16739_vm1, %v16738_v26 }
 0x3ea   :  { %15456 = vmatprep.subr.mxu0 %v16738_v26 }
 0x3ec   :  { %15424 = vmatmul.mubr.f32.vlgmr.msra.gmra.mrb[16].mxu1 %v5880_v38 }
 0x3ed   :  { %15427 = vmatpush3.msra.mxu1 %v17547_v44  ;;  %15428 = vmatprep.mubr.msk.f32.mxu1 %vm16739_vm1, %v16738_v26 }
 0x3ee   :  { %15431 = vmatprep.subr.mxu1 %v16738_v26 }
 0x3ef   :  { %v4896_v4 = vpop.xlane.xlu0 %4895 }
 0x3f0   :  { %16694 = vrcp.f32 %v4896_v4  ;;  %15454 = vmatmul.mubr.f32.vlgmr.msra.gmra.mrb[24].mxu0 %v6329_v12 }
 0x3f1   :  { %15457 = vmatpush3.msra.mxu0 %v17567_v3  ;;  %15458 = vmatprep.mubr.msk.f32.mxu0 %vm16739_vm1, %v16738_v26 }
 0x3f2   :  { %15461 = vmatprep.subr.mxu0 %v16738_v26 }
 0x3f3   :  { %v7607_v2 = vpop.permute.xlu0 %7606 }
 0x3f4   :  { %15429 = vmatmul.mubr.f32.vlgmr.msra.gmra.mrb[16].mxu1 %v5881_v52  ;;  %v7610_v5 = vsel %vm2133_vm2, %v7607_v2, 0 }
 0x3f5   :  { %15432 = vmatpush3.msra.mxu1 %v5892_v49  ;;  %15433 = vmatprep.mubr.msk.f32.mxu1 %vm16739_vm1, %v16738_v26  ;;  %v17700_v13 = vand.u32 4294901760, %v7610_v5  ;;  %v17716_v49 = vsub.f32 %v7612_v6, %v17704_v33 }
 0x3f6   :  { %15436 = vmatprep.subr.mxu1 %v16738_v26 }
 0x3f7   :  { %v17712_v47 = vsub.f32 %v7610_v5, %v17700_v13  ;;  %v7693_v52 = vand.u32 4294901760, %v17716_v49  ;;  %v8515_v20 = vpop.permute.xlu0 %8514 }
 0x3f8   :  { %15459 = vmatmul.mubr.f32.vlgmr.msra.gmra.mrb[24].mxu0 %v6330_v22  ;;  %v8518_v19 = vsel %vm2133_vm2, %v8515_v20, 0 }
 0x3f9   :  { %15462 = vmatpush3.msra.mxu0 %v6341_v7  ;;  %15463 = vmatprep.mubr.msk.f32.mxu0 %vm16739_vm1, %v16738_v26  ;;  %v7682_v50 = vand.u32 4294901760, %v17712_v47  ;;  %v7694_v11 = vsub.f32 %v17716_v49, %v7693_v52  ;;  %v17779_v41 = vand.u32 4294901760, %v8518_v19 }
 0x3fa   :  { %v16695_v9 = vpop.eup %16694  ;;  %15466 = vmatprep.subr.mxu0 %v16738_v26 }
 0x3fb   :  { %v4909_v16 = vmul.f32 %v16695_v9, %v17504_v21  ;;  %v6790_v21 = vand.u32 4294901760, %v17631_v59  ;;  %v7683_v8 = vsub.f32 %v17712_v47, %v7682_v50  ;;  %v7695_v23 = vand.u32 4294901760, %v7694_v11  ;;  %v8517_v4 = vpop.permute.xlu0 %8516 }
 0x3fc   :  { %15434 = vmatmul.mubr.f32.vlgmr.msra.gmra.mrb[16].mxu1 %v17577_v40  ;;  %v8520_v54 = vsel %vm2133_vm2, %v8517_v4, 0 }
 0x3fd   :  { %15437 = vmatpush3.msra.mxu1 %v17547_v44  ;;  %15438 = vmatprep.mubr.msk.f32.mxu1 %vm16739_vm1, %v16738_v26  ;;  %v6709_v0 = vsel %vm2133_vm2, %v4909_v16, 0  ;;  %v6791_v46 = vsub.f32 %v17631_v59, %v6790_v21  ;;  %v7240_v44 = vsub.f32 %v17647_v29, %v7239_v10  ;;  %v7684_v22 = vand.u32 4294901760, %v7683_v8 }
 0x3fe   :  { %15471 = vmatprep.subr.mxu1 %v16738_v26  ;;  %v17640_v24 = vand.u32 4294901760, %v6709_v0  ;;  %v17791_v16 = vsub.f32 %v8518_v19, %v17779_v41 }
 0x3ff   :  { %v6792_v42 = vand.u32 4294901760, %v6791_v46  ;;  %v7241_v62 = vand.u32 4294901760, %v7240_v44 }
 0x400   :  { %15464 = vmatmul.mubr.f32.vlgmr.msra.gmra.mrb[24].mxu0 %v17584_v56  ;;  %v6778_v53 = vsub.f32 %v6709_v0, %v17640_v24 }
 0x401   :  { %15467 = vmatpush3.msra.mxu0 %v17567_v3  ;;  %15468 = vmatprep.mubr.msk.f32.mxu0 %vm16739_vm1, %v16738_v26  ;;  %v8063_v3 = vpop.permute.xlu1 %8062 }
 0x402   :  { %15501 = vmatprep.subr.mxu0 %v16738_v26  ;;  %v6779_v57 = vand.u32 4294901760, %v6778_v53  ;;  %v8066_v58 = vsel %vm2133_vm2, %v8063_v3, 0 }
 0x403   :  { %v17718_v51 = vand.u32 4294901760, %v8066_v58 }
 0x404   :  { %15439 = vmatmul.mubr.f32.vlgmr.msra.gmra.mrb[16].mxu1 %v17577_v40  ;;  %v6780_v32 = vsub.f32 %v6778_v53, %v6779_v57  ;;  %v17709_v40 = vand.u32 4294901760, %v8064_v17 }
 0x405   :  { %15472 = vmatpush3.msra.mxu1 %v17618_v25  ;;  %15473 = vmatprep.mubr.msk.f32.mxu1 %vm16739_vm1, %v16738_v26  ;;  %v8969_v36 = vpop.permute.xlu1 %8968 }
 0x406   :  { %15476 = vmatprep.subr.mxu1 %v16738_v26  ;;  %v6781_v35 = vand.u32 4294901760, %v6780_v32  ;;  %v17725_v38 = vsub.f32 %v8064_v17, %v17709_v40  ;;  %v8972_v9 = vsel %vm2133_vm2, %v8969_v36, 0 }
 0x408   :  { %15469 = vmatmul.mubr.f32.vlgmr.msra.gmra.mrb[24].mxu0 %v17584_v56  ;;  %15474 = vmatmul.mubr.f32.vlgmr.msra.gmra.mrb[18].mxu1 %v6781_v35  ;;  %v8146_v56 = vsub.f32 %v8066_v58, %v17718_v51  ;;  %v8136_v7 = vand.u32 4294901760, %v17725_v38 }
 0x409   :  { %15477 = vmatpush3.msra.mxu1 %v6792_v42  ;;  %15502 = vmatpush3.msra.mxu0 %v17627_v27 }
 0x40a   :  { %15503 = vmatprep.mubr.msk.f32.mxu0 %vm16739_vm1, %v16738_v26  ;;  %15506 = vmatprep.subr.mxu0 %v16738_v26  ;;  %v8147_v12 = vand.u32 4294901760, %v8146_v56  ;;  %v8137_v18 = vsub.f32 %v17725_v38, %v8136_v7 }
 0x40b   :  { %15478 = vmatprep.mubr.msk.f32.mxu1 %vm16739_vm1, %v16738_v26  ;;  %15481 = vmatprep.subr.mxu1 %v16738_v26 }
 0x40c   :  { %15504 = vmatmul.mubr.f32.vlgmr.msra.gmra.mrb[26].mxu0 %v7230_v61  ;;  %v8148_v55 = vsub.f32 %v8146_v56, %v8147_v12  ;;  %v8138_v31 = vand.u32 4294901760, %v8137_v18 }
 0x40d   :  { %15507 = vmatpush3.msra.mxu0 %v7241_v62  ;;  %15508 = vmatprep.mubr.msk.f32.mxu0 %vm16739_vm1, %v16738_v26  ;;  %v9423_v62 = vpop.permute.xlu0 %9422 }
 0x40e   :  { %15511 = vmatprep.subr.mxu0 %v16738_v26  ;;  %v8149_v15 = vand.u32 4294901760, %v8148_v55  ;;  %v9426_v2 = vsel %vm2133_vm2, %v9423_v62, 0 }
 0x40f   :  { %v17858_v3 = vand.u32 4294901760, %v9426_v2 }
 0x410   :  { %15479 = vmatmul.mubr.f32.vlgmr.msra.gmra.mrb[18].mxu1 %v17640_v24 }
 0x411   :  { %15482 = vmatpush3.msra.mxu1 %v17631_v59  ;;  %15483 = vmatprep.mubr.msk.f32.mxu1 %vm16739_vm1, %v16738_v26  ;;  %v17788_v59 = vand.u32 4294901760, %v8972_v9  ;;  %v9425_v63 = vpop.permute.xlu0 %9424 }
 0x412   :  { %15486 = vmatprep.subr.mxu1 %v16738_v26  ;;  %v9428_v5 = vsel %vm2133_vm2, %v9425_v63, 0 }
 0x413   :  { %v17862_v17 = vand.u32 4294901760, %v9428_v5 }
 0x414   :  { %15509 = vmatmul.mubr.f32.vlgmr.msra.gmra.mrb[26].mxu0 %v17624_v28 }
 0x415   :  { %15512 = vmatpush3.msra.mxu0 %v17647_v29  ;;  %15513 = vmatprep.mubr.msk.f32.mxu0 %vm16739_vm1, %v16738_v26  ;;  %v8590_v29 = vand.u32 4294901760, %v17791_v16 }
 0x416   :  { %15516 = vmatprep.subr.mxu0 %v16738_v26 }
 0x418   :  { %15484 = vmatmul.mubr.f32.vlgmr.msra.gmra.mrb[18].mxu1 %v6778_v53 }
 0x419   :  { %15487 = vmatpush3.msra.mxu1 %v17618_v25  ;;  %15488 = vmatprep.mubr.msk.f32.mxu1 %vm16739_vm1, %v16738_v26 }
 0x41a   :  { %15491 = vmatprep.subr.mxu1 %v16738_v26 }
 0x41c   :  { %15514 = vmatmul.mubr.f32.vlgmr.msra.gmra.mrb[26].mxu0 %v17643_v45  ;;  %v17802_v45 = vsub.f32 %v8972_v9, %v17788_v59 }
 0x41d   :  { %15517 = vmatpush3.msra.mxu0 %v17627_v27  ;;  %15518 = vmatprep.mubr.msk.f32.mxu0 %vm16739_vm1, %v16738_v26 }
 0x41e   :  { %15521 = vmatprep.subr.mxu0 %v16738_v26 }
 0x420   :  { %15489 = vmatmul.mubr.f32.vlgmr.msra.gmra.mrb[18].mxu1 %v6779_v57  ;;  %v9044_v57 = vand.u32 4294901760, %v17802_v45 }
 0x421   :  { %15492 = vmatpush3.msra.mxu1 %v6790_v21  ;;  %15493 = vmatprep.mubr.msk.f32.mxu1 %vm16739_vm1, %v16738_v26 }
 0x422   :  { %15496 = vmatprep.subr.mxu1 %v16738_v26  ;;  %v9045_v32 = vsub.f32 %v17802_v45, %v9044_v57 }
 0x424   :  { %15519 = vmatmul.mubr.f32.vlgmr.msra.gmra.mrb[26].mxu0 %v7228_v60  ;;  %v8591_v60 = vsub.f32 %v17791_v16, %v8590_v29  ;;  %v9046_v44 = vand.u32 4294901760, %v9045_v32 }
 0x425   :  { %15522 = vmatpush3.msra.mxu0 %v7239_v10  ;;  %15523 = vmatprep.mubr.msk.f32.mxu0 %vm16739_vm1, %v16738_v26 }
 0x426   :  { %15526 = vmatprep.subr.mxu0 %v16738_v26  ;;  %v8592_v35 = vand.u32 4294901760, %v8591_v60 }
 0x428   :  { %15494 = vmatmul.mubr.f32.vlgmr.msra.gmra.mrb[18].mxu1 %v17640_v24 }
 0x429   :  { %15497 = vmatpush3.msra.mxu1 %v17618_v25  ;;  %15498 = vmatprep.mubr.msk.f32.mxu1 %vm16739_vm1, %v16738_v26  ;;  %v8971_v25 = vpop.permute.xlu1 %8970 }
 0x42a   :  { %15531 = vmatprep.subr.mxu1 %v16738_v26 }
 0x42c   :  { %15524 = vmatmul.mubr.f32.vlgmr.msra.gmra.mrb[26].mxu0 %v17624_v28 }
 0x42d   :  { %15527 = vmatpush3.msra.mxu0 %v17627_v27  ;;  %15528 = vmatprep.mubr.msk.f32.mxu0 %vm16739_vm1, %v16738_v26  ;;  %v8974_v27 = vsel %vm2133_vm2, %v8971_v25, 0  ;;  %v9877_v30 = vpop.permute.xlu1 %9876 }
 0x42e   :  { %15561 = vmatprep.subr.mxu0 %v16738_v26  ;;  %v17794_v0 = vand.u32 4294901760, %v8974_v27 }
 0x430   :  { %15499 = vmatmul.mubr.f32.vlgmr.msra.gmra.mrb[18].mxu1 %v17640_v24  ;;  %v17807_v21 = vsub.f32 %v8974_v27, %v17794_v0 }
 0x431   :  { %15532 = vmatpush3.xpose.msra.mxu1 %v17704_v33  ;;  %15533 = vmatprep.mubr.msk.f32.mxu1 %vm16739_vm1, %v16738_v26  ;;  %v9879_v6 = vpop.permute.xlu1 %9878 }
 0x432   :  { %15536 = vmatprep.subr.mxu1 %v16738_v26  ;;  %v9055_v10 = vand.u32 4294901760, %v17807_v21 }
 0x434   :  { %15529 = vmatmul.mubr.f32.vlgmr.msra.gmra.mrb[26].mxu0 %v17624_v28  ;;  %15534 = vmatmul.mubr.f32.vlgmr.msra.gmra.mrb[20].mxu1 %v7684_v22  ;;  %v17783_v28 = vand.u32 4294901760, %v8520_v54  ;;  %v9056_v37 = vsub.f32 %v17807_v21, %v9055_v10 }
 0x435   :  { %15537 = vmatpush3.xpose.msra.mxu1 %v7695_v23  ;;  %15562 = vmatpush3.xpose.msra.mxu0 %v17718_v51 }
 0x436   :  { %15563 = vmatprep.mubr.msk.f32.mxu0 %vm16739_vm1, %v16738_v26  ;;  %15566 = vmatprep.subr.mxu0 %v16738_v26  ;;  %v8600_v24 = vsub.f32 %v8520_v54, %v17783_v28  ;;  %v9057_v61 = vand.u32 4294901760, %v9056_v37 }
 0x437   :  { %15538 = vmatprep.mubr.msk.f32.mxu1 %vm16739_vm1, %v16738_v26  ;;  %15541 = vmatprep.subr.mxu1 %v16738_v26 }
 0x438   :  { %15564 = vmatmul.mubr.f32.vlgmr.msra.gmra.mrb[28].mxu0 %v8138_v31  ;;  %v8601_v53 = vand.u32 4294901760, %v8600_v24 }
 0x439   :  { %15567 = vmatpush3.xpose.msra.mxu0 %v8149_v15  ;;  %15568 = vmatprep.mubr.msk.f32.mxu0 %vm16739_vm1, %v16738_v26 }
 0x43a   :  { %15571 = vmatprep.subr.mxu0 %v16738_v26  ;;  %v8602_v46 = vsub.f32 %v8600_v24, %v8601_v53 }
 0x43c   :  { %15539 = vmatmul.mubr.f32.vlgmr.msra.gmra.mrb[20].mxu1 %v17700_v13  ;;  %v8603_v42 = vand.u32 4294901760, %v8602_v46 }
 0x43d   :  { %15542 = vmatpush3.xpose.msra.mxu1 %v17716_v49  ;;  %15543 = vmatprep.mubr.msk.f32.mxu1 %vm16739_vm1, %v16738_v26  ;;  %v9508_v49 = vsub.f32 %v9428_v5, %v17862_v17 }
 0x43e   :  { %15546 = vmatprep.subr.mxu1 %v16738_v26 }
 0x440   :  { %15569 = vmatmul.mubr.f32.vlgmr.msra.gmra.mrb[28].mxu0 %v17709_v40 }
 0x441   :  { %15572 = vmatpush3.xpose.msra.mxu0 %v8146_v56  ;;  %15573 = vmatprep.mubr.msk.f32.mxu0 %vm16739_vm1, %v16738_v26 }
 0x442   :  { %15576 = vmatprep.subr.mxu0 %v16738_v26 }
 0x444   :  { %15544 = vmatmul.mubr.f32.vlgmr.msra.gmra.mrb[20].mxu1 %v17712_v47 }
 0x445   :  { %15547 = vmatpush3.xpose.msra.mxu1 %v17704_v33  ;;  %15548 = vmatprep.mubr.msk.f32.mxu1 %vm16739_vm1, %v16738_v26 }
 0x446   :  { %15551 = vmatprep.subr.mxu1 %v16738_v26 }
 0x448   :  { %15574 = vmatmul.mubr.f32.vlgmr.msra.gmra.mrb[28].mxu0 %v17725_v38 }
 0x449   :  { %15577 = vmatpush3.xpose.msra.mxu0 %v17718_v51  ;;  %15578 = vmatprep.mubr.msk.f32.mxu0 %vm16739_vm1, %v16738_v26 }
 0x44a   :  { %15581 = vmatprep.subr.mxu0 %v16738_v26 }
 0x44c   :  { %15549 = vmatmul.mubr.f32.vlgmr.msra.gmra.mrb[20].mxu1 %v7682_v50 }
 0x44d   :  { %15552 = vmatpush3.xpose.msra.mxu1 %v7693_v52  ;;  %15553 = vmatprep.mubr.msk.f32.mxu1 %vm16739_vm1, %v16738_v26 }
 0x44e   :  { %15556 = vmatprep.subr.mxu1 %v16738_v26 }
 0x450   :  { %15579 = vmatmul.mubr.f32.vlgmr.msra.gmra.mrb[28].mxu0 %v8136_v7  ;;  %v9509_v7 = vand.u32 4294901760, %v9508_v49 }
 0x451   :  { %15582 = vmatpush3.xpose.msra.mxu0 %v8147_v12  ;;  %15583 = vmatprep.mubr.msk.f32.mxu0 %vm16739_vm1, %v16738_v26 }
 0x452   :  { %15586 = vmatprep.subr.mxu0 %v16738_v26  ;;  %v9510_v18 = vsub.f32 %v9508_v49, %v9509_v7 }
 0x454   :  { %15554 = vmatmul.mubr.f32.vlgmr.msra.gmra.mrb[20].mxu1 %v17700_v13  ;;  %v9511_v31 = vand.u32 4294901760, %v9510_v18 }
 0x455   :  { %15557 = vmatpush3.xpose.msra.mxu1 %v17704_v33  ;;  %15558 = vmatprep.mubr.msk.f32.mxu1 %vm16739_vm1, %v16738_v26  ;;  %v9882_v33 = vsel %vm2133_vm2, %v9879_v6, 0 }
 0x456   :  { %15591 = vmatprep.subr.mxu1 %v16738_v26  ;;  %v17871_v47 = vand.u32 4294901760, %v9882_v33 }
 0x458   :  { %15584 = vmatmul.mubr.f32.vlgmr.msra.gmra.mrb[28].mxu0 %v17709_v40  ;;  %v9962_v56 = vsub.f32 %v9882_v33, %v17871_v47 }
 0x459   :  { %15587 = vmatpush3.xpose.msra.mxu0 %v17718_v51  ;;  %15588 = vmatprep.mubr.msk.f32.mxu0 %vm16739_vm1, %v16738_v26 }
 0x45a   :  { %15621 = vmatprep.subr.mxu0 %v16738_v26  ;;  %v9963_v12 = vand.u32 4294901760, %v9962_v56 }
 0x45c   :  { %15559 = vmatmul.mubr.f32.vlgmr.msra.gmra.mrb[20].mxu1 %v17700_v13  ;;  %v9880_v13 = vsel %vm2133_vm2, %v9877_v30, 0  ;;  %v9964_v55 = vsub.f32 %v9962_v56, %v9963_v12 }
 0x45d   :  { %15592 = vmatpush3.xpose.msra.mxu1 %v17783_v28  ;;  %15593 = vmatprep.mubr.msk.f32.mxu1 %vm16739_vm1, %v16738_v26  ;;  %v17867_v58 = vand.u32 4294901760, %v9880_v13 }
 0x45e   :  { %15596 = vmatprep.subr.mxu1 %v16738_v26  ;;  %v9965_v20 = vand.u32 4294901760, %v9964_v55 }
 0x45f   :  { %v9951_v50 = vsub.f32 %v9880_v13, %v17867_v58 }
 0x460   :  { %15589 = vmatmul.mubr.f32.vlgmr.msra.gmra.mrb[28].mxu0 %v17709_v40  ;;  %15594 = vmatmul.mubr.f32.vlgmr.msra.gmra.mrb[22].mxu1 %v8592_v35  ;;  %v9497_v40 = vsub.f32 %v9426_v2, %v17858_v3 }
 0x461   :  { %15597 = vmatpush3.xpose.msra.mxu1 %v8603_v42  ;;  %15622 = vmatpush3.xpose.msra.mxu0 %v17794_v0  ;;  %v9952_v8 = vand.u32 4294901760, %v9951_v50 }
 0x462   :  { %15623 = vmatprep.mubr.msk.f32.mxu0 %vm16739_vm1, %v16738_v26  ;;  %15626 = vmatprep.subr.mxu0 %v16738_v26  ;;  %v9498_v52 = vand.u32 4294901760, %v9497_v40 }
 0x463   :  { %15598 = vmatprep.mubr.msk.f32.mxu1 %vm16739_vm1, %v16738_v26  ;;  %15601 = vmatprep.subr.mxu1 %v16738_v26  ;;  %v9953_v22 = vsub.f32 %v9951_v50, %v9952_v8 }
 0x464   :  { %15624 = vmatmul.mubr.f32.vlgmr.msra.gmra.mrb[30].mxu0 %v9046_v44  ;;  %v9499_v11 = vsub.f32 %v9497_v40, %v9498_v52 }
 0x465   :  { %15627 = vmatpush3.xpose.msra.mxu0 %v9057_v61  ;;  %15628 = vmatprep.mubr.msk.f32.mxu0 %vm16739_vm1, %v16738_v26  ;;  %v9954_v15 = vand.u32 4294901760, %v9953_v22 }
 0x466   :  { %15631 = vmatprep.subr.mxu0 %v16738_v26  ;;  %v9500_v23 = vand.u32 4294901760, %v9499_v11 }
 0x468   :  { %15599 = vmatmul.mubr.f32.vlgmr.msra.gmra.mrb[22].mxu1 %v17779_v41 }
 0x469   :  { %15602 = vmatpush3.xpose.msra.mxu1 %v8600_v24  ;;  %15603 = vmatprep.mubr.msk.f32.mxu1 %vm16739_vm1, %v16738_v26 }
 0x46a   :  { %15606 = vmatprep.subr.mxu1 %v16738_v26 }
 0x46c   :  { %15629 = vmatmul.mubr.f32.vlgmr.msra.gmra.mrb[30].mxu0 %v17788_v59 }
 0x46d   :  { %15632 = vmatpush3.xpose.msra.mxu0 %v17807_v21  ;;  %15633 = vmatprep.mubr.msk.f32.mxu0 %vm16739_vm1, %v16738_v26 }
 0x46e   :  { %15636 = vmatprep.subr.mxu0 %v16738_v26 }
 0x470   :  { %15604 = vmatmul.mubr.f32.vlgmr.msra.gmra.mrb[22].mxu1 %v17791_v16 }
 0x471   :  { %15607 = vmatpush3.xpose.msra.mxu1 %v17783_v28  ;;  %15608 = vmatprep.mubr.msk.f32.mxu1 %vm16739_vm1, %v16738_v26 }
 0x472   :  { %15611 = vmatprep.subr.mxu1 %v16738_v26 }
 0x474   :  { %15634 = vmatmul.mubr.f32.vlgmr.msra.gmra.mrb[30].mxu0 %v17802_v45 }
 0x475   :  { %15637 = vmatpush3.xpose.msra.mxu0 %v17794_v0  ;;  %15638 = vmatprep.mubr.msk.f32.mxu0 %vm16739_vm1, %v16738_v26 }
 0x476   :  { %15641 = vmatprep.subr.mxu0 %v16738_v26 }
 0x478   :  { %15609 = vmatmul.mubr.f32.vlgmr.msra.gmra.mrb[22].mxu1 %v8590_v29 }
 0x479   :  { %15612 = vmatpush3.xpose.msra.mxu1 %v8601_v53  ;;  %15613 = vmatprep.mubr.msk.f32.mxu1 %vm16739_vm1, %v16738_v26 }
 0x47a   :  { %15616 = vmatprep.subr.mxu1 %v16738_v26 }
 0x47c   :  { %15639 = vmatmul.mubr.f32.vlgmr.msra.gmra.mrb[30].mxu0 %v9044_v57 }
 0x47d   :  { %15642 = vmatpush3.xpose.msra.mxu0 %v9055_v10  ;;  %15643 = vmatprep.mubr.msk.f32.mxu0 %vm16739_vm1, %v16738_v26 }
 0x47e   :  { %15646 = vmatprep.subr.mxu0 %v16738_v26 }
 0x47f   :  { %v17874_v51 = vpop.f32.mrb[14].mxu1 }
 0x480   :  { %v15380_v38 = vpop.f32.mrb[15].mxu1  ;;  %15614 = vmatmul.mubr.f32.vlgmr.msra.gmra.mrb[22].mxu1 %v17779_v41 }
 0x481   :  { %15617 = vmatpush3.xpose.msra.mxu1 %v17783_v28  ;;  %15618 = vmatprep.mubr.msk.f32.mxu1 %vm16739_vm1, %v16738_v26 }
 0x482   :  { %15651 = vmatprep.subr.mxu1 %v16738_v26 }
 0x484   :  { %15644 = vmatmul.mubr.f32.vlgmr.msra.gmra.mrb[30].mxu0 %v17788_v59 }
 0x485   :  { %15647 = vmatpush3.xpose.msra.mxu0 %v17794_v0  ;;  %15648 = vmatprep.mubr.msk.f32.mxu0 %vm16739_vm1, %v16738_v26 }
 0x486   :  { %15681 = vmatprep.subr.mxu0 %v16738_v26 }
 0x488   :  { %15619 = vmatmul.mubr.f32.vlgmr.msra.gmra.mrb[22].mxu1 %v17779_v41 }
 0x489   :  { %15652 = vmatpush3.xpose.msra.mxu1 %v17862_v17  ;;  %15653 = vmatprep.mubr.msk.f32.mxu1 %vm16739_vm1, %v16738_v26 }
 0x48a   :  { %15656 = vmatprep.subr.mxu1 %v16738_v26 }
 0x48c   :  { %15649 = vmatmul.mubr.f32.vlgmr.msra.gmra.mrb[30].mxu0 %v17788_v59  ;;  %15654 = vmatmul.mubr.f32.vlgmr.msra.gmra.mrb[24].mxu1 %v9500_v23 }
 0x48d   :  { %15657 = vmatpush3.xpose.msra.mxu1 %v9511_v31  ;;  %15682 = vmatpush3.xpose.msra.mxu0 %v17871_v47 }
 0x48e   :  { %15683 = vmatprep.mubr.msk.f32.mxu0 %vm16739_vm1, %v16738_v26  ;;  %15686 = vmatprep.subr.mxu0 %v16738_v26 }
 0x48f   :  { %15658 = vmatprep.mubr.msk.f32.mxu1 %vm16739_vm1, %v16738_v26  ;;  %15661 = vmatprep.subr.mxu1 %v16738_v26 }
 0x490   :  { %15684 = vmatmul.mubr.f32.vlgmr.msra.gmra.mrb[32].mxu0 %v9954_v15 }
 0x491   :  { %15687 = vmatpush3.xpose.msra.mxu0 %v9965_v20  ;;  %15688 = vmatprep.mubr.msk.f32.mxu0 %vm16739_vm1, %v16738_v26 }
 0x492   :  { %15691 = vmatprep.subr.mxu0 %v16738_v26 }
 0x494   :  { %15659 = vmatmul.mubr.f32.vlgmr.msra.gmra.mrb[24].mxu1 %v17858_v3 }
 0x495   :  { %15662 = vmatpush3.xpose.msra.mxu1 %v9508_v49  ;;  %15663 = vmatprep.mubr.msk.f32.mxu1 %vm16739_vm1, %v16738_v26 }
 0x496   :  { %15666 = vmatprep.subr.mxu1 %v16738_v26 }
 0x498   :  { %15689 = vmatmul.mubr.f32.vlgmr.msra.gmra.mrb[32].mxu0 %v17867_v58 }
 0x499   :  { %15692 = vmatpush3.xpose.msra.mxu0 %v9962_v56  ;;  %15693 = vmatprep.mubr.msk.f32.mxu0 %vm16739_vm1, %v16738_v26 }
 0x49a   :  { %15696 = vmatprep.subr.mxu0 %v16738_v26 }
 0x49c   :  { %15664 = vmatmul.mubr.f32.vlgmr.msra.gmra.mrb[24].mxu1 %v9497_v40 }
 0x49d   :  { %15667 = vmatpush3.xpose.msra.mxu1 %v17862_v17  ;;  %15668 = vmatprep.mubr.msk.f32.mxu1 %vm16739_vm1, %v16738_v26 }
 0x49e   :  { %15671 = vmatprep.subr.mxu1 %v16738_v26 }
 0x4a0   :  { %15694 = vmatmul.mubr.f32.vlgmr.msra.gmra.mrb[32].mxu0 %v9951_v50 }
 0x4a1   :  { %15697 = vmatpush3.xpose.msra.mxu0 %v17871_v47  ;;  %15698 = vmatprep.mubr.msk.f32.mxu0 %vm16739_vm1, %v16738_v26 }
 0x4a2   :  { %15701 = vmatprep.subr.mxu0 %v16738_v26 }
 0x4a4   :  { %15669 = vmatmul.mubr.f32.vlgmr.msra.gmra.mrb[24].mxu1 %v9498_v52 }
 0x4a5   :  { %15672 = vmatpush3.xpose.msra.mxu1 %v9509_v7  ;;  %15673 = vmatprep.mubr.msk.f32.mxu1 %vm16739_vm1, %v16738_v26 }
 0x4a6   :  { %15676 = vmatprep.subr.mxu1 %v16738_v26 }
 0x4a8   :  { %15699 = vmatmul.mubr.f32.vlgmr.msra.gmra.mrb[32].mxu0 %v9952_v8 }
 0x4a9   :  { %15702 = vmatpush3.xpose.msra.mxu0 %v9963_v12  ;;  %15703 = vmatprep.mubr.msk.f32.mxu0 %vm16739_vm1, %v16738_v26 }
 0x4aa   :  { %15706 = vmatprep.subr.mxu0 %v16738_v26 }
 0x4ab   :  { %v17926_v36 = vpop.f32.mrb[22].mxu0 }
 0x4ac   :  { %v15410_v4 = vpop.f32.mrb[23].mxu0  ;;  %15674 = vmatmul.mubr.f32.vlgmr.msra.gmra.mrb[24].mxu1 %v17858_v3 }
 0x4ad   :  { %15677 = vmatpush3.xpose.msra.mxu1 %v17862_v17  ;;  %15678 = vmatprep.mubr.msk.f32.mxu1 %vm16739_vm1, %v16738_v26 }
 0x4ae   :  { %15711 = vmatprep.subr.mxu1 %v16738_v26 }
 0x4b0   :  { %15704 = vmatmul.mubr.f32.vlgmr.msra.gmra.mrb[32].mxu0 %v17867_v58 }
 0x4b1   :  { %15707 = vmatpush3.xpose.msra.mxu0 %v17871_v47  ;;  %15708 = vmatprep.mubr.msk.f32.mxu0 %vm16739_vm1, %v16738_v26 }
 0x4b2   :  { %15741 = vmatprep.subr.mxu0 %v16738_v26 }
 0x4b4   :  { %15679 = vmatmul.mubr.f32.vlgmr.msra.gmra.mrb[24].mxu1 %v17858_v3 }
 0x4b5   :  { %15713 = vmatprep.mubr.msk.f32.mxu1 %vm16739_vm1, %v16738_v26 }
 0x4b8   :  { %15709 = vmatmul.mubr.f32.vlgmr.msra.gmra.mrb[32].mxu0 %v17867_v58 }
 0x4b9   :  { %15743 = vmatprep.mubr.msk.f32.mxu0 %vm16739_vm1, %v16738_v26 }
 0x4d7   :  { %v17944_v19 = vpop.f32.mrb[16].mxu1 }
 0x4d8   :  { %v15440_v54 = vpop.f32.mrb[17].mxu1 }
 0x4db   :  { %v17946_v25 = vpop.f32.mrb[24].mxu0 }
 0x4dc   :  { %v15470_v41 = vpop.f32.mrb[25].mxu0 }
 0x503   :  { %v17948_v9 = vpop.f32.mrb[18].mxu1 }
 0x504   :  { %v15500_v28 = vpop.f32.mrb[19].mxu1 }
 0x507   :  { %v17950_v27 = vpop.f32.mrb[26].mxu0 }
 0x508   :  { %v15530_v59 = vpop.f32.mrb[27].mxu0 }
 0x52f   :  { %v8056_v16 = vpop.f32.mrb[20].mxu1 }
 0x530   :  { %v15560_v0 = vpop.f32.mrb[21].mxu1  ;;  %v10330_v24 = vsel %vm2133_vm2, %v8056_v16, -inf }
 0x531   :  { %10331 = vmax.xlane.f32.xlu0 %v10330_v24 }
 0x533   :  { %v8510_v45 = vpop.f32.mrb[28].mxu0 }
 0x534   :  { %v15590_v29 = vpop.f32.mrb[29].mxu0  ;;  %v10333_v21 = vsel %vm2133_vm2, %v8510_v45, -inf }
 0x535   :  { %10334 = vmax.xlane.f32.xlu1 %v10333_v21 }
 0x55b   :  { %v8964_v53 = vpop.f32.mrb[22].mxu1 }
 0x55c   :  { %v15620_v57 = vpop.f32.mrb[23].mxu1  ;;  %v10336_v60 = vsel %vm2133_vm2, %v8964_v53, -inf }
 0x55d   :  { %10337 = vmax.xlane.f32.xlu0 %v10336_v60 }
 0x55f   :  { %v9418_v10 = vpop.f32.mrb[30].mxu0 }
 0x560   :  { %v15650_v46 = vpop.f32.mrb[31].mxu0  ;;  %v10339_v32 = vsel %vm2133_vm2, %v9418_v10, -inf }
 0x561   :  { %10340 = vmax.xlane.f32.xlu0 %v10339_v32 }
 0x587   :  { %v9872_v35 = vpop.f32.mrb[24].mxu1 }
 0x588   :  { %v15680_v37 = vpop.f32.mrb[25].mxu1  ;;  %v10342_v42 = vsel %vm2133_vm2, %v9872_v35, -inf }
 0x589   :  { %10343 = vmax.xlane.f32.xlu0 %v10342_v42 }
 0x58b   :  { %v10326_v44 = vpop.f32.mrb[32].mxu0 }
 0x58c   :  { %v15710_v61 = vpop.f32.mrb[33].mxu0  ;;  %v10345_v62 = vsel %vm2133_vm2, %v10326_v44, -inf }
 0x58d   :  { %10346 = vmax.xlane.f32.xlu1 %v10345_v62 }
 0x5be   :  { %v10332_v30 = vpop.xlane.xlu0 %10331 }
 0x5bf   :  { %v10348_v63 = vsub.f32 %v8056_v16, %v10332_v30 }
 0x5c1   :  { %v10354_v2 = vmul.f32 1.442695, %v10348_v63 }
 0x5c2   :  { %v10335_v5 = vpop.xlane.xlu1 %10334 }
 0x5c3   :  { %16696 = vpow2.f32 %v10354_v2  ;;  %v10349_v6 = vsub.f32 %v8510_v45, %v10335_v5 }
 0x5c5   :  { %v10356_v3 = vmul.f32 1.442695, %v10349_v6 }
 0x5c7   :  { %16698 = vpow2.f32 %v10356_v3 }
 0x5cd   :  { %v16697_v13 = vpop.eup %16696 }
 0x5ce   :  { %v10366_v17 = vsel %vm2133_vm2, %v16697_v13, 0.0 }
 0x5cf   :  { %10367 = vadd.xlane.f32.xlu0 %v10366_v17 }
 0x5d1   :  { %v16699_v33 = vpop.eup %16698 }
 0x5d2   :  { %v10369_v58 = vsel %vm2133_vm2, %v16699_v33, 0.0 }
 0x5d3   :  { %10370 = vadd.xlane.f32.xlu1 %v10369_v58 }
 0x5e4   :  { %10850 = vrot.lane.b32.xlu1 %v17390_v14, %s16740_s2 }
 0x5e5   :  { %10397 = vrot.lane.b32.xlu0 %v17392_v1, %s16740_s2 }
 0x5ea   :  { %v10338_v40 = vpop.xlane.xlu0 %10337 }
 0x5eb   :  { %v10350_v38 = vsub.f32 %v8964_v53, %v10338_v40 }
 0x5ed   :  { %v10358_v52 = vmul.f32 1.442695, %v10350_v38 }
 0x5ee   :  { %v10341_v47 = vpop.xlane.xlu0 %10340 }
 0x5ef   :  { %v10351_v49 = vsub.f32 %v9418_v10, %v10341_v47 }
 0x5f1   :  { %v10360_v50 = vmul.f32 1.442695, %v10351_v49 }
 0x5f3   :  { %16700 = vpow2.f32 %v10360_v50 }
 0x5f4   :  { %16702 = vpow2.f32 %v10358_v52 }
 0x5fd   :  { %v17964_v56 = vpop.eup %16700 }
 0x5fe   :  { %v10375_v7 = vsel %vm2133_vm2, %v17964_v56, 0.0  ;;  %v17968_v8 = vpop.eup %16702 }
 0x5ff   :  { %v10372_v14 = vsel %vm2133_vm2, %v17968_v8, 0.0 }
 0x604   :  { %10376 = vadd.xlane.f32.xlu0 %v10375_v7 }
 0x608   :  { %10373 = vadd.xlane.f32.xlu1 %v10372_v14 }
 0x616   :  { %v10344_v12 = vpop.xlane.xlu0 %10343 }
 0x617   :  { %v10352_v18 = vsub.f32 %v9872_v35, %v10344_v12 }
 0x619   :  { %11756 = vrot.lane.b32.xlu1 %v17399_v34, %s16740_s2  ;;  %v10362_v23 = vmul.f32 1.442695, %v10352_v18 }
 0x61a   :  { %11303 = vrot.lane.b32.xlu0 %v17402_v39, %s16740_s2  ;;  %v10347_v1 = vpop.xlane.xlu1 %10346 }
 0x61b   :  { %v10353_v11 = vsub.f32 %v10326_v44, %v10347_v1 }
 0x61d   :  { %v10364_v22 = vmul.f32 1.442695, %v10353_v11 }
 0x61f   :  { %16704 = vpow2.f32 %v10364_v22 }
 0x620   :  { %16706 = vpow2.f32 %v10362_v23 }
 0x629   :  { %v17976_v55 = vpop.eup %16704 }
 0x62a   :  { %v10381_v31 = vsel %vm2133_vm2, %v17976_v55, 0.0  ;;  %v17980_v15 = vpop.eup %16706 }
 0x62b   :  { %v10378_v34 = vsel %vm2133_vm2, %v17980_v15, 0.0 }
 0x639   :  { %10382 = vadd.xlane.f32.xlu0 %v10381_v31 }
 0x63d   :  { %10379 = vadd.xlane.f32.xlu1 %v10378_v34 }
 0x64e   :  { %12662 = vrot.lane.b32.xlu1 %v17408_v43, %s16740_s2 }
 0x64f   :  { %12209 = vrot.lane.b32.xlu0 %v17410_v48, %s16740_s2 }
 0x65c   :  { %v10368_v39 = vpop.xlane.xlu0 %10367 }
 0x65d   :  { %16708 = vrcp.f32 %v10368_v39 }
 0x660   :  { %v10371_v20 = vpop.xlane.xlu1 %10370  ;;  %v10398_v4 = vpop.permute.xlu0 %10397 }
 0x661   :  { %16710 = vrcp.f32 %v10371_v20  ;;  %v17988_v54 = vand.u32 4294901760, %v10398_v4 }
 0x663   :  { %15712 = vmatpush3.msra.mxu1 %v17988_v54  ;;  %v10481_v48 = vsub.f32 %v10398_v4, %v17988_v54 }
 0x664   :  { %v10851_v41 = vpop.permute.xlu1 %10850  ;;  %15716 = vmatprep.subr.mxu1 %v16738_v26 }
 0x665   :  { %v17992_v28 = vand.u32 4294901760, %v10851_v41  ;;  %v10482_v29 = vand.u32 4294901760, %v10481_v48 }
 0x667   :  { %v16709_v59 = vpop.eup %16708  ;;  %15742 = vmatpush3.msra.mxu0 %v17992_v28  ;;  %v10934_v21 = vsub.f32 %v10851_v41, %v17992_v28  ;;  %v10483_v46 = vsub.f32 %v10481_v48, %v10482_v29 }
 0x668   :  { %v10385_v43 = vmul.f32 %v16709_v59, %v16697_v13  ;;  %15746 = vmatprep.subr.mxu0 %v16738_v26 }
 0x669   :  { %v10935_v32 = vand.u32 4294901760, %v10934_v21  ;;  %v10484_v61 = vand.u32 4294901760, %v10483_v46 }
 0x66a   :  { %v10401_v16 = vsel %vm2133_vm2, %v10385_v43, 0 }
 0x66b   :  { %v16711_v0 = vpop.eup %16710  ;;  %v17998_v24 = vand.u32 4294901760, %v10401_v16  ;;  %v10936_v62 = vsub.f32 %v10934_v21, %v10935_v32 }
 0x66c   :  { %v10387_v45 = vmul.f32 %v16711_v0, %v16699_v33 }
 0x66d   :  { %v10470_v53 = vsub.f32 %v10401_v16, %v17998_v24  ;;  %v10937_v2 = vand.u32 4294901760, %v10936_v62 }
 0x66e   :  { %v10854_v57 = vsel %vm2133_vm2, %v10387_v45, 0 }
 0x66f   :  { %v10471_v60 = vand.u32 4294901760, %v10470_v53  ;;  %v18003_v10 = vand.u32 4294901760, %v10854_v57 }
 0x671   :  { %v10472_v35 = vsub.f32 %v10470_v53, %v10471_v60  ;;  %v10923_v37 = vsub.f32 %v10854_v57, %v18003_v10 }
 0x673   :  { %v10473_v42 = vand.u32 4294901760, %v10472_v35  ;;  %v10924_v44 = vand.u32 4294901760, %v10923_v37 }
 0x675   :  { %15714 = vmatmul.mubr.f32.vlgmr.msra.gmra.mrb[26].mxu1 %v10473_v42  ;;  %v10925_v30 = vsub.f32 %v10923_v37, %v10924_v44 }
 0x676   :  { %15717 = vmatpush3.msra.mxu1 %v10484_v61  ;;  %15718 = vmatprep.mubr.msk.f32.mxu1 %vm16739_vm1, %v16738_v26 }
 0x677   :  { %v10926_v63 = vand.u32 4294901760, %v10925_v30  ;;  %15721 = vmatprep.subr.mxu1 %v16738_v26 }
 0x679   :  { %15744 = vmatmul.mubr.f32.vlgmr.msra.gmra.mrb[34].mxu0 %v10926_v63 }
 0x67a   :  { %15747 = vmatpush3.msra.mxu0 %v10937_v2  ;;  %15748 = vmatprep.mubr.msk.f32.mxu0 %vm16739_vm1, %v16738_v26 }
 0x67b   :  { %15751 = vmatprep.subr.mxu0 %v16738_v26 }
 0x67d   :  { %15719 = vmatmul.mubr.f32.vlgmr.msra.gmra.mrb[26].mxu1 %v17998_v24 }
 0x67e   :  { %15722 = vmatpush3.msra.mxu1 %v10481_v48  ;;  %15723 = vmatprep.mubr.msk.f32.mxu1 %vm16739_vm1, %v16738_v26 }
 0x67f   :  { %15726 = vmatprep.subr.mxu1 %v16738_v26 }
 0x681   :  { %15749 = vmatmul.mubr.f32.vlgmr.msra.gmra.mrb[34].mxu0 %v18003_v10 }
 0x682   :  { %15752 = vmatpush3.msra.mxu0 %v10934_v21  ;;  %15753 = vmatprep.mubr.msk.f32.mxu0 %vm16739_vm1, %v16738_v26 }
 0x683   :  { %15756 = vmatprep.subr.mxu0 %v16738_v26 }
 0x685   :  { %15724 = vmatmul.mubr.f32.vlgmr.msra.gmra.mrb[26].mxu1 %v10470_v53 }
 0x686   :  { %15727 = vmatpush3.msra.mxu1 %v17988_v54  ;;  %15728 = vmatprep.mubr.msk.f32.mxu1 %vm16739_vm1, %v16738_v26 }
 0x687   :  { %15731 = vmatprep.subr.mxu1 %v16738_v26 }
 0x689   :  { %15754 = vmatmul.mubr.f32.vlgmr.msra.gmra.mrb[34].mxu0 %v10923_v37 }
 0x68a   :  { %15757 = vmatpush3.msra.mxu0 %v17992_v28  ;;  %15758 = vmatprep.mubr.msk.f32.mxu0 %vm16739_vm1, %v16738_v26 }
 0x68b   :  { %15761 = vmatprep.subr.mxu0 %v16738_v26 }
 0x68d   :  { %15729 = vmatmul.mubr.f32.vlgmr.msra.gmra.mrb[26].mxu1 %v10471_v60 }
 0x68e   :  { %15732 = vmatpush3.msra.mxu1 %v10482_v29  ;;  %15733 = vmatprep.mubr.msk.f32.mxu1 %vm16739_vm1, %v16738_v26 }
 0x68f   :  { %15736 = vmatprep.subr.mxu1 %v16738_v26 }
 0x691   :  { %15759 = vmatmul.mubr.f32.vlgmr.msra.gmra.mrb[34].mxu0 %v10924_v44  ;;  %v10377_v5 = vpop.xlane.xlu0 %10376 }
 0x692   :  { %15762 = vmatpush3.msra.mxu0 %v10935_v32  ;;  %16712 = vrcp.f32 %v10377_v5  ;;  %15763 = vmatprep.mubr.msk.f32.mxu0 %vm16739_vm1, %v16738_v26 }
 0x693   :  { %15766 = vmatprep.subr.mxu0 %v16738_v26 }
 0x695   :  { %v10374_v6 = vpop.xlane.xlu1 %10373  ;;  %15734 = vmatmul.mubr.f32.vlgmr.msra.gmra.mrb[26].mxu1 %v17998_v24  ;;  %v11304_v3 = vpop.permute.xlu0 %11303 }
 0x696   :  { %16714 = vrcp.f32 %v10374_v6  ;;  %15737 = vmatpush3.msra.mxu1 %v17988_v54  ;;  %15738 = vmatprep.mubr.msk.f32.mxu1 %vm16739_vm1, %v16738_v26  ;;  %v18046_v58 = vand.u32 4294901760, %v11304_v3 }
 0x697   :  { %15771 = vmatprep.subr.mxu1 %v16738_v26 }
 0x699   :  { %15764 = vmatmul.mubr.f32.vlgmr.msra.gmra.mrb[34].mxu0 %v18003_v10  ;;  %v11757_v13 = vpop.permute.xlu1 %11756 }
 0x69a   :  { %15767 = vmatpush3.msra.mxu0 %v17992_v28  ;;  %v18041_v17 = vand.u32 4294901760, %v11757_v13  ;;  %15768 = vmatprep.mubr.msk.f32.mxu0 %vm16739_vm1, %v16738_v26 }
 0x69b   :  { %15801 = vmatprep.subr.mxu0 %v16738_v26 }
 0x69c   :  { %v16713_v33 = vpop.eup %16712  ;;  %v11840_v47 = vsub.f32 %v11757_v13, %v18041_v17 }
 0x69d   :  { %v10391_v40 = vmul.f32 %v16713_v33, %v17964_v56  ;;  %15739 = vmatmul.mubr.f32.vlgmr.msra.gmra.mrb[26].mxu1 %v17998_v24  ;;  %v11387_v56 = vsub.f32 %v11304_v3, %v18046_v58 }
 0x69e   :  { %15772 = vmatpush3.msra.mxu1 %v18046_v58  ;;  %15773 = vmatprep.mubr.msk.f32.mxu1 %vm16739_vm1, %v16738_v26  ;;  %v11841_v7 = vand.u32 4294901760, %v11840_v47 }
 0x69f   :  { %v11760_v49 = vsel %vm2133_vm2, %v10391_v40, 0  ;;  %15776 = vmatprep.subr.mxu1 %v16738_v26 }
 0x6a0   :  { %v16715_v38 = vpop.eup %16714  ;;  %v18056_v50 = vand.u32 4294901760, %v11760_v49  ;;  %v11842_v18 = vsub.f32 %v11840_v47, %v11841_v7 }
 0x6a1   :  { %v10389_v52 = vmul.f32 %v16715_v38, %v17968_v8  ;;  %15769 = vmatmul.mubr.f32.vlgmr.msra.gmra.mrb[34].mxu0 %v18003_v10  ;;  %v11388_v8 = vand.u32 4294901760, %v11387_v56 }
 0x6a2   :  { %15802 = vmatpush3.msra.mxu0 %v18041_v17  ;;  %15803 = vmatprep.mubr.msk.f32.mxu0 %vm16739_vm1, %v16738_v26  ;;  %v11829_v14 = vsub.f32 %v11760_v49, %v18056_v50  ;;  %v11843_v20 = vand.u32 4294901760, %v11842_v18 }
 0x6a3   :  { %15806 = vmatprep.subr.mxu0 %v16738_v26  ;;  %v11307_v1 = vsel %vm2133_vm2, %v10389_v52, 0  ;;  %v11389_v39 = vsub.f32 %v11387_v56, %v11388_v8 }
 0x6a4   :  { %v11830_v11 = vand.u32 4294901760, %v11829_v14  ;;  %v18067_v12 = vand.u32 4294901760, %v11307_v1 }
 0x6a5   :  { %v11390_v41 = vand.u32 4294901760, %v11389_v39 }
 0x6a6   :  { %v11831_v22 = vsub.f32 %v11829_v14, %v11830_v11  ;;  %v11376_v23 = vsub.f32 %v11307_v1, %v18067_v12  ;;  %v13319_v1 = vld [vmem:[%s18606_s6] sm:$0xff] }
 0x6a8   :  { %v11832_v31 = vand.u32 4294901760, %v11831_v22  ;;  %v11377_v34 = vand.u32 4294901760, %v11376_v23  ;;  %v13322_v22 = vld [vmem:[%s18606_s6 + $0x18] sm:$0xff] }
 0x6a9   :  { %v13345_v39 = vand.u32 4294901760, %v13322_v22 }
 0x6aa   :  { %15804 = vmatmul.mubr.f32.vlgmr.msra.gmra.mrb[36].mxu0 %v11832_v31  ;;  %v11378_v4 = vsub.f32 %v11376_v23, %v11377_v34  ;;  %v13323_v31 = vld [vmem:[%s18606_s6 + $0x20] sm:$0xff] }
 0x6ab   :  { %15807 = vmatpush3.msra.mxu0 %v11843_v20  ;;  %15808 = vmatprep.mubr.msk.f32.mxu0 %vm16739_vm1, %v16738_v26  ;;  %v13348_v20 = vand.u32 4294901760, %v13323_v31 }
 0x6ac   :  { %v11379_v54 = vand.u32 4294901760, %v11378_v4  ;;  %15811 = vmatprep.subr.mxu0 %v16738_v26 }
 0x6ae   :  { %15774 = vmatmul.mubr.f32.vlgmr.msra.gmra.mrb[28].mxu1 %v11379_v54 }
 0x6af   :  { %15777 = vmatpush3.msra.mxu1 %v11390_v41  ;;  %15778 = vmatprep.mubr.msk.f32.mxu1 %vm16739_vm1, %v16738_v26 }
 0x6b0   :  { %15781 = vmatprep.subr.mxu1 %v16738_v26 }
 0x6b2   :  { %15809 = vmatmul.mubr.f32.vlgmr.msra.gmra.mrb[36].mxu0 %v18056_v50 }
 0x6b3   :  { %15812 = vmatpush3.msra.mxu0 %v11840_v47  ;;  %15813 = vmatprep.mubr.msk.f32.mxu0 %vm16739_vm1, %v16738_v26 }
 0x6b4   :  { %15816 = vmatprep.subr.mxu0 %v16738_v26 }
 0x6b6   :  { %15779 = vmatmul.mubr.f32.vlgmr.msra.gmra.mrb[28].mxu1 %v18067_v12 }
 0x6b7   :  { %15782 = vmatpush3.msra.mxu1 %v11387_v56  ;;  %15783 = vmatprep.mubr.msk.f32.mxu1 %vm16739_vm1, %v16738_v26 }
 0x6b8   :  { %15786 = vmatprep.subr.mxu1 %v16738_v26 }
 0x6ba   :  { %15814 = vmatmul.mubr.f32.vlgmr.msra.gmra.mrb[36].mxu0 %v11829_v14  ;;  %v16742_v14 = vmov 0.0|0.0  }
 0x6bb   :  { %15817 = vmatpush3.msra.mxu0 %v18041_v17  ;;  %15818 = vmatprep.mubr.msk.f32.mxu0 %vm16739_vm1, %v16738_v26 }
 0x6bc   :  { %15821 = vmatprep.subr.mxu0 %v16738_v26 }
 0x6be   :  { %15784 = vmatmul.mubr.f32.vlgmr.msra.gmra.mrb[28].mxu1 %v11376_v23 }
 0x6bf   :  { %15787 = vmatpush3.msra.mxu1 %v18046_v58  ;;  %15788 = vmatprep.mubr.msk.f32.mxu1 %vm16739_vm1, %v16738_v26 }
 0x6c0   :  { %15791 = vmatprep.subr.mxu1 %v16738_v26 }
 0x6c2   :  { %15819 = vmatmul.mubr.f32.vlgmr.msra.gmra.mrb[36].mxu0 %v11830_v11  ;;  %v13320_v11 = vld [vmem:[%s18606_s6 + $0x8] sm:$0xff] }
 0x6c3   :  { %15822 = vmatpush3.msra.mxu0 %v11841_v7  ;;  %15823 = vmatprep.mubr.msk.f32.mxu0 %vm16739_vm1, %v16738_v26  ;;  %v13339_v18 = vand.u32 4294901760, %v13320_v11 }
 0x6c4   :  { %15826 = vmatprep.subr.mxu0 %v16738_v26 }
 0x6c5   :  { %v18186_v41 = vsub.f32 %v13320_v11, %v13339_v18 }
 0x6c6   :  { %15789 = vmatmul.mubr.f32.vlgmr.msra.gmra.mrb[28].mxu1 %v11377_v34  ;;  %v10383_v28 = vpop.xlane.xlu0 %10382  ;;  %v13324_v34 = vld [vmem:[%s18606_s6 + $0x28] sm:$0xff] }
 0x6c7   :  { %15792 = vmatpush3.msra.mxu1 %v11388_v8  ;;  %16716 = vrcp.f32 %v10383_v28  ;;  %15793 = vmatprep.mubr.msk.f32.mxu1 %vm16739_vm1, %v16738_v26  ;;  %v13336_v8 = vand.u32 4294901760, %v13319_v1  ;;  %v13351_v4 = vand.u32 4294901760, %v13324_v34 }
 0x6c8   :  { %15796 = vmatprep.subr.mxu1 %v16738_v26 }
 0x6c9   :  { %v18184_v54 = vsub.f32 %v13319_v1, %v13336_v8  ;;  %v13328_v1 = vld [vmem:[%s18606_s6 + $0x48] sm:$0xff] }
 0x6ca   :  { %v10380_v59 = vpop.xlane.xlu1 %10379  ;;  %15824 = vmatmul.mubr.f32.vlgmr.msra.gmra.mrb[36].mxu0 %v18056_v50  ;;  %v12210_v48 = vpop.permute.xlu0 %12209 }
 0x6cb   :  { %16718 = vrcp.f32 %v10380_v59  ;;  %15827 = vmatpush3.msra.mxu0 %v18041_v17  ;;  %15828 = vmatprep.mubr.msk.f32.mxu0 %vm16739_vm1, %v16738_v26  ;;  %v18111_v45 = vand.u32 4294901760, %v12210_v48  ;;  %v18190_v59 = vpack.c.bf16 %v13339_v18, %v13336_v8  ;;  %v13363_v8 = vand.u32 4294901760, %v13328_v1 }
 0x6cc   :  { %15861 = vmatprep.subr.mxu0 %v16738_v26 }
 0x6ce   :  { %v12663_v43 = vpop.permute.xlu1 %12662  ;;  %15794 = vmatmul.mubr.f32.vlgmr.msra.gmra.mrb[28].mxu1 %v18067_v12 }
 0x6cf   :  { %v18104_v16 = vand.u32 4294901760, %v12663_v43  ;;  %15797 = vmatpush3.msra.mxu1 %v18046_v58  ;;  %15798 = vmatprep.mubr.msk.f32.mxu1 %vm16739_vm1, %v16738_v26 }
 0x6d0   :  { %15831 = vmatprep.subr.mxu1 %v16738_v26 }
 0x6d1   :  { %v16717_v0 = vpop.eup %16716  ;;  %v12746_v29 = vsub.f32 %v12663_v43, %v18104_v16  ;;  %v18192_v43 = vsub.f32 %v13322_v22, %v13345_v39  ;;  %v18268_v22 = vsub.f32 %v13328_v1, %v13363_v8 }
 0x6d2   :  { %v10395_v24 = vmul.f32 %v16717_v0, %v17976_v55  ;;  %15829 = vmatmul.mubr.f32.vlgmr.msra.gmra.mrb[36].mxu0 %v18056_v50  ;;  %v12293_v55 = vsub.f32 %v12210_v48, %v18111_v45  ;;  %v18197_v48 = vld [vmem:[%s18606_s6 + $0x30] sm:$0xff]  ;;  %v16222_v0 = vpack.c.bf16 %v18186_v41, %v18184_v54 }
 0x6d3   :  { %15862 = vmatpush3.msra.mxu0 %v18104_v16  ;;  %15863 = vmatprep.mubr.msk.f32.mxu0 %vm16739_vm1, %v16738_v26  ;;  %v12747_v10 = vand.u32 4294901760, %v12746_v29 }
 0x6d4   :  { %15866 = vmatprep.subr.mxu0 %v16738_v26  ;;  %v12666_v21 = vsel %vm2133_vm2, %v10395_v24, 0  ;;  %v12294_v42 = vand.u32 4294901760, %v12293_v55 }
 0x6d5   :  { %v16719_v53 = vpop.eup %16718  ;;  %v12734_v57 = vand.u32 4294901760, %v12666_v21  ;;  %v12748_v44 = vsub.f32 %v12746_v29, %v12747_v10 }
 0x6d6   :  { %v10393_v60 = vmul.f32 %v16719_v53, %v17980_v15  ;;  %15799 = vmatmul.mubr.f32.vlgmr.msra.gmra.mrb[28].mxu1 %v18067_v12  ;;  %v12295_v63 = vsub.f32 %v12293_v55, %v12294_v42  ;;  %v13321_v12 = vld [vmem:[%s18606_s6 + $0x10] sm:$0xff]  ;;  %v13354_v53 = vand.u32 4294901760, %v18197_v48 }
 0x6d7   :  { %15832 = vmatpush3.msra.mxu1 %v18111_v45  ;;  %v12735_v46 = vsub.f32 %v12666_v21, %v12734_v57  ;;  %15833 = vmatprep.mubr.msk.f32.mxu1 %vm16739_vm1, %v16738_v26  ;;  %v12749_v2 = vand.u32 4294901760, %v12748_v44  ;;  %v13342_v23 = vand.u32 4294901760, %v13321_v12  ;;  %v18214_v21 = vsub.f32 %v13324_v34, %v13351_v4  ;;  %v13330_v34 = vld [vmem:[%s18606_s6 + $0x58] sm:$0xff] }
 0x6d8   :  { %15836 = vmatprep.subr.mxu1 %v16738_v26  ;;  %v12213_v32 = vsel %vm2133_vm2, %v10393_v60, 0  ;;  %v12296_v3 = vand.u32 4294901760, %v12295_v63  ;;  %v18220_v60 = vpack.c.bf16 %v13351_v4, %v13348_v20 }
 0x6d9   :  { %v12736_v35 = vand.u32 4294901760, %v12735_v46  ;;  %v12281_v37 = vand.u32 4294901760, %v12213_v32  ;;  %v18188_v28 = vsub.f32 %v13321_v12, %v13342_v23  ;;  %v18207_v24 = vpack.c.bf16 %v13345_v39, %v13342_v23 }
 0x6db   :  { %v12737_v15 = vsub.f32 %v12735_v46, %v12736_v35  ;;  %v12282_v61 = vsub.f32 %v12213_v32, %v12281_v37 }
 0x6dd   :  { %v12738_v62 = vand.u32 4294901760, %v12737_v15  ;;  %v12283_v30 = vand.u32 4294901760, %v12282_v61  ;;  %v13149_v15 = vlaneseq }
 0x6df   :  { %15864 = vmatmul.mubr.f32.vlgmr.msra.gmra.mrb[38].mxu0 %v12738_v62  ;;  %v12284_v5 = vsub.f32 %v12282_v61, %v12283_v30  ;;  %v13150_v62 = vshrl.u32 %v13149_v15, 7 }
 0x6e0   :  { %15867 = vmatpush3.msra.mxu0 %v12749_v2  ;;  %15868 = vmatprep.mubr.msk.f32.mxu0 %vm16739_vm1, %v16738_v26 }
 0x6e1   :  { %v12285_v6 = vand.u32 4294901760, %v12284_v5  ;;  %15871 = vmatprep.subr.mxu0 %v16738_v26 }
 0x6e3   :  { %15834 = vmatmul.mubr.f32.vlgmr.msra.gmra.mrb[30].mxu1 %v12285_v6 }
 0x6e4   :  { %15837 = vmatpush3.msra.mxu1 %v12296_v3  ;;  %15838 = vmatprep.mubr.msk.f32.mxu1 %vm16739_vm1, %v16738_v26 }
 0x6e5   :  { %15841 = vmatprep.subr.mxu1 %v16738_v26 }
 0x6e7   :  { %15869 = vmatmul.mubr.f32.vlgmr.msra.gmra.mrb[38].mxu0 %v12734_v57 }
 0x6e8   :  { %15872 = vmatpush3.msra.mxu0 %v12746_v29  ;;  %15873 = vmatprep.mubr.msk.f32.mxu0 %vm16739_vm1, %v16738_v26  ;;  %v16225_v29 = vpack.c.bf16 %v18192_v43, %v18188_v28 }
 0x6e9   :  { %15876 = vmatprep.subr.mxu0 %v16738_v26 }
 0x6eb   :  { %15839 = vmatmul.mubr.f32.vlgmr.msra.gmra.mrb[30].mxu1 %v12281_v37 }
 0x6ec   :  { %15842 = vmatpush3.msra.mxu1 %v12293_v55  ;;  %15843 = vmatprep.mubr.msk.f32.mxu1 %vm16739_vm1, %v16738_v26 }
 0x6ed   :  { %15846 = vmatprep.subr.mxu1 %v16738_v26 }
 0x6ef   :  { %15874 = vmatmul.mubr.f32.vlgmr.msra.gmra.mrb[38].mxu0 %v12735_v46 }
 0x6f0   :  { %15877 = vmatpush3.msra.mxu0 %v18104_v16  ;;  %15878 = vmatprep.mubr.msk.f32.mxu0 %vm16739_vm1, %v16738_v26 }
 0x6f1   :  { %15881 = vmatprep.subr.mxu0 %v16738_v26 }
 0x6f3   :  { %15844 = vmatmul.mubr.f32.vlgmr.msra.gmra.mrb[30].mxu1 %v12282_v61 }
 0x6f4   :  { %15847 = vmatpush3.msra.mxu1 %v18111_v45  ;;  %15848 = vmatprep.mubr.msk.f32.mxu1 %vm16739_vm1, %v16738_v26 }
 0x6f5   :  { %15851 = vmatprep.subr.mxu1 %v16738_v26 }
 0x6f7   :  { %15879 = vmatmul.mubr.f32.vlgmr.msra.gmra.mrb[38].mxu0 %v12736_v35 }
 0x6f8   :  { %15882 = vmatpush3.msra.mxu0 %v12747_v10  ;;  %15883 = vmatprep.mubr.msk.f32.mxu0 %vm16739_vm1, %v16738_v26  ;;  %v18226_v10 = vsub.f32 %v18197_v48, %v13354_v53 }
 0x6f9   :  { %15886 = vmatprep.subr.mxu0 %v16738_v26 }
 0x6fb   :  { %15849 = vmatmul.mubr.f32.vlgmr.msra.gmra.mrb[30].mxu1 %v12283_v30 }
 0x6fc   :  { %15852 = vmatpush3.msra.mxu1 %v12294_v42  ;;  %15853 = vmatprep.mubr.msk.f32.mxu1 %vm16739_vm1, %v16738_v26  ;;  %v16743_v42 = vmov 1983009808  }
 0x6fd   :  { %15856 = vmatprep.subr.mxu1 %v16738_v26  ;;  %v13147_v44 = vunpack.c.l.s4 %v16743_v42 }
 0x6ff   :  { %15884 = vmatmul.mubr.f32.vlgmr.msra.gmra.mrb[38].mxu0 %v12734_v57  ;;  %v13148_v61 = vunpack.c.0.s8 %v13147_v44 }
 0x700   :  { %15887 = vmatpush3.msra.mxu0 %v18104_v16  ;;  %15888 = vmatprep.mubr.msk.f32.mxu0 %vm16739_vm1, %v16738_v26  ;;  %v18202_v16 = vld [vmem:[%s18606_s6 + $0x38] sm:$0xff] }
 0x701   :  { %16173 = vmatprep.subr.bf16.mxu0 %v16742_v14  ;;  %v18242_v3 = vsub.s32 %v13148_v61, %v13150_v62 }
 0x703   :  { %15854 = vmatmul.mubr.f32.vlgmr.msra.gmra.mrb[30].mxu1 %v12281_v37 }
 0x704   :  { %15857 = vmatpush3.msra.mxu1 %v18111_v45  ;;  %15858 = vmatprep.mubr.msk.f32.mxu1 %vm16739_vm1, %v16738_v26  ;;  %v18209_v45 = vsub.f32 %v13323_v31, %v13348_v20  ;;  %v13329_v31 = vld [vmem:[%s18606_s6 + $0x50] sm:$0xff] }
 0x705   :  { %16221 = vmatprep.subr.bf16.mxu1 %v16742_v14 }
 0x706   :  { %v16228_v55 = vpack.c.bf16 %v18214_v21, %v18209_v45 }
 0x707   :  { %15889 = vmatmul.mubr.f32.vlgmr.msra.gmra.mrb[38].mxu0 %v12734_v57  ;;  %v13357_v57 = vand.u32 4294901760, %v18202_v16 }
 0x708   :  { %15923 = vmatprep.mubr.msk.f32.mxu0 %vm16739_vm1, %v16738_v26  ;;  %16175 = vmatpush3.bf16.msra.mxu0 %v18190_v59 }
 0x709   :  { %16176 = vmatprep.subr.bf16.mxu0 %v16742_v14  ;;  %v18229_v46 = vsub.f32 %v18202_v16, %v13357_v57  ;;  %v18282_v48 = vpack.c.bf16 %v13357_v57, %v13354_v53  ;;  %v13366_v16 = vand.u32 4294901760, %v13329_v31  ;;  %v13332_v53 = vld [vmem:[%s18606_s6 + $0x68] sm:$0xff] }
 0x70b   :  { %15859 = vmatmul.mubr.f32.vlgmr.msra.gmra.mrb[30].mxu1 %v12281_v37  ;;  %v16231_v32 = vpack.c.bf16 %v18229_v46, %v18226_v10 }
 0x70c   :  { %15993 = vmatprep.mubr.msk.f32.mxu1 %vm16739_vm1, %v16738_v26  ;;  %16223 = vmatpush3.bf16.msra.mxu1 %v16222_v0  ;;  %v13369_v0 = vand.u32 4294901760, %v13330_v34 }
 0x70d   :  { %16224 = vmatprep.subr.bf16.mxu1 %v16742_v14  ;;  %16178 = vmatpush3.bf16.msra.mxu0 %v18207_v24 }
 0x70e   :  { %16179 = vmatprep.subr.bf16.mxu0 %v16742_v14 }
 0x710   :  { %16226 = vmatpush3.bf16.msra.mxu1 %v16225_v29 }
 0x711   :  { %16227 = vmatprep.subr.bf16.mxu1 %v16742_v14  ;;  %16181 = vmatpush3.bf16.msra.mxu0 %v18220_v60 }
 0x712   :  { %16182 = vmatprep.subr.bf16.mxu0 %v16742_v14 }
 0x714   :  { %16229 = vmatpush3.bf16.msra.mxu1 %v16228_v55 }
 0x715   :  { %16230 = vmatprep.subr.bf16.mxu1 %v16742_v14  ;;  %16184 = vmatpush3.bf16.msra.mxu0 %v18282_v48 }
 0x716   :  { %16185 = vmatprep.subr.bf16.mxu0 %v16742_v14 }
 0x718   :  { %16232 = vmatpush3.bf16.msra.mxu1 %v16231_v32  ;;  %v18287_v32 = vsub.f32 %v13329_v31, %v13366_v16 }
 0x719   :  { %16233 = vmatprep.subr.bf16.mxu1 %v16742_v14 }
 0x770   :  { %v10845_v13 = vpop.f32.mrb[26].mxu1 }
 0x771   :  { %13120 = vrot.lane.b32.xlu1 %v10845_v13, %s16741_s30  ;;  %v15740_v17 = vpop.f32.mrb[27].mxu1 }
 0x774   :  { %v11298_v33 = vpop.f32.mrb[34].mxu0 }
 0x775   :  { %v15770_v58 = vpop.f32.mrb[35].mxu0  ;;  %13122 = vrot.lane.b32.xlu1 %v11298_v33, %s16741_s30 }
 0x7a5   :  { %v12204_v40 = vpop.f32.mrb[36].mxu0 }
 0x7a6   :  { %v15830_v47 = vpop.f32.mrb[37].mxu0  ;;  %13126 = vrot.lane.b32.xlu1 %v12204_v40, %s16741_s30 }
 0x7a9   :  { %v11751_v49 = vpop.f32.mrb[28].mxu1 }
 0x7aa   :  { %13124 = vrot.lane.b32.xlu0 %v11751_v49, %s16741_s30  ;;  %v15800_v38 = vpop.f32.mrb[29].mxu1 }
 0x7da   :  { %v13110_v50 = vpop.f32.mrb[38].mxu0 }
 0x7db   :  { %v15890_v52 = vpop.f32.mrb[39].mxu0  ;;  %13130 = vrot.lane.b32.xlu1 %v13110_v50, %s16741_s30 }
 0x7dc   :  { %v16744_v52 = vmov 1934713408  }
 0x7de   :  { %v12657_v56 = vpop.f32.mrb[30].mxu1 }
 0x7df   :  { %13128 = vrot.lane.b32.xlu0 %v12657_v56, %s16741_s30  ;;  %v15860_v7 = vpop.f32.mrb[31].mxu1  ;;  %v13209_v56 = vunpack.c.l.s4 %v16744_v52 }
 0x7e0   :  { %v13327_v7 = vld [vmem:[%s18606_s6 + $0x40] sm:$0xff] }
 0x7e1   :  { %v13210_v11 = vunpack.c.0.s8 %v13209_v56  ;;  %v13360_v12 = vand.u32 4294901760, %v13327_v7 }
 0x7e3   :  { %v13121_v35 = vpop.permute.xlu1 %13120  ;;  %v18266_v18 = vsub.f32 %v13327_v7, %v13360_v12  ;;  %v18278_v20 = vsub.s32 %v13210_v11, %v13150_v62  ;;  %v18304_v62 = vpack.c.bf16 %v13363_v8, %v13360_v12  ;;  %v18334_v7 = vpack.c.bf16 %v13369_v0, %v13366_v16 }
 0x7e4   :  { %v13138_v17 = vsel %vm2133_vm2, %v17874_v51, %v13121_v35 }
 0x7e5   :  { %v16234_v4 = vpack.c.bf16 %v18268_v22, %v18266_v18  ;;  %16187 = vmatpush3.bf16.msra.mxu0 %v18304_v62 }
 0x7e6   :  { %16188 = vmatprep.subr.bf16.mxu0 %v16742_v14 }
 0x7e7   :  { %v13123_v37 = vpop.permute.xlu1 %13122  ;;  %16235 = vmatpush3.bf16.msra.mxu1 %v16234_v4 }
 0x7e8   :  { %v13139_v63 = vsel %vm2133_vm2, %v17926_v36, %v13123_v37  ;;  %16236 = vmatprep.subr.bf16.mxu1 %v16742_v14  ;;  %v18299_v37 = vsub.f32 %v13330_v34, %v13369_v0 }
 0x7e9   :  { %16190 = vmatpush3.bf16.msra.mxu0 %v18334_v7 }
 0x7ea   :  { %16191 = vmatprep.subr.bf16.mxu0 %v16742_v14 }
 0x818   :  { %v13127_v30 = vpop.permute.xlu1 %13126 }
 0x819   :  { %v13141_v2 = vsel %vm2133_vm2, %v17946_v25, %v13127_v30 }
 0x81a   :  { %v13160_v5 = vcombine.low %v13139_v63, %v13141_v2  ;;  %v13161_v6 = vcombine.high %v13139_v63, %v13141_v2  ;;  %v16237_v63 = vpack.c.bf16 %v18299_v37, %v18287_v32 }
 0x81c   :  { %v13125_v13 = vpop.permute.xlu0 %13124  ;;  %v13168_v47 = vrot.slane %v13160_v5, %v18242_v3  ;;  %v18250_v36 = vrot.slane %v13161_v6, %v18242_v3  ;;  %16238 = vmatpush3.bf16.msra.mxu1 %v16237_v63  ;;  %v13506_v63 = vand.u32 4294901760, %v18299_v37 }
 0x81d   :  { %v13140_v33 = vsel %vm2133_vm2, %v17944_v19, %v13125_v13  ;;  %16239 = vmatprep.subr.bf16.mxu1 %v16742_v14 }
 0x81e   :  { %v13144_v58 = vcombine.low %v13138_v17, %v13140_v33  ;;  %v13145_v40 = vcombine.high %v13138_v17, %v13140_v33  ;;  %v13333_v33 = vld [vmem:[%s18606_s6 + $0x70] sm:$0xff] }
 0x820   :  { %v13152_v25 = vrot.slane %v13144_v58, %v18242_v3  ;;  %v18254_v49 = vrot.slane %v13145_v40, %v18242_v3  ;;  %v13334_v58 = vld [vmem:[%s18606_s6 + $0x78] sm:$0xff] }
 0x822   :  { %v13206_v38 = vcombine.low %v13152_v25, %v13168_v47  ;;  %v13207_v50 = vcombine.high %v13152_v25, %v13168_v47  ;;  %v13222_v51 = vcombine.low %v18254_v49, %v18250_v36  ;;  %v13223_v19 = vcombine.high %v18254_v49, %v18250_v36 }
 0x823   :  { %v13378_v36 = vand.u32 4294901760, %v13333_v33  ;;  %v13381_v25 = vand.u32 4294901760, %v13334_v58 }
 0x824   :  { %v13221_v35 = vrot.slane %v13207_v50, %v18278_v20  ;;  %v18307_v30 = vrot.slane %v13206_v38, %v18278_v20  ;;  %v13230_v40 = vrot.slane %v13222_v51, %v18278_v20  ;;  %v13237_v56 = vrot.slane %v13223_v19, %v18278_v20 }
 0x825   :  { %v18336_v1 = vsub.f32 %v13333_v33, %v13378_v36  ;;  %v13533_v19 = vsub.f32 %v13334_v58, %v13381_v25 }
 0x84d   :  { %v13131_v23 = vpop.permute.xlu1 %13130 }
 0x84e   :  { %v13143_v39 = vsel %vm2133_vm2, %v17950_v27, %v13131_v23  ;;  %v13331_v27 = vld [vmem:[%s18606_s6 + $0x60] sm:$0xff]  ;;  %s16745_s6 = smov 32  }
 0x84f   :  { %v13191_v29 = vcombine.high %v13143_v39, %v16738_v26  ;;  %v13372_v42 = vand.u32 4294901760, %v13331_v27  ;;  %v13198_v44 = vrot.slane %v13143_v39, %v18242_v3 }
 0x851   :  { %v13129_v55 = vpop.permute.xlu0 %13128  ;;  %v18311_v2 = vsub.f32 %v13331_v27, %v13372_v42  ;;  %v13205_v5 = vrot.slane %v13191_v29, %v18242_v3  ;;  %v16243_v29 = vpack.c.bf16 %v13533_v19, %v18336_v1  ;;  %v18356_v27 = vpack.c.bf16 %v13381_v25, %v13378_v36 }
 0x852   :  { %v13142_v57 = vsel %vm2133_vm2, %v17948_v9, %v13129_v55  ;;  %v13375_v9 = vand.u32 4294901760, %v13332_v53 }
 0x853   :  { %v13176_v15 = vcombine.high %v13142_v57, %v16738_v26  ;;  %v13183_v61 = vrot.slane %v13142_v57, %v18242_v3  ;;  %v13492_v57 = vand.u32 4294901760, %v18268_v22  ;;  %v13513_v33 = vand.u32 4294901760, %v18311_v2 }
 0x854   :  { %v18323_v47 = vsub.f32 %v13332_v53, %v13375_v9  ;;  %v18350_v55 = vpack.c.bf16 %v13375_v9, %v13372_v42  ;;  %v13485_v53 = vand.u32 4294901760, %v18266_v18 }
 0x855   :  { %v13190_v6 = vrot.slane %v13176_v15, %v18242_v3  ;;  %v13238_v13 = vcombine.low %v13183_v61, %v13198_v44  ;;  %v13239_v17 = vcombine.high %v13183_v61, %v13198_v44  ;;  %v13493_v42 = vsub.f32 %v18268_v22, %v13492_v57 }
 0x856   :  { %v16240_v51 = vpack.c.bf16 %v18323_v47, %v18311_v2  ;;  %16193 = vmatpush3.bf16.msra.mxu0 %v18350_v55  ;;  %v13499_v61 = vand.u32 4294901760, %v18287_v32  ;;  %v13514_v22 = vsub.f32 %v18311_v2, %v13513_v33 }
 0x857   :  { %v13254_v49 = vcombine.low %v13190_v6, %v13205_v5  ;;  %v13255_v38 = vcombine.high %v13190_v6, %v13205_v5  ;;  %v13253_v50 = vrot.slane %v13239_v17, %v18278_v20  ;;  %v18328_v52 = vrot.slane %v13238_v13, %v18278_v20  ;;  %16194 = vmatprep.subr.bf16.mxu0 %v16742_v14 }
 0x858   :  { %16241 = vmatpush3.bf16.msra.mxu1 %v16240_v51  ;;  %v13494_v15 = vand.u32 4294901760, %v13493_v42  ;;  %v13500_v5 = vsub.f32 %v18287_v32, %v13499_v61  ;;  %v13507_v6 = vsub.f32 %v18299_v37, %v13506_v63  ;;  %v13515_v36 = vand.u32 4294901760, %v13514_v22 }
 0x859   :  { %v13272_v11 = vcombine.low %v13221_v35, %v13253_v50  ;;  %v13271_v12 = vcombine.high %v18307_v30, %v18328_v52  ;;  %v13273_v8 = vcombine.high %v13221_v35, %v13253_v50  ;;  %v13262_v23 = vrot.slane %v13254_v49, %v18278_v20  ;;  %16242 = vmatprep.subr.bf16.mxu1 %v16742_v14 }
 0x85a   :  { %v13269_v31 = vrot.slane %v13255_v38, %v18278_v20  ;;  %v13270_v34 = vcombine.low %v18307_v30, %v18328_v52  ;;  %16196 = vmatpush3.bf16.msra.mxu0 %v18356_v27  ;;  %v13486_v35 = vsub.f32 %v18266_v18, %v13485_v53  ;;  %v13501_v13 = vand.u32 4294901760, %v13500_v5 }
 0x85b   :  { %13283 = vrot.lane.b32.xlu1 %v13272_v11, %s16745_s6  ;;  %13279 = vrot.lane.b32.xlu0 %v13271_v12, %s16746_s16  ;;  %v13274_v39 = vcombine.low %v13230_v40, %v13262_v23  ;;  %v13275_v4 = vcombine.high %v13230_v40, %v13262_v23  ;;  %v13508_v17 = vand.u32 4294901760, %v13507_v6  ;;  %v13520_v18 = vand.u32 4294901760, %v18323_v47 }
 0x85c   :  { %v13276_v16 = vcombine.low %v13237_v56, %v13269_v31  ;;  %v13277_v0 = vcombine.high %v13237_v56, %v13269_v31  ;;  %16244 = vmatpush3.bf16.msra.mxu1 %v16243_v29  ;;  %16197 = vmatprep.subr.bf16.mxu0 %v16742_v14  ;;  %v13487_v44 = vand.u32 4294901760, %v13486_v35  ;;  %v13527_v49 = vand.u32 4294901760, %v18336_v1 }
 0x85d   :  { %16245 = vmatprep.subr.bf16.mxu1 %v16742_v14  ;;  %v18376_v58 = vpack.c.bf16 %v13508_v17, %v13501_v13  ;;  %v13521_v40 = vsub.f32 %v18323_v47, %v13520_v18  ;;  %v13534_v38 = vand.u32 4294901760, %v13533_v19  ;;  %v18386_v12 = vpack.c.bf16 %v13492_v57, %v13485_v53 }
 0x85e   :  { %v18370_v9 = vpack.c.bf16 %v13494_v15, %v13487_v44  ;;  %v13528_v37 = vsub.f32 %v18336_v1, %v13527_v49  ;;  %v18390_v2 = vpack.c.bf16 %v13520_v18, %v13513_v33  ;;  %v13436_v57 = vand.u32 4294901760, %v18186_v41 }
 0x85f   :  { %13287 = vrot.lane.b32.xlu0 %v13273_v8, %s16747_s17  ;;  %13291 = vrot.lane.b32.xlu1 %v13274_v39, %s16748_s1  ;;  %v13522_v25 = vand.u32 4294901760, %v13521_v40  ;;  %v13535_v50 = vsub.f32 %v13533_v19, %v13534_v38  ;;  %v18388_v8 = vpack.c.bf16 %v13506_v63, %v13499_v61  ;;  %v18392_v47 = vpack.c.bf16 %v13534_v38, %v13527_v49 }
 0x860   :  { %v13529_v56 = vand.u32 4294901760, %v13528_v37  ;;  %v13437_v44 = vsub.f32 %v18186_v41, %v13436_v57  ;;  %v13443_v15 = vand.u32 4294901760, %v18188_v28  ;;  %v13450_v61 = vand.u32 4294901760, %v18192_v43 }
 0x861   :  { %v18381_v32 = vpack.c.bf16 %v13522_v25, %v13515_v36  ;;  %v13536_v51 = vand.u32 4294901760, %v13535_v50  ;;  %v13457_v22 = vand.u32 4294901760, %v18209_v45  ;;  %v13464_v40 = vand.u32 4294901760, %v18214_v21 }
 0x862   :  { %v13438_v17 = vand.u32 4294901760, %v13437_v44  ;;  %v13444_v33 = vsub.f32 %v18188_v28, %v13443_v15  ;;  %v13451_v18 = vsub.f32 %v18192_v43, %v13450_v61 }
 0x863   :  { %13295 = vrot.lane.b32.xlu0 %v13275_v4, %s16749_s18  ;;  %13299 = vrot.lane.b32.xlu1 %v13276_v16, %s16750_s3  ;;  %v18384_v11 = vpack.c.bf16 %v13536_v51, %v13529_v56  ;;  %v13458_v50 = vsub.f32 %v18209_v45, %v13457_v22  ;;  %v13465_v56 = vsub.f32 %v18214_v21, %v13464_v40  ;;  %v13471_v51 = vand.u32 4294901760, %v18226_v10 }
 0x864   :  { %v13445_v38 = vand.u32 4294901760, %v13444_v33  ;;  %v13452_v37 = vand.u32 4294901760, %v13451_v18 }
 0x867   :  { %13303 = vrot.lane.b32.xlu0 %v13277_v0, %s16751_s19  ;;  %v13429_v0 = vand.u32 4294901760, %v18184_v54 }
 0x8cd   :  { %v13284_v23 = vpop.permute.xlu1 %13283  ;;  %v13280_v31 = vpop.permute.xlu0 %13279 }
 0x8ce   :  { %v13306_v1 = vsel %vm52_vm0, %v13270_v34, %v13280_v31  ;;  %v13430_v34 = vsub.f32 %v18184_v54, %v13429_v0  ;;  %v16276_v54 = vpack.c.bf16 %v13464_v40, %v13457_v22 }
 0x8cf   :  { %v13308_v39 = vsel %vm13307_vm3, %v13306_v1, %v13284_v23  ;;  %v13478_v23 = vand.u32 4294901760, %v18229_v46  ;;  %v16201_v1 = vpack.c.bf16 %v13452_v37, %v13445_v38 }
 0x8d0   :  { %v13431_v6 = vand.u32 4294901760, %v13430_v34 }
 0x8d1   :  { %v13288_v19 = vpop.permute.xlu0 %13287  ;;  %v13292_v4 = vpop.permute.xlu1 %13291  ;;  %v16279_v41 = vpack.c.bf16 %v13478_v23, %v13471_v51 }
 0x8d2   :  { %v13310_v16 = vsel %vm13309_vm4, %v13308_v39, %v13288_v19  ;;  %v16198_v49 = vpack.c.bf16 %v13438_v17, %v13431_v6  ;;  %v13459_v19 = vand.u32 4294901760, %v13458_v50  ;;  %v13466_v39 = vand.u32 4294901760, %v13465_v56  ;;  %v16732_v56 = vld [vmem:[%s18601_s0 + $0x8] sm:$0xff] }
 0x8d3   :  { %v13312_v29 = vsel %vm13311_vm5, %v13310_v16, %v13292_v4  ;;  %v13472_v4 = vsub.f32 %v18226_v10, %v13471_v51  ;;  %v13479_v16 = vsub.f32 %v18229_v46, %v13478_v23  ;;  %v16270_v46 = vpack.c.bf16 %v13436_v57, %v13429_v0  ;;  %v16733_v23 = vld [vmem:[%s18601_s0] sm:$0xff] }
 0x8d4   :  { %v16204_v21 = vpack.c.bf16 %v13466_v39, %v13459_v19 }
 0x8d5   :  { %v13296_v53 = vpop.permute.xlu0 %13295  ;;  %v13300_v52 = vpop.permute.xlu1 %13299 }
 0x8d6   :  { %v13314_v30 = vsel %vm13313_vm6, %v13312_v29, %v13296_v53  ;;  %v13473_v29 = vand.u32 4294901760, %v13472_v4  ;;  %v13480_v53 = vand.u32 4294901760, %v13479_v16  ;;  %v16734_v4 = vld [vmem:[%s18601_s0 + $0x28] sm:$0xff] }
 0x8d7   :  { %v13316_v35 = vsel %vm13315_vm7, %v13314_v30, %v13300_v52 }
 0x8d8   :  { %v16207_v10 = vpack.c.bf16 %v13480_v53, %v13473_v29 }
 0x8d9   :  { %v13304_v42 = vpop.permute.xlu0 %13303 }
 0x8da   :  { %v13318_v63 = vsel %vm13317_vm8, %v13316_v35, %v13304_v42 }
 0x8db   :  { %v18414_v5 = vand.u32 4294901760, %v13318_v63 }
 0x8dd   :  { %v13417_v13 = vsub.f32 %v13318_v63, %v18414_v5 }
 0x8df   :  { %v13418_v36 = vand.u32 4294901760, %v13417_v13  ;;  %15994 = vmatmul.mubr.f32.vlgmr.msra.gmra.mrb[32].mxu1 %v13417_v13 }
 0x8e0   :  { %16247 = vmatpush3.bf16.msra.mxu1 %v18190_v59  ;;  %16028 = vmatprep.mubr.msk.f32.mxu1 %vm16739_vm1, %v16738_v26 }
 0x8e1   :  { %v13419_v25 = vsub.f32 %v13417_v13, %v13418_v36  ;;  %16248 = vmatprep.subr.bf16.mxu1 %v16742_v14 }
 0x8e3   :  { %v13420_v31 = vand.u32 4294901760, %v13419_v25 }
 0x8e4   :  { %16250 = vmatpush3.bf16.msra.mxu1 %v18207_v24 }
 0x8e5   :  { %15924 = vmatmul.mubr.f32.vlgmr.msra.gmra.mrb[40].mxu0 %v13420_v31  ;;  %16251 = vmatprep.subr.bf16.mxu1 %v16742_v14 }
 0x8e6   :  { %16199 = vmatpush3.bf16.msra.mxu0 %v16198_v49  ;;  %15958 = vmatprep.mubr.msk.f32.mxu0 %vm16739_vm1, %v16738_v26 }
 0x8e7   :  { %16200 = vmatprep.subr.bf16.mxu0 %v16742_v14 }
 0x8e8   :  { %16253 = vmatpush3.bf16.msra.mxu1 %v18220_v60 }
 0x8e9   :  { %16254 = vmatprep.subr.bf16.mxu1 %v16742_v14 }
 0x8ea   :  { %16202 = vmatpush3.bf16.msra.mxu0 %v16201_v1 }
 0x8eb   :  { %16203 = vmatprep.subr.bf16.mxu0 %v16742_v14 }
 0x8ec   :  { %16256 = vmatpush3.bf16.msra.mxu1 %v18282_v48 }
 0x8ed   :  { %16257 = vmatprep.subr.bf16.mxu1 %v16742_v14 }
 0x8ee   :  { %16205 = vmatpush3.bf16.msra.mxu0 %v16204_v21  ;;  %v16735_v21 = vld [vmem:[%s18601_s0 + $0x10] sm:$0xff] }
 0x8ef   :  { %16206 = vmatprep.subr.bf16.mxu0 %v16742_v14 }
 0x8f0   :  { %16259 = vmatpush3.bf16.msra.mxu1 %v18304_v62 }
 0x8f1   :  { %16260 = vmatprep.subr.bf16.mxu1 %v16742_v14 }
 0x8f2   :  { %16208 = vmatpush3.bf16.msra.mxu0 %v16207_v10 }
 0x8f3   :  { %16209 = vmatprep.subr.bf16.mxu0 %v16742_v14 }
 0x8f4   :  { %16262 = vmatpush3.bf16.msra.mxu1 %v18334_v7 }
 0x8f5   :  { %16263 = vmatprep.subr.bf16.mxu1 %v16742_v14 }
 0x8f6   :  { %16211 = vmatpush3.bf16.msra.mxu0 %v18370_v9  ;;  %v16273_v9 = vpack.c.bf16 %v13450_v61, %v13443_v15 }
 0x8f7   :  { %16212 = vmatprep.subr.bf16.mxu0 %v16742_v14 }
 0x8f8   :  { %16265 = vmatpush3.bf16.msra.mxu1 %v18350_v55 }
 0x8f9   :  { %16266 = vmatprep.subr.bf16.mxu1 %v16742_v14 }
 0x8fa   :  { %16214 = vmatpush3.bf16.msra.mxu0 %v18376_v58 }
 0x8fb   :  { %16215 = vmatprep.subr.bf16.mxu0 %v16742_v14 }
 0x8fc   :  { %16268 = vmatpush3.bf16.msra.mxu1 %v18356_v27 }
 0x8fd   :  { %16269 = vmatprep.subr.bf16.mxu1 %v16742_v14 }
 0x8fe   :  { %16217 = vmatpush3.bf16.msra.mxu0 %v18381_v32 }
 0x8ff   :  { %16029 = vmatmul.mubr.f32.vlgmr.msra.gmra.mrb[32].mxu1 %v13418_v36  ;;  %16218 = vmatprep.subr.bf16.mxu0 %v16742_v14 }
 0x900   :  { %16271 = vmatpush3.bf16.msra.mxu1 %v16270_v46  ;;  %16063 = vmatprep.mubr.msk.f32.mxu1 %vm16739_vm1, %v16738_v26  ;;  %v16736_v46 = vld [vmem:[%s18601_s0 + $0x18] sm:$0xff] }
 0x901   :  { %16272 = vmatprep.subr.bf16.mxu1 %v16742_v14 }
 0x902   :  { %16220 = vmatpush3.bf16.msra.mxu0 %v18384_v11 }
 0x904   :  { %16274 = vmatpush3.bf16.msra.mxu1 %v16273_v9 }
 0x905   :  { %15959 = vmatmul.mubr.f32.vlgmr.msra.gmra.mrb[40].mxu0 %v18414_v5  ;;  %16275 = vmatprep.subr.bf16.mxu1 %v16742_v14 }
 0x908   :  { %16277 = vmatpush3.bf16.msra.mxu1 %v16276_v54 }
 0x909   :  { %16278 = vmatprep.subr.bf16.mxu1 %v16742_v14 }
 0x90c   :  { %16280 = vmatpush3.bf16.msra.mxu1 %v16279_v41 }
 0x90d   :  { %16281 = vmatprep.subr.bf16.mxu1 %v16742_v14 }
 0x910   :  { %16283 = vmatpush3.bf16.msra.mxu1 %v18386_v12 }
 0x911   :  { %16284 = vmatprep.subr.bf16.mxu1 %v16742_v14 }
 0x914   :  { %16286 = vmatpush3.bf16.msra.mxu1 %v18388_v8 }
 0x915   :  { %16287 = vmatprep.subr.bf16.mxu1 %v16742_v14 }
 0x918   :  { %16289 = vmatpush3.bf16.msra.mxu1 %v18390_v2 }
 0x919   :  { %16290 = vmatprep.subr.bf16.mxu1 %v16742_v14 }
 0x91c   :  { %16292 = vmatpush3.bf16.msra.mxu1 %v18392_v47 }
 0x91d   :  { %16293 = vmatprep.subr.bf16.mxu1 %v16742_v14 }
 0x91f   :  { %16064 = vmatmul.mubr.f32.vlgmr.msra.gmra.mrb[32].mxu1 %v18414_v5 }
 0x920   :  { %16295 = vmatpush3.bf16.msra.mxu1 %v18190_v59  ;;  %16098 = vmatprep.mubr.msk.f32.mxu1 %vm16739_vm1, %v16738_v26 }
 0x921   :  { %16296 = vmatprep.subr.bf16.mxu1 %v16742_v14 }
 0x924   :  { %16298 = vmatpush3.bf16.msra.mxu1 %v18207_v24 }
 0x925   :  { %16299 = vmatprep.subr.bf16.mxu1 %v16742_v14 }
 0x928   :  { %16301 = vmatpush3.bf16.msra.mxu1 %v18220_v60 }
 0x929   :  { %16302 = vmatprep.subr.bf16.mxu1 %v16742_v14 }
 0x92c   :  { %16304 = vmatpush3.bf16.msra.mxu1 %v18282_v48 }
 0x92d   :  { %16305 = vmatprep.subr.bf16.mxu1 %v16742_v14 }
 0x930   :  { %16307 = vmatpush3.bf16.msra.mxu1 %v18304_v62 }
 0x931   :  { %16308 = vmatprep.subr.bf16.mxu1 %v16742_v14 }
 0x934   :  { %16310 = vmatpush3.bf16.msra.mxu1 %v18334_v7 }
 0x935   :  { %16311 = vmatprep.subr.bf16.mxu1 %v16742_v14 }
 0x938   :  { %16313 = vmatpush3.bf16.msra.mxu1 %v18350_v55 }
 0x939   :  { %16314 = vmatprep.subr.bf16.mxu1 %v16742_v14 }
 0x93c   :  { %16316 = vmatpush3.bf16.msra.mxu1 %v18356_v27 }
 0x93f   :  { %16099 = vmatmul.mubr.f32.vlgmr.msra.gmra.mrb[32].mxu1 %v18414_v5 }
 0x9d8   :  { %v13573_v28 = vpop.f32.mrb[40].mxu0 }
 0x9d9   :  { %v15960_v59 = vpop.f32.mrb[41].mxu0 }
 0xa12   :  { %v13972_v43 = vpop.f32.mrb[32].mxu1 }
 0xa13   :  { %v16325_v24 = vadd.f32 %v13972_v43, %v13573_v28  ;;  %v16100_v45 = vpop.f32.mrb[33].mxu1  ;;  %v16737_v28 = vld [vmem:[%s18601_s0 + $0x20] sm:$0xff] }
 0xa15   :  { %13980 = vrot.lane.b32.xlu0 %v16325_v24, %s16750_s3  ;;  %13977 = vrot.lane.b32.xlu1 %v16325_v24, %s16751_s19 }
 0xa19   :  { %13986 = vrot.lane.b32.xlu0 %v16325_v24, %s16748_s1  ;;  %13983 = vrot.lane.b32.xlu1 %v16325_v24, %s16749_s18 }
 0xa1d   :  { %13992 = vrot.lane.b32.xlu0 %v16325_v24, %s16745_s6  ;;  %13989 = vrot.lane.b32.xlu1 %v16325_v24, %s16747_s17 }
 0xa21   :  { %13995 = vrot.lane.b32.xlu1 %v16325_v24, %s16746_s16 }
 0xa87   :  { %v13981_v14 = vpop.permute.xlu0 %13980  ;;  %v13978_v60 = vpop.permute.xlu1 %13977 }
 0xa88   :  { %v13998_v27 = vcombine.low %v16325_v24, %v13981_v14  ;;  %v13999_v58 = vcombine.high %v16325_v24, %v13981_v14 }
 0xa8a   :  { %v14006_v0 = vrot.slane %v13998_v27, %v18242_v3  ;;  %v14013_v57 = vrot.slane %v13999_v58, %v18242_v3 }
 0xa8b   :  { %v13987_v48 = vpop.permute.xlu0 %13986  ;;  %v13984_v62 = vpop.permute.xlu1 %13983 }
 0xa8c   :  { %v14014_v7 = vcombine.low %v13978_v60, %v13984_v62  ;;  %v14015_v55 = vcombine.high %v13978_v60, %v13984_v62 }
 0xa8e   :  { %v14022_v12 = vrot.slane %v14014_v7, %v18242_v3  ;;  %v14029_v8 = vrot.slane %v14015_v55, %v18242_v3 }
 0xa8f   :  { %v13993_v32 = vpop.permute.xlu0 %13992  ;;  %v13990_v11 = vpop.permute.xlu1 %13989 }
 0xa90   :  { %v14030_v2 = vcombine.low %v13987_v48, %v13993_v32  ;;  %v14031_v47 = vcombine.high %v13987_v48, %v13993_v32  ;;  %v14062_v35 = vcombine.low %v14006_v0, %v14022_v12  ;;  %v14063_v42 = vcombine.high %v14006_v0, %v14022_v12 }
 0xa91   :  { %v14078_v44 = vcombine.low %v14013_v57, %v14029_v8 }
 0xa92   :  { %v14038_v15 = vrot.slane %v14030_v2, %v18242_v3  ;;  %v14045_v61 = vrot.slane %v14031_v47, %v18242_v3  ;;  %v14070_v33 = vrot.slane %v14062_v35, %v18278_v20  ;;  %v14077_v36 = vrot.slane %v14063_v42, %v18278_v20 }
 0xa93   :  { %v13996_v30 = vpop.permute.xlu1 %13995  ;;  %v14085_v18 = vrot.slane %v14078_v44, %v18278_v20 }
 0xa94   :  { %v14046_v52 = vcombine.low %v13990_v11, %v13996_v30  ;;  %v14047_v34 = vcombine.high %v13990_v11, %v13996_v30 }
 0xa96   :  { %v14054_v63 = vrot.slane %v14046_v52, %v18242_v3  ;;  %v14061_v5 = vrot.slane %v14047_v34, %v18242_v3 }
 0xa98   :  { %v14086_v6 = vcombine.low %v14038_v15, %v14054_v63  ;;  %v14087_v13 = vcombine.high %v14038_v15, %v14054_v63  ;;  %v14102_v17 = vcombine.low %v14045_v61, %v14061_v5 }
 0xa9a   :  { %v14094_v22 = vrot.slane %v14086_v6, %v18278_v20  ;;  %v14109_v40 = vrot.slane %v14102_v17, %v18278_v20  ;;  %v14101_v25 = vrot.slane %v14087_v13, %v18278_v20 }
 0xa9c   :  { %v14111_v49 = vcombine.high %v14070_v33, %v14094_v22  ;;  %v14110_v38 = vcombine.low %v14070_v33, %v14094_v22  ;;  %v14115_v37 = vcombine.high %v14085_v18, %v14109_v40  ;;  %v14112_v50 = vcombine.low %v14077_v36, %v14101_v25 }
 0xa9d   :  { %v14113_v1 = vcombine.high %v14077_v36, %v14101_v25  ;;  %v14114_v54 = vcombine.low %v14085_v18, %v14109_v40 }
 0xa9e   :  { %v14117_v51 = vadd.f32 %v16732_v56, %v14111_v49  ;;  %v14116_v31 = vadd.f32 %v16733_v23, %v14110_v38  ;;  %v14121_v16 = vadd.f32 %v16734_v4, %v14115_v37  ;;  %v14118_v29 = vadd.f32 %v16735_v21, %v14112_v50 }
 0xa9f   :  { %v14119_v9 = vadd.f32 %v16736_v46, %v14113_v1  ;;  %v14120_v59 = vadd.f32 %v16737_v28, %v14114_v54  ;;  %v14402_v28 = vld [vmem:[%s18608_s8] ss:$0 sm:$0xff] }
 0xaa0   :  { %v14125_v19 = vsel %vm52_vm0, %v14117_v51, 0.0  ;;  %v14122_v39 = vsel %vm52_vm0, %v14116_v31, 0.0  ;;  %v14137_v53 = vsel %vm52_vm0, %v14121_v16, 0.0  ;;  %v14128_v10 = vsel %vm52_vm0, %v14118_v29, 0.0 }
 0xaa1   :  { %14126 = vadd.xlane.f32.xlu1 %v14125_v19  ;;  %14123 = vadd.xlane.f32.xlu0 %v14122_v39  ;;  %v14131_v41 = vsel %vm52_vm0, %v14119_v9, 0.0  ;;  %v14134_v43 = vsel %vm52_vm0, %v14120_v59, 0.0 }
 0xaa5   :  { %14138 = vadd.xlane.f32.xlu1 %v14137_v53  ;;  %14129 = vadd.xlane.f32.xlu0 %v14128_v10  ;;  %v14401_v53 = vld [vmem:[%s18607_s7] ss:$0 sm:$0xff] }
 0xaa9   :  { %14132 = vadd.xlane.f32.xlu0 %v14131_v41 }
 0xaad   :  { %14135 = vadd.xlane.f32.xlu0 %v14134_v43 }
 0xb2e   :  { %v14127_v24 = vpop.xlane.xlu1 %14126  ;;  %v14124_v45 = vpop.xlane.xlu0 %14123 }
 0xb2f   :  { %v14142_v14 = vmul.f32 0.0625, %v14127_v24  ;;  %v14141_v60 = vmul.f32 0.0625, %v14124_v45 }
 0xb31   :  { %v14148_v48 = vsub.f32 %v14117_v51, %v14142_v14  ;;  %v14147_v62 = vsub.f32 %v14116_v31, %v14141_v60 }
 0xb32   :  { %v14139_v7 = vpop.xlane.xlu1 %14138  ;;  %v14130_v55 = vpop.xlane.xlu0 %14129 }
 0xb33   :  { %v14143_v27 = vmul.f32 0.0625, %v14130_v55  ;;  %v14154_v58 = vmul.f32 %v14148_v48, %v14148_v48  ;;  %v14153_v32 = vmul.f32 %v14147_v62, %v14147_v62  ;;  %v14146_v11 = vmul.f32 0.0625, %v14139_v7 }
 0xb35   :  { %v14149_v12 = vsub.f32 %v14118_v29, %v14143_v27  ;;  %v14162_v8 = vsel %vm52_vm0, %v14154_v58, 0.0  ;;  %v14159_v2 = vsel %vm52_vm0, %v14153_v32, 0.0  ;;  %v14152_v30 = vsub.f32 %v14121_v16, %v14146_v11 }
 0xb36   :  { %14163 = vadd.xlane.f32.xlu1 %v14162_v8  ;;  %14160 = vadd.xlane.f32.xlu0 %v14159_v2  ;;  %v14133_v47 = vpop.xlane.xlu0 %14132 }
 0xb37   :  { %v14144_v0 = vmul.f32 0.0625, %v14133_v47  ;;  %v14155_v57 = vmul.f32 %v14149_v12, %v14149_v12  ;;  %v14158_v63 = vmul.f32 %v14152_v30, %v14152_v30 }
 0xb39   :  { %v14150_v52 = vsub.f32 %v14119_v9, %v14144_v0  ;;  %v14165_v34 = vsel %vm52_vm0, %v14155_v57, 0.0  ;;  %v14174_v6 = vsel %vm52_vm0, %v14158_v63, 0.0 }
 0xb3a   :  { %14166 = vadd.xlane.f32.xlu0 %v14165_v34  ;;  %v14136_v35 = vpop.xlane.xlu0 %14135 }
 0xb3b   :  { %v14145_v42 = vmul.f32 0.0625, %v14136_v35  ;;  %v14156_v44 = vmul.f32 %v14150_v52, %v14150_v52 }
 0xb3d   :  { %v14151_v15 = vsub.f32 %v14120_v59, %v14145_v42  ;;  %v14168_v61 = vsel %vm52_vm0, %v14156_v44, 0.0 }
 0xb3e   :  { %14169 = vadd.xlane.f32.xlu1 %v14168_v61 }
 0xb3f   :  { %v14157_v5 = vmul.f32 %v14151_v15, %v14151_v15 }
 0xb41   :  { %v14171_v13 = vsel %vm52_vm0, %v14157_v5, 0.0 }
 0xb42   :  { %14175 = vadd.xlane.f32.xlu1 %v14174_v6  ;;  %14172 = vadd.xlane.f32.xlu0 %v14171_v13 }
 0xbc3   :  { %v14164_v17 = vpop.xlane.xlu1 %14163  ;;  %v14161_v33 = vpop.xlane.xlu0 %14160 }
 0xbc4   :  { %v14178_v18 = vmul.f32 0.0625, %v14164_v17  ;;  %v14177_v22 = vmul.f32 0.0625, %v14161_v33 }
 0xbc6   :  { %v14184_v40 = vadd.f32 1e-06, %v14178_v18  ;;  %v14183_v36 = vadd.f32 1e-06, %v14177_v22 }
 0xbc7   :  { %v14167_v25 = vpop.xlane.xlu0 %14166 }
 0xbc8   :  { %v14179_v49 = vmul.f32 0.0625, %v14167_v25  ;;  %16720 = vrsqrt.f32 %v14183_v36 }
 0xbc9   :  { %16722 = vrsqrt.f32 %v14184_v40 }
 0xbca   :  { %v14185_v38 = vadd.f32 1e-06, %v14179_v49 }
 0xbcb   :  { %v14170_v37 = vpop.xlane.xlu1 %14169 }
 0xbcc   :  { %16724 = vrsqrt.f32 %v14185_v38  ;;  %v14180_v50 = vmul.f32 0.0625, %v14170_v37 }
 0xbce   :  { %v14186_v56 = vadd.f32 1e-06, %v14180_v50 }
 0xbcf   :  { %v14176_v51 = vpop.xlane.xlu1 %14175  ;;  %v14173_v23 = vpop.xlane.xlu0 %14172 }
 0xbd0   :  { %16726 = vrsqrt.f32 %v14186_v56  ;;  %v14182_v31 = vmul.f32 0.0625, %v14176_v51  ;;  %v14181_v1 = vmul.f32 0.0625, %v14173_v23 }
 0xbd2   :  { %v14188_v19 = vadd.f32 1e-06, %v14182_v31  ;;  %v14187_v39 = vadd.f32 1e-06, %v14181_v1  ;;  %v16721_v4 = vpop.eup %16720 }
 0xbd3   :  { %v16723_v16 = vpop.eup %16722  ;;  %v14195_v21 = vmul.f32 %v16721_v4, %v14147_v62 }
 0xbd4   :  { %16728 = vrsqrt.f32 %v14188_v19  ;;  %v14196_v10 = vmul.f32 %v16723_v16, %v14148_v48 }
 0xbd5   :  { %16730 = vrsqrt.f32 %v14187_v39  ;;  %v14208_v9 = vmul.f32 %v14401_v53, %v14195_v21 }
 0xbd6   :  { %v16725_v29 = vpop.eup %16724  ;;  %v14209_v59 = vmul.f32 %v14401_v53, %v14196_v10 }
 0xbd7   :  { %v14197_v46 = vmul.f32 %v16725_v29, %v14149_v12  ;;  %v14221_v14 = vadd.f32 %v14402_v28, %v14208_v9 }
 0xbd8   :  { %v14222_v55 = vadd.f32 %v14402_v28, %v14209_v59 }
 0xbd9   :  { %v14210_v54 = vmul.f32 %v14401_v53, %v14197_v46 }
 0xbda   :  { %v16727_v41 = vpop.eup %16726 }
 0xbdb   :  { %v14198_v43 = vmul.f32 %v16727_v41, %v14150_v52  ;;  %v14223_v24 = vadd.f32 %v14402_v28, %v14210_v54 }
 0xbdd   :  { %v14211_v45 = vmul.f32 %v14401_v53, %v14198_v43  ;;  %v14227_v58 = vcombine.low %v14221_v14, %v14223_v24  ;;  %v14228_v57 = vcombine.high %v14221_v14, %v14223_v24 }
 0xbde   :  { %v16729_v60 = vpop.eup %16728 }
 0xbdf   :  { %v16731_v62 = vpop.eup %16730  ;;  %v14200_v7 = vmul.f32 %v16729_v60, %v14152_v30  ;;  %v14224_v27 = vadd.f32 %v14402_v28, %v14211_v45  ;;  %v14235_v47 = vrot.slane %v14227_v58, %v18242_v3  ;;  %v14242_v63 = vrot.slane %v14228_v57, %v18242_v3 }
 0xbe0   :  { %v14199_v48 = vmul.f32 %v16731_v62, %v14151_v15 }
 0xbe1   :  { %v14213_v32 = vmul.f32 %v14401_v53, %v14200_v7  ;;  %v14243_v11 = vcombine.low %v14222_v55, %v14224_v27  ;;  %v14244_v12 = vcombine.high %v14222_v55, %v14224_v27 }
 0xbe2   :  { %v14212_v8 = vmul.f32 %v14401_v53, %v14199_v48 }
 0xbe3   :  { %v14226_v2 = vadd.f32 %v14402_v28, %v14213_v32  ;;  %v14251_v0 = vrot.slane %v14243_v11, %v18242_v3  ;;  %v14258_v30 = vrot.slane %v14244_v12, %v18242_v3 }
 0xbe4   :  { %v14225_v52 = vadd.f32 %v14402_v28, %v14212_v8 }
 0xbe5   :  { %v14281_v34 = vrot.slane %v14226_v2, %v18242_v3  ;;  %v14290_v35 = vcombine.high %v14235_v47, %v14251_v0  ;;  %v14274_v42 = vcombine.high %v14226_v2, %v16738_v26  ;;  %v14289_v15 = vcombine.low %v14235_v47, %v14251_v0 }
 0xbe6   :  { %v14266_v44 = vrot.slane %v14225_v52, %v18242_v3  ;;  %v14259_v61 = vcombine.high %v14225_v52, %v16738_v26  ;;  %v14305_v18 = vcombine.low %v14242_v63, %v14258_v30  ;;  %v14306_v56 = vcombine.high %v14242_v63, %v14258_v30 }
 0xbe7   :  { %v14288_v5 = vrot.slane %v14274_v42, %v18242_v3  ;;  %v14304_v33 = vrot.slane %v14290_v35, %v18278_v20  ;;  %v14297_v40 = vrot.slane %v14289_v15, %v18278_v20 }
 0xbe8   :  { %v14322_v6 = vcombine.high %v14266_v44, %v14281_v34  ;;  %v14321_v13 = vcombine.low %v14266_v44, %v14281_v34  ;;  %v14273_v17 = vrot.slane %v14259_v61, %v18242_v3  ;;  %v14313_v3 = vrot.slane %v14305_v18, %v18278_v20 }
 0xbe9   :  { %v14320_v1 = vrot.slane %v14306_v56, %v18278_v20 }
 0xbea   :  { %v14336_v22 = vrot.slane %v14322_v6, %v18278_v20  ;;  %v14329_v36 = vrot.slane %v14321_v13, %v18278_v20  ;;  %v14337_v25 = vcombine.low %v14273_v17, %v14288_v5  ;;  %v14338_v37 = vcombine.high %v14273_v17, %v14288_v5 }
 0xbec   :  { %v14355_v49 = vcombine.low %v14304_v33, %v14336_v22  ;;  %v14354_v26 = vcombine.high %v14297_v40, %v14329_v36  ;;  %v14345_v38 = vrot.slane %v14337_v25, %v18278_v20  ;;  %v14353_v50 = vcombine.low %v14297_v40, %v14329_v36 }
 0xbed   :  { %v14356_v51 = vcombine.high %v14304_v33, %v14336_v22  ;;  %v14352_v31 = vrot.slane %v14338_v37, %v18278_v20 }
 0xbee   :  { %14366 = vrot.lane.b32.xlu1 %v14355_v49, %s16745_s6  ;;  %14362 = vrot.lane.b32.xlu0 %v14354_v26, %s16746_s16  ;;  %v14358_v23 = vcombine.high %v14313_v3, %v14345_v38  ;;  %v14357_v39 = vcombine.low %v14313_v3, %v14345_v38 }
 0xbef   :  { %v14360_v19 = vcombine.high %v14320_v1, %v14352_v31  ;;  %v14359_v4 = vcombine.low %v14320_v1, %v14352_v31 }
 0xbf2   :  { %14370 = vrot.lane.b32.xlu1 %v14356_v51, %s16747_s17  ;;  %14378 = vrot.lane.b32.xlu0 %v14358_v23, %s16749_s18 }
 0xbf6   :  { %14386 = vrot.lane.b32.xlu0 %v14360_v19, %s16751_s19  ;;  %14374 = vrot.lane.b32.xlu1 %v14357_v39, %s16748_s1 }
 0xbfa   :  { %14382 = vrot.lane.b32.xlu1 %v14359_v4, %s16750_s3 }
 0xc60   :  { %v14367_v16 = vpop.permute.xlu1 %14366  ;;  %v14363_v21 = vpop.permute.xlu0 %14362 }
 0xc61   :  { %v14389_v29 = vsel %vm52_vm0, %v14353_v50, %v14363_v21 }
 0xc62   :  { %v14390_v10 = vsel %vm13307_vm3, %v14389_v29, %v14367_v16 }
 0xc64   :  { %v14371_v53 = vpop.permute.xlu1 %14370  ;;  %v14379_v46 = vpop.permute.xlu0 %14378 }
 0xc65   :  { %v14391_v9 = vsel %vm13309_vm4, %v14390_v10, %v14371_v53 }
 0xc68   :  { %v14375_v20 = vpop.permute.xlu1 %14374  ;;  %v14387_v59 = vpop.permute.xlu0 %14386 }
 0xc69   :  { %v14392_v54 = vsel %vm13311_vm5, %v14391_v9, %v14375_v20 }
 0xc6a   :  { %v14393_v41 = vsel %vm13313_vm6, %v14392_v54, %v14379_v46 }
 0xc6c   :  { %v14383_v28 = vpop.permute.xlu1 %14382 }
 0xc6d   :  { %v14394_v43 = vsel %vm13315_vm7, %v14393_v41, %v14383_v28 }
 0xc6e   :  { %v14395_v24 = vsel %vm13317_vm8, %v14394_v43, %v14387_v59 }
 0xc6f   :  { %14396 = vst [vmem:[%s18609_s9] sm:$0x3f] %v14395_v24 }

</bundles_post_ra>
